<compile_context>
chip_gen: v5e
topology: v5e:2x2
jax: 0.10.0
libtpu: 0.0.40
codegen_flags: <defaults>
</compile_context>

<pallas_src>
import math
from functools import partial

import numpy as np
import jax
import jax.numpy as jnp
from jax.experimental import pallas as pl
from jax.experimental.pallas import tpu as pltpu

# ----------------------------- small config ---------------------------------
RES = 32                     # resolution (256 in the real model)
STYLE_DIM = 32               # latent / style dim (512 in the real model)
N_MLP = 8                    # mapping network depth
CROP_SIZE = 8                # args.crop_size
TRUNCATION = 0.7             # args.truncation
LOG_SIZE = int(math.log2(RES))
N_LATENT = 2 * LOG_SIZE - 2  # = 8 for resolution 32
CHANNELS = {4: 32, 8: 32, 16: 16, 32: 16}
LRELU_SLOPE = 0.2
ACT_GAIN = math.sqrt(2.0)    # FusedLeakyReLU scale
LANE = 128
TAPS = [(di, dj) for di in (-1, 0, 1) for dj in (-1, 0, 1)]  # t = 3*(di+1)+(dj+1)


def _halo_sizes(res):
    """Padded width (res+2) and flat, 128-lane-padded spatial size."""
    wp = res + 2
    hw = wp * wp
    return wp, max(LANE, ((hw + LANE - 1) // LANE) * LANE)


# ----------------------------- Pallas kernels --------------------------------
def _mod_conv3x3(x_mod_bf16, w_ref, xall_ref, cin, wp, hwp):
    """3x3 conv as ONE stacked matmul: 9 rolled copies of the (already style-
    modulated) input are written into a VMEM scratch along the K axis, then a
    single (Cout, 9*Cin) @ (9*Cin, HWp) dot runs on the MXU."""
    for t, (di, dj) in enumerate(TAPS):
        sh = di * wp + dj
        xt = x_mod_bf16 if sh == 0 else pltpu.roll(x_mod_bf16, shift=(-sh) % hwp, axis=1)
        xall_ref[t * cin:(t + 1) * cin, :] = xt
    return jnp.dot(w_ref[...], xall_ref[0:9 * cin, :],
                   preferred_element_type=jnp.float32)


def _mapping_mlp_kernel(z_ref, w_ref, b_ref, o_ref):
    """PixelNorm + all 8 EqualLinear(fused-lrelu) mapping layers in one kernel.
    Weights are bf16 and stay resident in VMEM; activations never touch HBM
    between layers."""
    x = z_ref[...].astype(jnp.float32)
    x = x * jax.lax.rsqrt(jnp.mean(x * x, axis=1, keepdims=True) + 1e-8)   # PixelNorm
    for l in range(w_ref.shape[0]):                                        # unrolled
        h = jnp.dot(x.astype(jnp.bfloat16), w_ref[l],
                    preferred_element_type=jnp.float32) + b_ref[l]
        x = jnp.where(h >= 0.0, h, LRELU_SLOPE * h) * ACT_GAIN
    o_ref[...] = x


def _init_block_kernel(*refs, C, Wp, HWp, has_noise):
    """conv1 (3x3 modulated, demod, noise, bias, fused-lrelu) + to_rgb1 fused."""
    it = iter(refs)
    cst_ref = next(it)        # (C, HWp)  f32  const input in halo layout
    lat_ref = next(it)        # (1, S, N_LATENT) f32
    modw_ref = next(it)       # (2C, S)   f32  [conv1 mod ; rgb1 mod] pre-scaled
    modb_ref = next(it)       # (2C, 1)
    w1_ref = next(it)         # (C, 9C)   bf16 stacked pre-scaled conv weight
    wsq_ref = next(it)        # (C, C)    f32  sum_k (scale*w)^2
    b1_ref = next(it)         # (C, 1)
    n1_ref = next(it) if has_noise else None   # (1, HWp) pre-scaled noise
    wrgb_ref = next(it)       # (3, C)    bf16
    brgb_ref = next(it)       # (3, 1)
    mask_ref = next(it)       # (1, HWp)  interior mask
    feat_ref = next(it)       # out (1, C, HWp) bf16
    skip_ref = next(it)       # out (1, 3, HWp) f32
    xall_ref = next(it)       # scratch (9C, HWp) bf16

    # styles for conv1 / to_rgb1 in one stacked matmul (latents as lane columns)
    lat2 = lat_ref[0][:, 0:2]                                        # (S, 2)
    s_cols = jnp.dot(modw_ref[...], lat2,
                     preferred_element_type=jnp.float32) + modb_ref[...]
    s1 = s_cols[0:C, 0:1]                                            # (C, 1)
    srgb = s_cols[C:2 * C, 1:2]                                      # (C, 1)

    # modulate input channels, one stacked 3x3 matmul, demodulate output rows
    x1 = (cst_ref[...] * s1).astype(jnp.bfloat16)
    acc = _mod_conv3x3(x1, w1_ref, xall_ref, C, Wp, HWp)             # (C, HWp) f32
    d = jax.lax.rsqrt(jnp.dot(wsq_ref[...], s1 * s1,
                              preferred_element_type=jnp.float32) + 1e-8)
    y = acc * d
    if has_noise:
        y = y + n1_ref[...]
    y = y + b1_ref[...]
    y = jnp.where(y >= 0.0, y, LRELU_SLOPE * y) * ACT_GAIN           # FusedLeakyReLU
    y = y * mask_ref[...]                                            # keep halo zero
    feat_ref[0] = y.astype(jnp.bfloat16)

    # to_rgb1: modulated 1x1 conv, no demod, + bias (rides resident activation)
    xr = (y * srgb).astype(jnp.bfloat16)
    skip_ref[0] = jnp.dot(wrgb_ref[...], xr,
                          preferred_element_type=jnp.float32) + brgb_ref[...]


def _up_block_kernel(*refs, Cin, Cout, Wp, HWp, lat_col, has_n1, has_n2):
    """One full resolution block of the synthesis network:
       nearest-2x upsample (U matmul) -> conv_up -> conv -> to_rgb,
       with noise/bias/fused-lrelu and skip upsample + add all fused."""
    it = iter(refs)
    x_ref = next(it)          # (1, Cin, HWp_lo) bf16   previous block features
    sk_ref = next(it)         # (1, 3, HWp_lo)   f32    previous RGB skip
    lat_ref = next(it)        # (1, S, N_LATENT) f32
    u16_ref = next(it)        # (HWp_lo, HWp)    bf16   0/1 nearest-2x operator
    u32_ref = next(it)        # (HWp_lo, HWp)    f32
    modw_ref = next(it)       # (Cin+2*Cout, S)  f32    stacked modulation weights
    modb_ref = next(it)       # (Cin+2*Cout, 1)
    w1_ref = next(it)         # (Cout, 9*Cin)    bf16
    wsq1_ref = next(it)       # (Cout, Cin)      f32
    b1_ref = next(it)         # (Cout, 1)
    n1_ref = next(it) if has_n1 else None       # (1, HWp)
    w2_ref = next(it)         # (Cout, 9*Cout)   bf16
    wsq2_ref = next(it)       # (Cout, Cout)
    b2_ref = next(it)         # (Cout, 1)
    n2_ref = next(it) if has_n2 else None       # (1, HWp)
    wrgb_ref = next(it)       # (3, Cout)        bf16
    brgb_ref = next(it)       # (3, 1)
    mask_ref = next(it)       # (1, HWp)
    feat_out = next(it)       # out (1, Cout, HWp) bf16
    skip_out = next(it)       # out (1, 3, HWp)    f32
    xall_ref = next(it)       # scratch (9*max(Cin,Cout), HWp) bf16

    # ---- styles for conv_up / conv / to_rgb in one stacked matmul ----------
    lat3 = lat_ref[0][:, lat_col:lat_col + 3]                        # (S, 3)
    s_cols = jnp.dot(modw_ref[...], lat3,
                     preferred_element_type=jnp.float32) + modb_ref[...]
    s1 = s_cols[0:Cin, 0:1]                                          # (Cin, 1)
    s2 = s_cols[Cin:Cin + Cout, 1:2]                                 # (Cout, 1)
    sr = s_cols[Cin + Cout:Cin + 2 * Cout, 2:3]                      # (Cout, 1)

    # ---- in-kernel nearest-2x upsample of the features (MXU, no HBM trip) --
    x_hi = jnp.dot(x_ref[0], u16_ref[...], preferred_element_type=jnp.float32)

    # ---- conv_up: modulate input, stacked 3x3 matmul, demodulate output ----
    x1 = (x_hi * s1).astype(jnp.bfloat16)
    acc1 = _mod_conv3x3(x1, w1_ref, xall_ref, Cin, Wp, HWp)
    d1 = jax.lax.rsqrt(jnp.dot(wsq1_ref[...], s1 * s1,
                               preferred_element_type=jnp.float32) + 1e-8)
    y1 = acc1 * d1
    if has_n1:
        y1 = y1 + n1_ref[...]
    y1 = y1 + b1_ref[...]
    y1 = jnp.where(y1 >= 0.0, y1, LRELU_SLOPE * y1) * ACT_GAIN
    y1 = y1 * mask_ref[...]

    # ---- second StyledConv ---------------------------------------------------
    x2 = (y1 * s2).astype(jnp.bfloat16)
    acc2 = _mod_conv3x3(x2, w2_ref, xall_ref, Cout, Wp, HWp)
    d2 = jax.lax.rsqrt(jnp.dot(wsq2_ref[...], s2 * s2,
                               preferred_element_type=jnp.float32) + 1e-8)
    y2 = acc2 * d2
    if has_n2:
        y2 = y2 + n2_ref[...]
    y2 = y2 + b2_ref[...]
    y2 = jnp.where(y2 >= 0.0, y2, LRELU_SLOPE * y2) * ACT_GAIN
    y2 = y2 * mask_ref[...]
    feat_out[0] = y2.astype(jnp.bfloat16)

    # ---- to_rgb (modulated 1x1, no demod) + fused skip upsample / add ------
    xr = (y2 * sr).astype(jnp.bfloat16)
    rgb = jnp.dot(wrgb_ref[...], xr, preferred_element_type=jnp.float32) + brgb_ref[...]
    skip_up = jnp.dot(sk_ref[0], u32_ref[...], preferred_element_type=jnp.float32)
    skip_out[0] = rgb + skip_up


def _postprocess_kernel(img_ref, o_ref):
    # Global min/max over the whole crop (batch + channels), matching
    # torch's img.min()/img.max().  Keep exact f32 division (no approx recip).
    x = img_ref[...]
    mn = jnp.min(x)
    mx = jnp.max(x)
    o_ref[...] = 2.0 * (x - mn) / (mx - mn) - 1.0


# ----------------------------- kernel wrappers --------------------------------
def mapping_network(params, z):
    return pl.pallas_call(
        _mapping_mlp_kernel,
        out_shape=jax.ShapeDtypeStruct(z.shape, jnp.float32),
    )(z, params["mlp_w"], params["mlp_b"])


def mean_latent(params, n, key):
    z = jax.random.normal(key, (n, STYLE_DIM), dtype=jnp.float32)
    return jnp.mean(mapping_network(params, z), axis=0, keepdims=True)


def run_init_block(p, lat_t):
    B = lat_t.shape[0]
    C = CHANNELS[4]
    Wp, HWp = _halo_sizes(4)
    has_noise = p["noise1"] is not None

    inputs = [p["const"], lat_t, p["mod_w_cat"], p["mod_b_cat"],
              p["w1"], p["wsq1"], p["b1"]]
    in_specs = [
        pl.BlockSpec((C, HWp), lambda b: (0, 0)),
        pl.BlockSpec((1, STYLE_DIM, N_LATENT), lambda b: (b, 0, 0)),
        pl.BlockSpec((2 * C, STYLE_DIM), lambda b: (0, 0)),
        pl.BlockSpec((2 * C, 1), lambda b: (0, 0)),
        pl.BlockSpec((C, 9 * C), lambda b: (0, 0)),
        pl.BlockSpec((C, C), lambda b: (0, 0)),
        pl.BlockSpec((C, 1), lambda b: (0, 0)),
    ]
    if has_noise:
        inputs.append(p["noise1"])
        in_specs.append(pl.BlockSpec((1, HWp), lambda b: (0, 0)))
    inputs += [p["w_rgb"], p["b_rgb"], p["mask"]]
    in_specs += [
        pl.BlockSpec((3, C), lambda b: (0, 0)),
        pl.BlockSpec((3, 1), lambda b: (0, 0)),
        pl.BlockSpec((1, HWp), lambda b: (0, 0)),
    ]
    out_shape = (jax.ShapeDtypeStruct((B, C, HWp), jnp.bfloat16),
                 jax.ShapeDtypeStruct((B, 3, HWp), jnp.float32))
    out_specs = (pl.BlockSpec((1, C, HWp), lambda b: (b, 0, 0)),
                 pl.BlockSpec((1, 3, HWp), lambda b: (b, 0, 0)))
    return pl.pallas_call(
        partial(_init_block_kernel, C=C, Wp=Wp, HWp=HWp, has_noise=has_noise),
        grid=(B,), in_specs=in_specs, out_specs=out_specs, out_shape=out_shape,
        scratch_shapes=[pltpu.VMEM((9 * C, HWp), jnp.bfloat16)],
        compiler_params=pltpu.CompilerParams(dimension_semantics=("parallel",)),
    )(*inputs)


def run_up_block(blk, feat, skip, lat_t, lat_col):
    B = lat_t.shape[0]
    Cin, Cout, res = blk["cin"], blk["cout"], blk["res"]
    Wp, HWp = _halo_sizes(res)
    _, HWp_lo = _halo_sizes(res // 2)
    has_n1 = blk["noise1"] is not None
    has_n2 = blk["noise2"] is not None
    Ctot = Cin + 2 * Cout

    inputs = [feat, skip, lat_t, blk["u16"], blk["u32"],
              blk["mod_w_cat"], blk["mod_b_cat"],
              blk["w1"], blk["wsq1"], blk["b1"]]
    in_specs = [
        pl.BlockSpec((1, Cin, HWp_lo), lambda b: (b, 0, 0)),
        pl.BlockSpec((1, 3, HWp_lo), lambda b: (b, 0, 0)),
        pl.BlockSpec((1, STYLE_DIM, N_LATENT), lambda b: (b, 0, 0)),
        pl.BlockSpec((HWp_lo, HWp), lambda b: (0, 0)),
        pl.BlockSpec((HWp_lo, HWp), lambda b: (0, 0)),
        pl.BlockSpec((Ctot, STYLE_DIM), lambda b: (0, 0)),
        pl.BlockSpec((Ctot, 1), lambda b: (0, 0)),
        pl.BlockSpec((Cout, 9 * Cin), lambda b: (0, 0)),
        pl.BlockSpec((Cout, Cin), lambda b: (0, 0)),
        pl.BlockSpec((Cout, 1), lambda b: (0, 0)),
    ]
    if has_n1:
        inputs.append(blk["noise1"])
        in_specs.append(pl.BlockSpec((1, HWp), lambda b: (0, 0)))
    inputs += [blk["w2"], blk["wsq2"], blk["b2"]]
    in_specs += [pl.BlockSpec((Cout, 9 * Cout), lambda b: (0, 0)),
                 pl.BlockSpec((Cout, Cout), lambda b: (0, 0)),
                 pl.BlockSpec((Cout, 1), lambda b: (0, 0))]
    if has_n2:
        inputs.append(blk["noise2"])
        in_specs.append(pl.BlockSpec((1, HWp), lambda b: (0, 0)))
    inputs += [blk["w_rgb"], blk["b_rgb"], blk["mask"]]
    in_specs += [pl.BlockSpec((3, Cout), lambda b: (0, 0)),
                 pl.BlockSpec((3, 1), lambda b: (0, 0)),
                 pl.BlockSpec((1, HWp), lambda b: (0, 0))]

    out_shape = (jax.ShapeDtypeStruct((B, Cout, HWp), jnp.bfloat16),
                 jax.ShapeDtypeStruct((B, 3, HWp), jnp.float32))
    out_specs = (pl.BlockSpec((1, Cout, HWp), lambda b: (b, 0, 0)),
                 pl.BlockSpec((1, 3, HWp), lambda b: (b, 0, 0)))
    return pl.pallas_call(
        partial(_up_block_kernel, Cin=Cin, Cout=Cout, Wp=Wp, HWp=HWp,
                lat_col=lat_col, has_n1=has_n1, has_n2=has_n2),
        grid=(B,), in_specs=in_specs, out_specs=out_specs, out_shape=out_shape,
        scratch_shapes=[pltpu.VMEM((9 * max(Cin, Cout), HWp), jnp.bfloat16)],
        compiler_params=pltpu.CompilerParams(dimension_semantics=("parallel",)),
    )(*inputs)


# ----------------------------- generator params -------------------------------
def init_generator_params(key):
    ks = iter(jax.random.split(key, 256))

    def nrm(shape):
        return jax.random.normal(next(ks), shape, dtype=jnp.float32)

    def halo_flat(img2d, res):
        wp, hwp = _halo_sizes(res)
        buf = jnp.zeros((wp, wp), jnp.float32).at[1:res + 1, 1:res + 1].set(img2d)
        flat = buf.reshape(1, wp * wp)
        return jnp.pad(flat, ((0, 0), (0, hwp - wp * wp)))

    def interior_mask(res):
        return halo_flat(jnp.ones((res, res), jnp.float32), res)

    def upsample_mat(res_lo, res_hi):
        wl, hwpl = _halo_sizes(res_lo)
        wh, hwph = _halo_sizes(res_hi)
        u = np.zeros((hwpl, hwph), np.float32)
        for h in range(res_hi):
            for w in range(res_hi):
                u[(h // 2 + 1) * wl + (w // 2 + 1), (h + 1) * wh + (w + 1)] = 1.0
        return jnp.asarray(u)

    def mk_mod(cin):
        # modulation EqualLinear(S -> cin, bias_init=1); 1/sqrt(S) pre-baked,
        # stored as (cin, S) so s comes out of the kernel matmul as a COLUMN.
        return (nrm((cin, STYLE_DIM)) * (1.0 / math.sqrt(STYLE_DIM)),
                jnp.ones((cin, 1), jnp.float32))

    def mk_conv3(cin, cout, res, noise_weight):
        k = 3
        w = nrm((cout, cin, k, k)) * (1.0 / math.sqrt(cin * k * k))   # pre-scaled
        w_stacked = w.transpose(0, 2, 3, 1).reshape(cout, k * k * cin)  # [t,cin] cols
        wsq = jnp.sum(w * w, axis=(2, 3))                             # (cout, cin)
        noise = None if noise_weight == 0.0 else halo_flat(noise_weight * nrm((res, res)), res)
        mod_w, mod_b = mk_mod(cin)
        return {"w": w_stacked.astype(jnp.bfloat16), "wsq": wsq,
                "bias": jnp.zeros((cout, 1), jnp.float32), "noise": noise,
                "mod_w": mod_w, "mod_b": mod_b}

    def mk_rgb(cin):
        mod_w, mod_b = mk_mod(cin)
        return {"w": (nrm((3, cin)) * (1.0 / math.sqrt(cin))).astype(jnp.bfloat16),
                "bias": jnp.zeros((3, 1), jnp.float32),
                "mod_w": mod_w, "mod_b": mod_b}

    c4 = CHANNELS[4]
    wp4, hwp4 = _halo_sizes(4)
    cst = jnp.zeros((c4, wp4, wp4), jnp.float32).at[:, 1:5, 1:5].set(nrm((c4, 4, 4)))
    cst = jnp.pad(cst.reshape(c4, wp4 * wp4), ((0, 0), (0, hwp4 - wp4 * wp4)))

    # mapping MLP stored bf16, 1/sqrt(S) scaling + transpose pre-baked.
    mlp_w = jnp.stack([(nrm((STYLE_DIM, STYLE_DIM)) * (1.0 / math.sqrt(STYLE_DIM))).T
                       for _ in range(N_MLP)]).astype(jnp.bfloat16)
    mlp_b = jnp.zeros((N_MLP, 1, STYLE_DIM), jnp.float32)

    conv1 = mk_conv3(c4, c4, 4, 0.0)     # zero noise weight -> noise elided
    rgb1 = mk_rgb(c4)
    init_blk = {
        "const": cst,
        "mod_w_cat": jnp.concatenate([conv1["mod_w"], rgb1["mod_w"]], axis=0),
        "mod_b_cat": jnp.concatenate([conv1["mod_b"], rgb1["mod_b"]], axis=0),
        "w1": conv1["w"], "wsq1": conv1["wsq"], "b1": conv1["bias"],
        "noise1": conv1["noise"],
        "w_rgb": rgb1["w"], "b_rgb": rgb1["bias"], "mask": interior_mask(4),
    }

    blocks = []
    in_ch = c4
    for i in range(3, LOG_SIZE + 1):
        res = 2 ** i
        out_ch = CHANNELS[res]
        cu = mk_conv3(in_ch, out_ch, res, 0.1 * float(nrm(())))
        cv = mk_conv3(out_ch, out_ch, res, 0.1 * float(nrm(())))
        rb = mk_rgb(out_ch)
        u = upsample_mat(res // 2, res)
        blocks.append({
            "res": res, "cin": in_ch, "cout": out_ch,
            "u16": u.astype(jnp.bfloat16), "u32": u,
            "mod_w_cat": jnp.concatenate([cu["mod_w"], cv["mod_w"], rb["mod_w"]], axis=0),
            "mod_b_cat": jnp.concatenate([cu["mod_b"], cv["mod_b"], rb["mod_b"]], axis=0),
            "w1": cu["w"], "wsq1": cu["wsq"], "b1": cu["bias"], "noise1": cu["noise"],
            "w2": cv["w"], "wsq2": cv["wsq"], "b2": cv["bias"], "noise2": cv["noise"],
            "w_rgb": rb["w"], "b_rgb": rb["bias"], "mask": interior_mask(res),
        })
        in_ch = out_ch

    return {"mlp_w": mlp_w, "mlp_b": mlp_b, "init": init_blk, "blocks": blocks}


# ----------------------------- generator forward ------------------------------
def generator_forward(params, styles, *, truncation=1.0, truncation_latent=None):
    """styles: (B, style_dim); input_is_latent=True, randomize_noise=False."""
    if styles.ndim == 2:
        latent = jnp.repeat(styles[:, None, :], N_LATENT, axis=1)
    else:
        latent = styles
    if truncation < 1.0 and truncation_latent is not None:
        latent = truncation_latent + truncation * (latent - truncation_latent)

    lat_t = jnp.swapaxes(latent, 1, 2)              # (B, S, N_LATENT): layers on lanes

    feat, skip = run_init_block(params["init"], lat_t)
    lat_col = 1
    for blk in params["blocks"]:
        feat, skip = run_up_block(blk, feat, skip, lat_t, lat_col)
        lat_col += 2

    # halo layout -> NCHW (interior pixels only)
    wp, _ = _halo_sizes(RES)
    B = skip.shape[0]
    img = skip[:, :, :wp * wp].reshape(B, 3, wp, wp)[:, :, 1:RES + 1, 1:RES + 1]
    return img, latent


def postprocess_image(img, crop_size, v_offset=10):
    B, C, cy, cx = img.shape
    assert img.ndim == 4 and C == 3, "img must be a Bx3xHxW array"
    assert cy >= crop_size and cx >= crop_size, \
        "crop size must be smaller than the given image"
    cy = cy // 2 + v_offset
    cx = cx // 2
    w = crop_size // 2
    crop = img[:, :, cy - w:cy + w, cx - w:cx + w]
    flat = crop.reshape(1, -1).astype(jnp.float32)            # lane-dense single row
    normed = pl.pallas_call(
        _postprocess_kernel,
        out_shape=jax.ShapeDtypeStruct(flat.shape, jnp.float32),
    )(flat)
    return normed.reshape(crop.shape)


def _wrapper_forward(params, latent, truncation, truncation_latent, crop_size):
    img, ltn = generator_forward(params, latent, truncation=truncation,
                                 truncation_latent=truncation_latent)
    return postprocess_image(img, crop_size), ltn


# ----------------------------- wrapper module ---------------------------------
class StyleGANWrapper:
    """JAX/Pallas port of the PyTorch StyleGANWrapper (synthetic weights)."""

    def __init__(self, key, truncation=TRUNCATION, crop_size=CROP_SIZE):
        self.truncation = truncation
        self.crop_size = crop_size
        self.params = init_generator_params(key)
        # get_avg_latent(): mean_latent over many z, repeated to n_latent styles.
        avg = mean_latent(self.params, 256, jax.random.fold_in(key, 999))
        self.avg_latent = jnp.repeat(avg[:, None, :], N_LATENT, axis=1)
        params, trunc, crop = self.params, self.truncation, self.crop_size
        # jit the whole forward (+postprocess) to kill per-call dispatch overhead
        self._run_plain = jax.jit(
            lambda lat: _wrapper_forward(params, lat, 1.0, None, crop))
        self._run_trunc = jax.jit(
            lambda lat, tl: _wrapper_forward(params, lat, trunc, tl, crop))

    def postprocess(self, img, v_offset=10):
        return postprocess_image(img, self.crop_size, v_offset)

    def forward(self, latent, truncation_latent=None, return_latents=False):
        if truncation_latent is None:
            img, ltn = self._run_plain(latent)
        else:
            img, ltn = self._run_trunc(latent, truncation_latent)
        if return_latents:
            return img, ltn
        return img

    __call__ = forward


# ----------------------------- main --------------------------------------------
if __name__ == "__main__":
    key = jax.random.PRNGKey(0)
    wrapper = StyleGANWrapper(key)

    latent = jax.random.normal(jax.random.fold_in(key, 1), (2, STYLE_DIM),
                               dtype=jnp.float32)

    # default path (truncation_latent=None -> truncation = 1.0)
    img = wrapper.forward(latent)
    img = jax.block_until_ready(img)
    assert img.shape == (2, 3, CROP_SIZE, CROP_SIZE)
    assert bool(jnp.isfinite(img).all())
    assert abs(float(img.max()) - 1.0) < 1e-5 and abs(float(img.min()) + 1.0) < 1e-5

    # truncated path with return_latents, exercising avg_latent
    img2, ltn = wrapper.forward(latent, truncation_latent=wrapper.avg_latent,
                                return_latents=True)
    jax.block_until_ready((img2, ltn))
    assert ltn.shape == (2, N_LATENT, STYLE_DIM)
    assert bool(jnp.isfinite(img2).all())

    print("KERNEL_OK")
</pallas_src>

<mosaic_0001>
module attributes {stable_mosaic.version = 11 : i64} {
  func.func @_mapping_mlp_kernel(%arg0: memref<256x32xf32, #tpu.memory_space<vmem>>, %arg1: memref<8x32x32xbf16, #tpu.memory_space<vmem>>, %arg2: memref<8x1x32xf32, #tpu.memory_space<vmem>>, %arg3: memref<256x32xf32, #tpu.memory_space<vmem>>) attributes {dimension_semantics = [], scalar_prefetch = 0 : i64, scratch_operands = 0 : i64, tpu.core_type = #tpu.core_type<tc>} {
    %c0 = arith.constant 0 : index
    %c0_0 = arith.constant 0 : index
    %0 = vector.load %arg0[%c0, %c0_0] : memref<256x32xf32, #tpu.memory_space<vmem>>, vector<256x32xf32>
    %1 = arith.mulf %0, %0 : vector<256x32xf32>
    %cst = arith.constant dense<0.000000e+00> : vector<256xf32>
    %2 = vector.multi_reduction <add>, %1, %cst [1] : vector<256x32xf32> to vector<256xf32>
    %3 = vector.shape_cast %2 : vector<256xf32> to vector<256x1xf32>
    %cst_1 = arith.constant 3.200000e+01 : f32
    %4 = vector.broadcast %cst_1 : f32 to vector<256x1xf32>
    %5 = arith.divf %3, %4 : vector<256x1xf32>
    %cst_2 = arith.constant 9.99999993E-9 : f32
    %6 = vector.broadcast %cst_2 : f32 to vector<256x1xf32>
    %7 = arith.addf %5, %6 : vector<256x1xf32>
    %8 = math.rsqrt %7 : vector<256x1xf32>
    %9 = vector.broadcast %8 : vector<256x1xf32> to vector<256x32xf32>
    %10 = arith.mulf %0, %9 : vector<256x32xf32>
    %11 = arith.truncf %10 : vector<256x32xf32> to vector<256x32xbf16>
    %c0_3 = arith.constant 0 : index
    %c0_4 = arith.constant 0 : index
    %c0_5 = arith.constant 0 : index
    %12 = vector.load %arg1[%c0_3, %c0_4, %c0_5] : memref<8x32x32xbf16, #tpu.memory_space<vmem>>, vector<1x32x32xbf16>
    %13 = vector.shape_cast %12 : vector<1x32x32xbf16> to vector<32x32xbf16>
    %cst_6 = arith.constant dense<0.000000e+00> : vector<256x32xf32>
    %14 = tpu.matmul %11, %13, %cst_6 {dimension_numbers = #tpu.dot_dimension_numbers<[1], [0], [0], [1], [0, 0, 1, 1], [], []>} : vector<256x32xbf16>, vector<32x32xbf16>, vector<256x32xf32> -> vector<256x32xf32>
    %c0_7 = arith.constant 0 : index
    %c0_8 = arith.constant 0 : index
    %c0_9 = arith.constant 0 : index
    %15 = vector.load %arg2[%c0_7, %c0_8, %c0_9] : memref<8x1x32xf32, #tpu.memory_space<vmem>>, vector<1x1x32xf32>
    %16 = vector.shape_cast %15 : vector<1x1x32xf32> to vector<1x32xf32>
    %17 = vector.broadcast %16 : vector<1x32xf32> to vector<256x32xf32>
    %18 = arith.addf %14, %17 : vector<256x32xf32>
    %cst_10 = arith.constant 0.000000e+00 : f32
    %19 = vector.broadcast %cst_10 : f32 to vector<256x32xf32>
    %20 = arith.cmpf oge, %18, %19 : vector<256x32xf32>
    %cst_11 = arith.constant 2.000000e-01 : f32
    %21 = vector.broadcast %cst_11 : f32 to vector<256x32xf32>
    %22 = arith.mulf %21, %18 : vector<256x32xf32>
    %23 = arith.select %20, %18, %22 : vector<256x32xi1>, vector<256x32xf32>
    %cst_12 = arith.constant 1.41421354 : f32
    %24 = vector.broadcast %cst_12 : f32 to vector<256x32xf32>
    %25 = arith.mulf %23, %24 : vector<256x32xf32>
    %26 = arith.truncf %25 : vector<256x32xf32> to vector<256x32xbf16>
    %c1 = arith.constant 1 : index
    %c0_13 = arith.constant 0 : index
    %c0_14 = arith.constant 0 : index
    %27 = vector.load %arg1[%c1, %c0_13, %c0_14] : memref<8x32x32xbf16, #tpu.memory_space<vmem>>, vector<1x32x32xbf16>
    %28 = vector.shape_cast %27 : vector<1x32x32xbf16> to vector<32x32xbf16>
    %cst_15 = arith.constant dense<0.000000e+00> : vector<256x32xf32>
    %29 = tpu.matmul %26, %28, %cst_15 {dimension_numbers = #tpu.dot_dimension_numbers<[1], [0], [0], [1], [0, 0, 1, 1], [], []>} : vector<256x32xbf16>, vector<32x32xbf16>, vector<256x32xf32> -> vector<256x32xf32>
    %c1_16 = arith.constant 1 : index
    %c0_17 = arith.constant 0 : index
    %c0_18 = arith.constant 0 : index
    %30 = vector.load %arg2[%c1_16, %c0_17, %c0_18] : memref<8x1x32xf32, #tpu.memory_space<vmem>>, vector<1x1x32xf32>
    %31 = vector.shape_cast %30 : vector<1x1x32xf32> to vector<1x32xf32>
    %32 = vector.broadcast %31 : vector<1x32xf32> to vector<256x32xf32>
    %33 = arith.addf %29, %32 : vector<256x32xf32>
    %cst_19 = arith.constant 0.000000e+00 : f32
    %34 = vector.broadcast %cst_19 : f32 to vector<256x32xf32>
    %35 = arith.cmpf oge, %33, %34 : vector<256x32xf32>
    %cst_20 = arith.constant 2.000000e-01 : f32
    %36 = vector.broadcast %cst_20 : f32 to vector<256x32xf32>
    %37 = arith.mulf %36, %33 : vector<256x32xf32>
    %38 = arith.select %35, %33, %37 : vector<256x32xi1>, vector<256x32xf32>
    %cst_21 = arith.constant 1.41421354 : f32
    %39 = vector.broadcast %cst_21 : f32 to vector<256x32xf32>
    %40 = arith.mulf %38, %39 : vector<256x32xf32>
    %41 = arith.truncf %40 : vector<256x32xf32> to vector<256x32xbf16>
    %c2 = arith.constant 2 : index
    %c0_22 = arith.constant 0 : index
    %c0_23 = arith.constant 0 : index
    %42 = vector.load %arg1[%c2, %c0_22, %c0_23] : memref<8x32x32xbf16, #tpu.memory_space<vmem>>, vector<1x32x32xbf16>
    %43 = vector.shape_cast %42 : vector<1x32x32xbf16> to vector<32x32xbf16>
    %cst_24 = arith.constant dense<0.000000e+00> : vector<256x32xf32>
    %44 = tpu.matmul %41, %43, %cst_24 {dimension_numbers = #tpu.dot_dimension_numbers<[1], [0], [0], [1], [0, 0, 1, 1], [], []>} : vector<256x32xbf16>, vector<32x32xbf16>, vector<256x32xf32> -> vector<256x32xf32>
    %c2_25 = arith.constant 2 : index
    %c0_26 = arith.constant 0 : index
    %c0_27 = arith.constant 0 : index
    %45 = vector.load %arg2[%c2_25, %c0_26, %c0_27] : memref<8x1x32xf32, #tpu.memory_space<vmem>>, vector<1x1x32xf32>
    %46 = vector.shape_cast %45 : vector<1x1x32xf32> to vector<1x32xf32>
    %47 = vector.broadcast %46 : vector<1x32xf32> to vector<256x32xf32>
    %48 = arith.addf %44, %47 : vector<256x32xf32>
    %cst_28 = arith.constant 0.000000e+00 : f32
    %49 = vector.broadcast %cst_28 : f32 to vector<256x32xf32>
    %50 = arith.cmpf oge, %48, %49 : vector<256x32xf32>
    %cst_29 = arith.constant 2.000000e-01 : f32
    %51 = vector.broadcast %cst_29 : f32 to vector<256x32xf32>
    %52 = arith.mulf %51, %48 : vector<256x32xf32>
    %53 = arith.select %50, %48, %52 : vector<256x32xi1>, vector<256x32xf32>
    %cst_30 = arith.constant 1.41421354 : f32
    %54 = vector.broadcast %cst_30 : f32 to vector<256x32xf32>
    %55 = arith.mulf %53, %54 : vector<256x32xf32>
    %56 = arith.truncf %55 : vector<256x32xf32> to vector<256x32xbf16>
    %c3 = arith.constant 3 : index
    %c0_31 = arith.constant 0 : index
    %c0_32 = arith.constant 0 : index
    %57 = vector.load %arg1[%c3, %c0_31, %c0_32] : memref<8x32x32xbf16, #tpu.memory_space<vmem>>, vector<1x32x32xbf16>
    %58 = vector.shape_cast %57 : vector<1x32x32xbf16> to vector<32x32xbf16>
    %cst_33 = arith.constant dense<0.000000e+00> : vector<256x32xf32>
    %59 = tpu.matmul %56, %58, %cst_33 {dimension_numbers = #tpu.dot_dimension_numbers<[1], [0], [0], [1], [0, 0, 1, 1], [], []>} : vector<256x32xbf16>, vector<32x32xbf16>, vector<256x32xf32> -> vector<256x32xf32>
    %c3_34 = arith.constant 3 : index
    %c0_35 = arith.constant 0 : index
    %c0_36 = arith.constant 0 : index
    %60 = vector.load %arg2[%c3_34, %c0_35, %c0_36] : memref<8x1x32xf32, #tpu.memory_space<vmem>>, vector<1x1x32xf32>
    %61 = vector.shape_cast %60 : vector<1x1x32xf32> to vector<1x32xf32>
    %62 = vector.broadcast %61 : vector<1x32xf32> to vector<256x32xf32>
    %63 = arith.addf %59, %62 : vector<256x32xf32>
    %cst_37 = arith.constant 0.000000e+00 : f32
    %64 = vector.broadcast %cst_37 : f32 to vector<256x32xf32>
    %65 = arith.cmpf oge, %63, %64 : vector<256x32xf32>
    %cst_38 = arith.constant 2.000000e-01 : f32
    %66 = vector.broadcast %cst_38 : f32 to vector<256x32xf32>
    %67 = arith.mulf %66, %63 : vector<256x32xf32>
    %68 = arith.select %65, %63, %67 : vector<256x32xi1>, vector<256x32xf32>
    %cst_39 = arith.constant 1.41421354 : f32
    %69 = vector.broadcast %cst_39 : f32 to vector<256x32xf32>
    %70 = arith.mulf %68, %69 : vector<256x32xf32>
    %71 = arith.truncf %70 : vector<256x32xf32> to vector<256x32xbf16>
    %c4 = arith.constant 4 : index
    %c0_40 = arith.constant 0 : index
    %c0_41 = arith.constant 0 : index
    %72 = vector.load %arg1[%c4, %c0_40, %c0_41] : memref<8x32x32xbf16, #tpu.memory_space<vmem>>, vector<1x32x32xbf16>
    %73 = vector.shape_cast %72 : vector<1x32x32xbf16> to vector<32x32xbf16>
    %cst_42 = arith.constant dense<0.000000e+00> : vector<256x32xf32>
    %74 = tpu.matmul %71, %73, %cst_42 {dimension_numbers = #tpu.dot_dimension_numbers<[1], [0], [0], [1], [0, 0, 1, 1], [], []>} : vector<256x32xbf16>, vector<32x32xbf16>, vector<256x32xf32> -> vector<256x32xf32>
    %c4_43 = arith.constant 4 : index
    %c0_44 = arith.constant 0 : index
    %c0_45 = arith.constant 0 : index
    %75 = vector.load %arg2[%c4_43, %c0_44, %c0_45] : memref<8x1x32xf32, #tpu.memory_space<vmem>>, vector<1x1x32xf32>
    %76 = vector.shape_cast %75 : vector<1x1x32xf32> to vector<1x32xf32>
    %77 = vector.broadcast %76 : vector<1x32xf32> to vector<256x32xf32>
    %78 = arith.addf %74, %77 : vector<256x32xf32>
    %cst_46 = arith.constant 0.000000e+00 : f32
    %79 = vector.broadcast %cst_46 : f32 to vector<256x32xf32>
    %80 = arith.cmpf oge, %78, %79 : vector<256x32xf32>
    %cst_47 = arith.constant 2.000000e-01 : f32
    %81 = vector.broadcast %cst_47 : f32 to vector<256x32xf32>
    %82 = arith.mulf %81, %78 : vector<256x32xf32>
    %83 = arith.select %80, %78, %82 : vector<256x32xi1>, vector<256x32xf32>
    %cst_48 = arith.constant 1.41421354 : f32
    %84 = vector.broadcast %cst_48 : f32 to vector<256x32xf32>
    %85 = arith.mulf %83, %84 : vector<256x32xf32>
    %86 = arith.truncf %85 : vector<256x32xf32> to vector<256x32xbf16>
    %c5 = arith.constant 5 : index
    %c0_49 = arith.constant 0 : index
    %c0_50 = arith.constant 0 : index
    %87 = vector.load %arg1[%c5, %c0_49, %c0_50] : memref<8x32x32xbf16, #tpu.memory_space<vmem>>, vector<1x32x32xbf16>
    %88 = vector.shape_cast %87 : vector<1x32x32xbf16> to vector<32x32xbf16>
    %cst_51 = arith.constant dense<0.000000e+00> : vector<256x32xf32>
    %89 = tpu.matmul %86, %88, %cst_51 {dimension_numbers = #tpu.dot_dimension_numbers<[1], [0], [0], [1], [0, 0, 1, 1], [], []>} : vector<256x32xbf16>, vector<32x32xbf16>, vector<256x32xf32> -> vector<256x32xf32>
    %c5_52 = arith.constant 5 : index
    %c0_53 = arith.constant 0 : index
    %c0_54 = arith.constant 0 : index
    %90 = vector.load %arg2[%c5_52, %c0_53, %c0_54] : memref<8x1x32xf32, #tpu.memory_space<vmem>>, vector<1x1x32xf32>
    %91 = vector.shape_cast %90 : vector<1x1x32xf32> to vector<1x32xf32>
    %92 = vector.broadcast %91 : vector<1x32xf32> to vector<256x32xf32>
    %93 = arith.addf %89, %92 : vector<256x32xf32>
    %cst_55 = arith.constant 0.000000e+00 : f32
    %94 = vector.broadcast %cst_55 : f32 to vector<256x32xf32>
    %95 = arith.cmpf oge, %93, %94 : vector<256x32xf32>
    %cst_56 = arith.constant 2.000000e-01 : f32
    %96 = vector.broadcast %cst_56 : f32 to vector<256x32xf32>
    %97 = arith.mulf %96, %93 : vector<256x32xf32>
    %98 = arith.select %95, %93, %97 : vector<256x32xi1>, vector<256x32xf32>
    %cst_57 = arith.constant 1.41421354 : f32
    %99 = vector.broadcast %cst_57 : f32 to vector<256x32xf32>
    %100 = arith.mulf %98, %99 : vector<256x32xf32>
    %101 = arith.truncf %100 : vector<256x32xf32> to vector<256x32xbf16>
    %c6 = arith.constant 6 : index
    %c0_58 = arith.constant 0 : index
    %c0_59 = arith.constant 0 : index
    %102 = vector.load %arg1[%c6, %c0_58, %c0_59] : memref<8x32x32xbf16, #tpu.memory_space<vmem>>, vector<1x32x32xbf16>
    %103 = vector.shape_cast %102 : vector<1x32x32xbf16> to vector<32x32xbf16>
    %cst_60 = arith.constant dense<0.000000e+00> : vector<256x32xf32>
    %104 = tpu.matmul %101, %103, %cst_60 {dimension_numbers = #tpu.dot_dimension_numbers<[1], [0], [0], [1], [0, 0, 1, 1], [], []>} : vector<256x32xbf16>, vector<32x32xbf16>, vector<256x32xf32> -> vector<256x32xf32>
    %c6_61 = arith.constant 6 : index
    %c0_62 = arith.constant 0 : index
    %c0_63 = arith.constant 0 : index
    %105 = vector.load %arg2[%c6_61, %c0_62, %c0_63] : memref<8x1x32xf32, #tpu.memory_space<vmem>>, vector<1x1x32xf32>
    %106 = vector.shape_cast %105 : vector<1x1x32xf32> to vector<1x32xf32>
    %107 = vector.broadcast %106 : vector<1x32xf32> to vector<256x32xf32>
    %108 = arith.addf %104, %107 : vector<256x32xf32>
    %cst_64 = arith.constant 0.000000e+00 : f32
    %109 = vector.broadcast %cst_64 : f32 to vector<256x32xf32>
    %110 = arith.cmpf oge, %108, %109 : vector<256x32xf32>
    %cst_65 = arith.constant 2.000000e-01 : f32
    %111 = vector.broadcast %cst_65 : f32 to vector<256x32xf32>
    %112 = arith.mulf %111, %108 : vector<256x32xf32>
    %113 = arith.select %110, %108, %112 : vector<256x32xi1>, vector<256x32xf32>
    %cst_66 = arith.constant 1.41421354 : f32
    %114 = vector.broadcast %cst_66 : f32 to vector<256x32xf32>
    %115 = arith.mulf %113, %114 : vector<256x32xf32>
    %116 = arith.truncf %115 : vector<256x32xf32> to vector<256x32xbf16>
    %c7 = arith.constant 7 : index
    %c0_67 = arith.constant 0 : index
    %c0_68 = arith.constant 0 : index
    %117 = vector.load %arg1[%c7, %c0_67, %c0_68] : memref<8x32x32xbf16, #tpu.memory_space<vmem>>, vector<1x32x32xbf16>
    %118 = vector.shape_cast %117 : vector<1x32x32xbf16> to vector<32x32xbf16>
    %cst_69 = arith.constant dense<0.000000e+00> : vector<256x32xf32>
    %119 = tpu.matmul %116, %118, %cst_69 {dimension_numbers = #tpu.dot_dimension_numbers<[1], [0], [0], [1], [0, 0, 1, 1], [], []>} : vector<256x32xbf16>, vector<32x32xbf16>, vector<256x32xf32> -> vector<256x32xf32>
    %c7_70 = arith.constant 7 : index
    %c0_71 = arith.constant 0 : index
    %c0_72 = arith.constant 0 : index
    %120 = vector.load %arg2[%c7_70, %c0_71, %c0_72] : memref<8x1x32xf32, #tpu.memory_space<vmem>>, vector<1x1x32xf32>
    %121 = vector.shape_cast %120 : vector<1x1x32xf32> to vector<1x32xf32>
    %122 = vector.broadcast %121 : vector<1x32xf32> to vector<256x32xf32>
    %123 = arith.addf %119, %122 : vector<256x32xf32>
    %cst_73 = arith.constant 0.000000e+00 : f32
    %124 = vector.broadcast %cst_73 : f32 to vector<256x32xf32>
    %125 = arith.cmpf oge, %123, %124 : vector<256x32xf32>
    %cst_74 = arith.constant 2.000000e-01 : f32
    %126 = vector.broadcast %cst_74 : f32 to vector<256x32xf32>
    %127 = arith.mulf %126, %123 : vector<256x32xf32>
    %128 = arith.select %125, %123, %127 : vector<256x32xi1>, vector<256x32xf32>
    %cst_75 = arith.constant 1.41421354 : f32
    %129 = vector.broadcast %cst_75 : f32 to vector<256x32xf32>
    %130 = arith.mulf %128, %129 : vector<256x32xf32>
    %c0_76 = arith.constant 0 : index
    %c0_77 = arith.constant 0 : index
    %131 = vector.load %arg3[%c0_76, %c0_77] : memref<256x32xf32, #tpu.memory_space<vmem>>, vector<256x32xf32>
    tpu.vector_store %arg3[%c0_76, %c0_77], %130 {strides = array<i32>} : memref<256x32xf32, #tpu.memory_space<vmem>>, vector<256x32xf32>,
    return
  }
}

</mosaic_0001>

<bundles_post_ra>
// kernel: tpu_custom_call.1
= control target key start
LH: loop header
LB: loop body
LE: loop exit
PB: predicated region body
PF: predicated region fallthrough
CT: control target
= control target key end

     0   :  { %vm79_vm0 = vcmask 261120   ;;  %v3376_v52 = vmov 32.0   ;;  %s4711_s0 = inlined_call_operand.vmem [shape: f32[256,32], index: 0, kind: input, shape index: {}]   ;;  %s4712_s1 = inlined_call_operand.vmem [shape: bf16[8,32,32], index: 1, kind: input, shape index: {}]   ;;  %s4713_s2 = inlined_call_operand.vmem [shape: f32[8,1,32], index: 2, kind: input, shape index: {}]   ;;  %s4714_s3 = inlined_call_operand.vmem [shape: f32[256,32], index: 3, kind: output, shape index: {}]  }
   0x1   :  { %v3400_v0 = vld [vmem:[%s4711_s0 + $0x10] sm:$0xff]  ;;  %v3405_v1 = vld [vmem:[%s4711_s0] sm:$0xff]  ;;  %v3419_v5 = vld [vmem:[%s4711_s0 + $0x18] sm:$0xff]  ;;  %3309 = vrcp.f32 %v3376_v52 }
   0x2   :  { %v49_v2 = vmul.f32 %v3400_v0, %v3400_v0  ;;  %v47_v3 = vmul.f32 %v3405_v1, %v3405_v1  ;;  %v3414_v4 = vld [vmem:[%s4711_s0 + $0x20] sm:$0xff]  ;;  %v3424_v6 = vld [vmem:[%s4711_s0 + $0x8] sm:$0xff]  ;;  %v50_v12 = vmul.f32 %v3419_v5, %v3419_v5  ;;  %v3448_v18 = vld [vmem:[%s4711_s0 + $0x38] sm:$0xff] }
   0x3   :  { %v51_v7 = vmul.f32 %v3414_v4, %v3414_v4  ;;  %v3433_v10 = vld [vmem:[%s4711_s0 + $0x28] sm:$0xff]  ;;  %v48_v13 = vmul.f32 %v3424_v6, %v3424_v6  ;;  %v3453_v19 = vld [vmem:[%s4711_s0 + $0x30] sm:$0xff]  ;;  %v3458_v20 = vld [vmem:[%s4711_s0 + $0x40] sm:$0xff]  ;;  %v54_v21 = vmul.f32 %v3448_v18, %v3448_v18 }
   0x4   :  { %v86_v8 = vsel %vm79_vm0, %v49_v2, 0.0  ;;  %v80_v9 = vsel %vm79_vm0, %v47_v3, 0.0  ;;  %v52_v14 = vmul.f32 %v3433_v10, %v3433_v10  ;;  %v89_v15 = vsel %vm79_vm0, %v50_v12, 0.0  ;;  %v3472_v27 = vld [vmem:[%s4711_s0 + $0x48] sm:$0xff]  ;;  %v3477_v28 = vld [vmem:[%s4711_s0 + $0x50] sm:$0xff]  ;;  %v3482_v29 = vld [vmem:[%s4711_s0 + $0x58] sm:$0xff] }
   0x5   :  { %87 = vadd.xlane.f32.xlu1 %v86_v8  ;;  %81 = vadd.xlane.f32.xlu0 %v80_v9  ;;  %v92_v11 = vsel %vm79_vm0, %v51_v7, 0.0  ;;  %v83_v16 = vsel %vm79_vm0, %v48_v13, 0.0  ;;  %v53_v22 = vmul.f32 %v3453_v19, %v3453_v19  ;;  %v55_v23 = vmul.f32 %v3458_v20, %v3458_v20  ;;  %v3496_v36 = vld [vmem:[%s4711_s0 + $0x68] sm:$0xff]  ;;  %v3501_v37 = vld [vmem:[%s4711_s0 + $0x60] sm:$0xff]  ;;  %v3506_v38 = vld [vmem:[%s4711_s0 + $0x70] sm:$0xff] }
   0x6   :  { %93 = vadd.xlane.f32.xlu2 %v92_v11  ;;  %v95_v17 = vsel %vm79_vm0, %v52_v14, 0.0  ;;  %v101_v24 = vsel %vm79_vm0, %v54_v21, 0.0  ;;  %v56_v30 = vmul.f32 %v3472_v27, %v3472_v27  ;;  %v57_v31 = vmul.f32 %v3477_v28, %v3477_v28  ;;  %v3520_v45 = vld [vmem:[%s4711_s0 + $0x78] sm:$0xff]  ;;  %v3528_v48 = vld [vmem:[%s4711_s0 + $0x88] sm:$0xff]  ;;  %v3533_v49 = vld [vmem:[%s4711_s0 + $0x80] sm:$0xff] }
   0x7   :  { %v98_v25 = vsel %vm79_vm0, %v53_v22, 0.0  ;;  %v104_v26 = vsel %vm79_vm0, %v55_v23, 0.0  ;;  %v58_v32 = vmul.f32 %v3482_v29, %v3482_v29  ;;  %v60_v39 = vmul.f32 %v3496_v36, %v3496_v36  ;;  %v3310_v55 = vpop.eup %3309  ;;  %v3544_v58 = vld [vmem:[%s4711_s0 + $0x98] sm:$0xff]  ;;  %v3549_v59 = vld [vmem:[%s4711_s0 + $0x90] sm:$0xff]  ;;  %v3285_v7 = vld [vmem:[%s4712_s1 + $0x8] sm:$0xff] }
   0x8   :  { %v107_v33 = vsel %vm79_vm0, %v56_v30, 0.0  ;;  %v110_v34 = vsel %vm79_vm0, %v57_v31, 0.0  ;;  %v59_v40 = vmul.f32 %v3501_v37, %v3501_v37  ;;  %v61_v41 = vmul.f32 %v3506_v38, %v3506_v38  ;;  %689 = vmatpush.bf16.msra.mxu0 %v3285_v7  ;;  %v3284_v9 = vld [vmem:[%s4712_s1] sm:$0xff] }
   0x9   :  { %v113_v35 = vsel %vm79_vm0, %v58_v32, 0.0  ;;  %v119_v42 = vsel %vm79_vm0, %v60_v39, 0.0  ;;  %v62_v46 = vmul.f32 %v3520_v45, %v3520_v45  ;;  %v64_v50 = vmul.f32 %v3528_v48, %v3528_v48 }
   0xa   :  { %v116_v43 = vsel %vm79_vm0, %v59_v40, 0.0  ;;  %v122_v44 = vsel %vm79_vm0, %v61_v41, 0.0  ;;  %v63_v51 = vmul.f32 %v3533_v49, %v3533_v49  ;;  %v177_v56 = vmul.f32 32.0, %v3310_v55 }
   0xb   :  { %v125_v47 = vsel %vm79_vm0, %v62_v46, 0.0  ;;  %v131_v53 = vsel %vm79_vm0, %v64_v50, 0.0  ;;  %v66_v60 = vmul.f32 %v3544_v58, %v3544_v58  ;;  %v65_v61 = vmul.f32 %v3549_v59, %v3549_v59 }
   0xc   :  { %v128_v54 = vsel %vm79_vm0, %v63_v51, 0.0  ;;  %v178_v57 = vsub.f32 1.0, %v177_v56  ;;  %vm181_vm1 = vweird.f32 %v3310_v55  ;;  %690 = vmatpush.bf16.msra.mxu0 %v3284_v9 }
   0xd   :  { %90 = vadd.xlane.f32.xlu1 %v89_v15  ;;  %84 = vadd.xlane.f32.xlu0 %v83_v16  ;;  %v137_v63 = vsel %vm79_vm0, %v66_v60, 0.0  ;;  %v134_v2 = vsel %vm79_vm0, %v65_v61, 0.0  ;;  %v3569_v15 = vld [vmem:[%s4711_s0 + $0xa0] sm:$0xff]  ;;  %v3574_v16 = vld [vmem:[%s4711_s0 + $0xa8] sm:$0xff] }
   0xe   :  { %96 = vadd.xlane.f32.xlu2 %v95_v17  ;;  %v179_v62 = vmul.f32 %v3310_v55, %v178_v57  ;;  %v67_v17 = vmul.f32 %v3569_v15, %v3569_v15  ;;  %v68_v21 = vmul.f32 %v3574_v16, %v3574_v16 }
  0x10   :  { %v180_v3 = vadd.f32 %v3310_v55, %v179_v62  ;;  %v140_v22 = vsel %vm79_vm0, %v67_v17, 0.0  ;;  %v143_v23 = vsel %vm79_vm0, %v68_v21, 0.0 }
  0x12   :  { %v3560_v8 = vsel %vm181_vm1, %v3310_v55, %v180_v3  ;;  %v3605_v55 = vld [vmem:[%s4711_s0 + $0xb0] sm:$0xff] }
  0x13   :  { %v69_v3 = vmul.f32 %v3605_v55, %v3605_v55 }
  0x15   :  { %102 = vadd.xlane.f32.xlu1 %v101_v24  ;;  %99 = vadd.xlane.f32.xlu0 %v98_v25 }
  0x16   :  { %105 = vadd.xlane.f32.xlu2 %v104_v26 }
  0x1d   :  { %108 = vadd.xlane.f32.xlu0 %v107_v33  ;;  %111 = vadd.xlane.f32.xlu1 %v110_v34 }
  0x1e   :  { %114 = vadd.xlane.f32.xlu2 %v113_v35 }
  0x25   :  { %120 = vadd.xlane.f32.xlu1 %v119_v42  ;;  %117 = vadd.xlane.f32.xlu0 %v116_v43 }
  0x26   :  { %123 = vadd.xlane.f32.xlu2 %v122_v44 }
  0x2d   :  { %126 = vadd.xlane.f32.xlu0 %v125_v47  ;;  %129 = vadd.xlane.f32.xlu1 %v128_v54 }
  0x2e   :  { %132 = vadd.xlane.f32.xlu2 %v131_v53  ;;  %v3599_v53 = vld [vmem:[%s4711_s0 + $0xb8] sm:$0xff] }
  0x35   :  { %138 = vadd.xlane.f32.xlu1 %v137_v63  ;;  %135 = vadd.xlane.f32.xlu0 %v134_v2  ;;  %v70_v2 = vmul.f32 %v3599_v53, %v3599_v53 }
  0x36   :  { %141 = vadd.xlane.f32.xlu2 %v140_v22 }
  0x3d   :  { %144 = vadd.xlane.f32.xlu0 %v143_v23 }
  0x78   :  { %v88_v11 = vpop.xlane.xlu1 %87  ;;  %v82_v12 = vpop.xlane.xlu0 %81 }
  0x79   :  { %v183_v13 = vmul.f32 %v3560_v8, %v82_v12  ;;  %v185_v24 = vmul.f32 %v3560_v8, %v88_v11  ;;  %v94_v32 = vpop.xlane.xlu2 %93  ;;  %v149_v12 = vsel %vm79_vm0, %v70_v2, 0.0 }
  0x7a   :  { %v187_v47 = vmul.f32 %v3560_v8, %v94_v32  ;;  %150 = vadd.xlane.f32.xlu2 %v149_v12 }
  0x7b   :  { %v215_v14 = vadd.f32 1e-08, %v183_v13  ;;  %v3585_v33 = vadd.f32 1e-08, %v185_v24  ;;  %v146_v13 = vsel %vm79_vm0, %v69_v3, 0.0 }
  0x7c   :  { %v3611_v61 = vadd.f32 1e-08, %v187_v47  ;;  %147 = vadd.xlane.f32.xlu1 %v146_v13 }
  0x7d   :  { %3311 = vrsqrt.f32 %v215_v14  ;;  %vm253_vm3 = vweird.f32 %v215_v14  ;;  %vm273_vm10 = vweird.f32 %v3585_v33 }
  0x7e   :  { %vm293_vm14 = vweird.f32 %v3611_v61 }
  0x80   :  { %v91_v25 = vpop.xlane.xlu1 %90  ;;  %v85_v26 = vpop.xlane.xlu0 %84 }
  0x81   :  { %v186_v30 = vmul.f32 %v3560_v8, %v91_v25  ;;  %v184_v31 = vmul.f32 %v3560_v8, %v85_v26  ;;  %v97_v44 = vpop.xlane.xlu2 %96 }
  0x82   :  { %v188_v54 = vmul.f32 %v3560_v8, %v97_v44 }
  0x83   :  { %v3587_v34 = vadd.f32 1e-08, %v186_v30  ;;  %v216_v35 = vadd.f32 1e-08, %v184_v31  ;;  %v3312_v39 = vpop.eup %3311 }
  0x84   :  { %v248_v40 = vmul.f32 %v3312_v39, %v215_v14  ;;  %vm254_vm2 = vweird.f32 %v3312_v39  ;;  %v3617_v7 = vadd.f32 1e-08, %v188_v54 }
  0x85   :  { %3313 = vrsqrt.f32 %v3587_v34  ;;  %vm255_vm5 = vmor %vm253_vm3, %vm254_vm2  ;;  %vm263_vm6 = vweird.f32 %v216_v35  ;;  %vm283_vm8 = vweird.f32 %v3587_v34 }
  0x86   :  { %3315 = vrsqrt.f32 %v216_v35  ;;  %v249_v41 = vmul.f32 %v3312_v39, %v248_v40  ;;  %vm303_vm1 = vweird.f32 %v3617_v7 }
  0x87   :  { %3317 = vrsqrt.f32 %v3585_v33 }
  0x88   :  { %v250_v42 = vmul.f32 0.5, %v249_v41  ;;  %3319 = vrsqrt.f32 %v3611_v61  ;;  %v103_v30 = vpop.xlane.xlu1 %102  ;;  %v100_v41 = vpop.xlane.xlu0 %99 }
  0x89   :  { %3321 = vrsqrt.f32 %v3617_v7 }
  0x8a   :  { %v251_v51 = vsub.f32 1.5, %v250_v42 }
  0x8b   :  { %v3591_v43 = vpop.eup %3313 }
  0x8c   :  { %v3316_v46 = vpop.eup %3315  ;;  %v278_v56 = vmul.f32 %v3591_v43, %v3587_v34  ;;  %v252_v62 = vmul.f32 %v3312_v39, %v251_v51  ;;  %vm284_vm9 = vweird.f32 %v3591_v43  ;;  %v189_v51 = vmul.f32 %v3560_v8, %v100_v41 }
  0x8d   :  { %v3594_v50 = vpop.eup %3317  ;;  %v258_v52 = vmul.f32 %v3316_v46, %v216_v35  ;;  %vm264_vm4 = vweird.f32 %v3316_v46  ;;  %v190_v35 = vmul.f32 %v3560_v8, %v103_v30  ;;  %vm285_vm12 = vmor %vm283_vm8, %vm284_vm9 }
  0x8e   :  { %v268_v60 = vmul.f32 %v3594_v50, %v3585_v33  ;;  %v279_v9 = vmul.f32 %v3591_v43, %v278_v56  ;;  %v256_v14 = vsel %vm255_vm5, %v3312_v39, %v252_v62  ;;  %vm265_vm7 = vmor %vm263_vm6, %vm264_vm4  ;;  %v3627_v31 = vpop.eup %3319  ;;  %vm274_vm11 = vweird.f32 %v3594_v50 }
  0x8f   :  { %v259_v57 = vmul.f32 %v3316_v46, %v258_v52  ;;  %v567_v24 = vmul.f32 %v256_v14, %v3405_v1  ;;  %v3629_v42 = vpop.eup %3321  ;;  %v3637_v1 = vld [vmem:[%s4711_s0 + $0xc8] sm:$0xff]  ;;  %v288_v47 = vmul.f32 %v3627_v31, %v3611_v61  ;;  %vm275_vm13 = vmor %vm273_vm10, %vm274_vm11  ;;  %vm294_vm15 = vweird.f32 %v3627_v31 }
  0x90   :  { %v269_v17 = vmul.f32 %v3594_v50, %v268_v60  ;;  %v280_v22 = vmul.f32 0.5, %v279_v9  ;;  %v72_v44 = vmul.f32 %v3637_v1, %v3637_v1  ;;  %v298_v54 = vmul.f32 %v3629_v42, %v3617_v7  ;;  %vm3702_vm3 = vmor %vm293_vm14, %vm294_vm15 }
  0x91   :  { %v260_v63 = vmul.f32 0.5, %v259_v57  ;;  %v3662_v60 = vadd.f32 1e-08, %v190_v35  ;;  %v289_v62 = vmul.f32 %v3627_v31, %v288_v47  ;;  %vm304_vm2 = vweird.f32 %v3629_v42 }
  0x92   :  { %v270_v26 = vmul.f32 0.5, %v269_v17  ;;  %v281_v40 = vsub.f32 1.5, %v280_v22  ;;  %v155_v56 = vsel %vm79_vm0, %v72_v44, 0.0  ;;  %v299_v2 = vmul.f32 %v3629_v42, %v298_v54  ;;  %v106_v17 = vpop.xlane.xlu2 %105  ;;  %v109_v22 = vpop.xlane.xlu0 %108  ;;  %vm305_vm4 = vmor %vm303_vm1, %vm304_vm2 }
  0x93   :  { %v261_v11 = vsub.f32 1.5, %v260_v63  ;;  %156 = vadd.xlane.f32.xlu1 %v155_v56  ;;  %v3665_v63 = vadd.f32 1e-08, %v189_v51  ;;  %3323 = vrsqrt.f32 %v3662_v60  ;;  %v290_v9 = vmul.f32 0.5, %v289_v62 }
  0x94   :  { %v271_v39 = vsub.f32 1.5, %v270_v26  ;;  %v282_v52 = vmul.f32 %v3591_v43, %v281_v40  ;;  %v300_v12 = vmul.f32 0.5, %v299_v2  ;;  %v192_v61 = vmul.f32 %v3560_v8, %v109_v22 }
  0x95   :  { %v262_v21 = vmul.f32 %v3316_v46, %v261_v11  ;;  %3325 = vrsqrt.f32 %v3665_v63  ;;  %vm323_vm5 = vweird.f32 %v3662_v60 }
  0x96   :  { %v272_v33 = vmul.f32 %v3594_v50, %v271_v39  ;;  %v286_v3 = vsel %vm285_vm12, %v3591_v43, %v282_v52  ;;  %v3715_v47 = vadd.f32 1e-08, %v192_v61 }
  0x97   :  { %v266_v23 = vsel %vm265_vm7, %v3316_v46, %v262_v21  ;;  %v570_v11 = vmul.f32 %v286_v3, %v3419_v5  ;;  %v291_v21 = vsub.f32 1.5, %v290_v9  ;;  %v191_v5 = vmul.f32 %v3560_v8, %v106_v17 }
  0x98   :  { %v568_v25 = vmul.f32 %v266_v23, %v3424_v6  ;;  %v3642_v6 = vld [vmem:[%s4711_s0 + $0xc0] sm:$0xff]  ;;  %v276_v34 = vsel %vm275_vm13, %v3594_v50, %v272_v33  ;;  %v3691_v50 = vld [vmem:[%s4711_s0 + $0xd8] sm:$0xff]  ;;  %vm313_vm7 = vweird.f32 %v3665_v63  ;;  %vm343_vm13 = vweird.f32 %v3715_v47 }
  0x99   :  { %v71_v46 = vmul.f32 %v3642_v6, %v3642_v6  ;;  %v569_v13 = vmul.f32 %v276_v34, %v3400_v0  ;;  %v3674_v23 = vpop.eup %3323  ;;  %v3686_v0 = vld [vmem:[%s4711_s0 + $0xd0] sm:$0xff]  ;;  %v74_v26 = vmul.f32 %v3691_v50, %v3691_v50  ;;  %v292_v30 = vmul.f32 %v3627_v31, %v291_v21 }
  0x9a   :  { %v599_v32 = vpack.c.bf16 %v568_v25, %v567_v24  ;;  %v301_v24 = vsub.f32 1.5, %v300_v12  ;;  %v73_v25 = vmul.f32 %v3686_v0, %v3686_v0  ;;  %v115_v9 = vpop.xlane.xlu2 %114  ;;  %v112_v12 = vpop.xlane.xlu1 %111  ;;  %vm324_vm6 = vweird.f32 %v3674_v23 }
  0x9b   :  { %v152_v57 = vsel %vm79_vm0, %v71_v46, 0.0  ;;  %v600_v14 = vpack.c.bf16 %v570_v11, %v569_v13  ;;  %v3676_v43 = vpop.eup %3325  ;;  %v161_v44 = vsel %vm79_vm0, %v74_v26, 0.0  ;;  %v3713_v46 = vadd.f32 1e-08, %v191_v5  ;;  %vm325_vm9 = vmor %vm323_vm5, %vm324_vm6 }
  0x9c   :  { %3065 = vmatmul.msk.bf16.vlgmr.msra.gmra.mxu0 %vm79_vm0, %v599_v32  ;;  %153 = vadd.xlane.f32.xlu0 %v152_v57  ;;  %v318_v32 = vmul.f32 %v3674_v23, %v3662_v60  ;;  %v302_v41 = vmul.f32 %v3629_v42, %v301_v24  ;;  %v308_v35 = vmul.f32 %v3676_v43, %v3665_v63  ;;  %v158_v39 = vsel %vm79_vm0, %v73_v25, 0.0 }
  0x9d   :  { %159 = vadd.xlane.f32.xlu2 %v158_v39  ;;  %v296_v54 = vsel %vm3702_vm3, %v3627_v31, %v292_v30  ;;  %3327 = vrsqrt.f32 %v3713_v46  ;;  %vm314_vm8 = vweird.f32 %v3676_v43  ;;  %v193_v22 = vmul.f32 %v3560_v8, %v112_v12 }
  0x9e   :  { %v319_v51 = vmul.f32 %v3674_v23, %v318_v32  ;;  %v309_v52 = vmul.f32 %v3676_v43, %v308_v35  ;;  %v306_v56 = vsel %vm305_vm4, %v3629_v42, %v302_v41  ;;  %3329 = vrsqrt.f32 %v3715_v47  ;;  %vm315_vm10 = vmor %vm313_vm7, %vm314_vm8 }
  0x9f   :  { %v571_v57 = vmul.f32 %v296_v54, %v3414_v4  ;;  %v572_v33 = vmul.f32 %v306_v56, %v3433_v10  ;;  %v3738_v4 = vld [vmem:[%s4711_s0 + $0xe8] sm:$0xff]  ;;  %v3743_v10 = vld [vmem:[%s4711_s0 + $0xe0] sm:$0xff]  ;;  %v194_v42 = vmul.f32 %v3560_v8, %v115_v9  ;;  %v3766_v32 = vadd.f32 1e-08, %v193_v22 }
  0xa0   :  { %v320_v7 = vmul.f32 0.5, %v319_v51  ;;  %v310_v62 = vmul.f32 0.5, %v309_v52  ;;  %v76_v60 = vmul.f32 %v3738_v4, %v3738_v4  ;;  %v75_v13 = vmul.f32 %v3743_v10, %v3743_v10 }
  0xa1   :  { %v601_v34 = vpack.c.bf16 %v572_v33, %v571_v57  ;;  %v3762_v25 = vadd.f32 1e-08, %v194_v42  ;;  %v118_v57 = vpop.xlane.xlu0 %117  ;;  %vm333_vm11 = vweird.f32 %v3713_v46  ;;  %vm353_vm4 = vweird.f32 %v3766_v32 }
  0xa2   :  { %v321_v3 = vsub.f32 1.5, %v320_v7  ;;  %v311_v31 = vsub.f32 1.5, %v310_v62  ;;  %v167_v5 = vsel %vm79_vm0, %v76_v60, 0.0  ;;  %v164_v61 = vsel %vm79_vm0, %v75_v13, 0.0  ;;  %v121_v56 = vpop.xlane.xlu1 %120 }
  0xa3   :  { %v3727_v2 = vpop.eup %3327  ;;  %165 = vadd.xlane.f32.xlu1 %v164_v61  ;;  %3331 = vrsqrt.f32 %v3762_v25  ;;  %vm363_vm2 = vweird.f32 %v3762_v25 }
  0xa4   :  { %162 = vadd.xlane.f32.xlu0 %v161_v44  ;;  %v3729_v11 = vpop.eup %3329  ;;  %v322_v17 = vmul.f32 %v3674_v23, %v321_v3  ;;  %v328_v21 = vmul.f32 %v3727_v2, %v3713_v46  ;;  %v312_v24 = vmul.f32 %v3676_v43, %v311_v31  ;;  %3333 = vrsqrt.f32 %v3766_v32 }
  0xa5   :  { %168 = vadd.xlane.f32.xlu2 %v167_v5  ;;  %vm334_vm12 = vweird.f32 %v3727_v2  ;;  %vm344_vm14 = vweird.f32 %v3729_v11 }
  0xa6   :  { %v329_v26 = vmul.f32 %v3727_v2, %v328_v21  ;;  %v326_v40 = vsel %vm325_vm9, %v3674_v23, %v322_v17  ;;  %v316_v41 = vsel %vm315_vm10, %v3676_v43, %v312_v24  ;;  %v196_v43 = vmul.f32 %v3560_v8, %v121_v56  ;;  %vm3801_vm15 = vmor %vm333_vm11, %vm334_vm12 }
  0xa7   :  { %v574_v35 = vmul.f32 %v326_v40, %v3448_v18  ;;  %v573_v44 = vmul.f32 %v316_v41, %v3453_v19  ;;  %v3785_v18 = vld [vmem:[%s4711_s0 + $0xf8] sm:$0xff]  ;;  %v3790_v19 = vld [vmem:[%s4711_s0 + $0xf0] sm:$0xff]  ;;  %vm345_vm1 = vmor %vm343_vm13, %vm344_vm14  ;;  %v124_v40 = vpop.xlane.xlu2 %123 }
  0xa8   :  { %v330_v63 = vmul.f32 0.5, %v329_v26  ;;  %v78_v46 = vmul.f32 %v3785_v18, %v3785_v18  ;;  %v77_v33 = vmul.f32 %v3790_v19, %v3790_v19  ;;  %v228_v13 = vadd.f32 1e-08, %v196_v43 }
  0xa9   :  { %v602_v54 = vpack.c.bf16 %v574_v35, %v573_v44  ;;  %v3774_v7 = vpop.eup %3331 }
  0xaa   :  { %v331_v51 = vsub.f32 1.5, %v330_v63  ;;  %v3776_v23 = vpop.eup %3333  ;;  %v358_v31 = vmul.f32 %v3774_v7, %v3762_v25  ;;  %v173_v42 = vsel %vm79_vm0, %v78_v46, 0.0  ;;  %v170_v60 = vsel %vm79_vm0, %v77_v33, 0.0 }
  0xab   :  { %v348_v12 = vmul.f32 %v3776_v23, %v3766_v32  ;;  %174 = vadd.xlane.f32.xlu1 %v173_v42  ;;  %3335 = vrsqrt.f32 %v228_v13  ;;  %vm364_vm3 = vweird.f32 %v3774_v7  ;;  %vm354_vm5 = vweird.f32 %v3776_v23 }
  0xac   :  { %3066 = vmatmul.msk.bf16.gmra.mxu0 %vm79_vm0, %v600_v14  ;;  %v338_v14 = vmul.f32 %v3729_v11, %v3715_v47  ;;  %v332_v62 = vmul.f32 %v3727_v2, %v331_v51  ;;  %171 = vadd.xlane.f32.xlu0 %v170_v60  ;;  %v359_v21 = vmul.f32 %v3774_v7, %v358_v31  ;;  %vm365_vm6 = vmor %vm363_vm2, %vm364_vm3  ;;  %v130_v60 = vpop.xlane.xlu1 %129  ;;  %vm383_vm8 = vweird.f32 %v228_v13 }
  0xad   :  { %vm355_vm7 = vmor %vm353_vm4, %vm354_vm5 }
  0xae   :  { %v339_v30 = vmul.f32 %v3729_v11, %v338_v14  ;;  %v349_v14 = vmul.f32 %v3776_v23, %v348_v12  ;;  %v336_v22 = vsel %vm3801_vm15, %v3727_v2, %v332_v62  ;;  %v360_v61 = vmul.f32 0.5, %v359_v21 }
  0xaf   :  { %v575_v5 = vmul.f32 %v336_v22, %v3458_v20  ;;  %v197_v20 = vmul.f32 %v3560_v8, %v124_v40  ;;  %v133_v9 = vpop.xlane.xlu2 %132 }
  0xb0   :  { %v340_v39 = vmul.f32 0.5, %v339_v30  ;;  %v350_v26 = vmul.f32 0.5, %v349_v14  ;;  %v361_v35 = vsub.f32 1.5, %v360_v61 }
  0xb1   :  { %v3336_v41 = vpop.eup %3335  ;;  %v229_v25 = vadd.f32 1e-08, %v197_v20 }
  0xb2   :  { %v341_v52 = vsub.f32 1.5, %v340_v39  ;;  %v351_v63 = vsub.f32 1.5, %v350_v26  ;;  %v127_v39 = vpop.xlane.xlu0 %126  ;;  %v362_v2 = vmul.f32 %v3774_v7, %v361_v35  ;;  %v378_v51 = vmul.f32 %v3336_v41, %v228_v13 }
  0xb3   :  { %vm384_vm9 = vweird.f32 %v3336_v41  ;;  %vm393_vm14 = vweird.f32 %v229_v25 }
  0xb4   :  { %v342_v3 = vmul.f32 %v3729_v11, %v341_v52  ;;  %v379_v56 = vmul.f32 %v3336_v41, %v378_v51  ;;  %v366_v43 = vsel %vm365_vm6, %v3774_v7, %v362_v2  ;;  %v200_v7 = vmul.f32 %v3560_v8, %v133_v9  ;;  %vm385_vm12 = vmor %vm383_vm8, %vm384_vm9 }
  0xb5   :  { %v578_v33 = vmul.f32 %v366_v43, %v3482_v29 }
  0xb6   :  { %v346_v24 = vsel %vm345_vm1, %v3729_v11, %v342_v3  ;;  %v352_v11 = vmul.f32 %v3776_v23, %v351_v63  ;;  %v380_v62 = vmul.f32 0.5, %v379_v56 }
  0xb7   :  { %v576_v47 = vmul.f32 %v346_v24, %v3472_v27  ;;  %v198_v27 = vmul.f32 %v3560_v8, %v127_v39  ;;  %v3837_v24 = vadd.f32 1e-08, %v200_v7  ;;  %v139_v39 = vpop.xlane.xlu1 %138 }
  0xb8   :  { %v356_v32 = vsel %vm355_vm7, %v3776_v23, %v352_v11  ;;  %v381_v12 = vsub.f32 1.5, %v380_v62  ;;  %v3287_v62 = vld [vmem:[%s4712_s1 + $0x18] sm:$0xff] }
  0xb9   :  { %v603_v30 = vpack.c.bf16 %v576_v47, %v575_v5  ;;  %v577_v46 = vmul.f32 %v356_v32, %v3477_v28  ;;  %v199_v28 = vmul.f32 %v3560_v8, %v130_v60  ;;  %992 = vmatpush.bf16.msra.mxu1 %v3287_v62  ;;  %v142_v60 = vpop.xlane.xlu2 %141  ;;  %vm423_vm5 = vweird.f32 %v3837_v24 }
  0xba   :  { %v382_v29 = vmul.f32 %v3336_v41, %v381_v12  ;;  %v136_v11 = vpop.xlane.xlu0 %135 }
  0xbb   :  { %v3839_v5 = vadd.f32 1e-08, %v199_v28 }
  0xbc   :  { %3067 = vmatmul.msk.bf16.gmra.mxu0 %vm79_vm0, %v601_v34  ;;  %v195_v34 = vmul.f32 %v3560_v8, %v118_v57  ;;  %v386_v26 = vsel %vm385_vm12, %v3336_v41, %v382_v29 }
  0xbd   :  { %vm413_vm7 = vweird.f32 %v3839_v5 }
  0xbe   :  { %v227_v17 = vadd.f32 1e-08, %v195_v34  ;;  %v604_v34 = vpack.c.bf16 %v578_v33, %v577_v46 }
  0xc0   :  { %3337 = vrsqrt.f32 %v227_v17  ;;  %vm373_vm10 = vweird.f32 %v227_v17 }
  0xc1   :  { %3339 = vrsqrt.f32 %v229_v25 }
  0xc2   :  { %v145_v29 = vpop.xlane.xlu0 %144 }
  0xc6   :  { %v3338_v44 = vpop.eup %3337 }
  0xc7   :  { %v368_v52 = vmul.f32 %v3338_v44, %v227_v17  ;;  %v3340_v31 = vpop.eup %3339  ;;  %vm374_vm11 = vweird.f32 %v3338_v44 }
  0xc8   :  { %v388_v14 = vmul.f32 %v3340_v31, %v229_v25  ;;  %vm375_vm13 = vmor %vm373_vm10, %vm374_vm11  ;;  %vm394_vm15 = vweird.f32 %v3340_v31 }
  0xc9   :  { %v369_v57 = vmul.f32 %v3338_v44, %v368_v52  ;;  %vm3850_vm3 = vmor %vm393_vm14, %vm394_vm15 }
  0xca   :  { %v389_v13 = vmul.f32 %v3340_v31, %v388_v14 }
  0xcb   :  { %v370_v3 = vmul.f32 0.5, %v369_v57 }
  0xcc   :  { %3068 = vmatmul.msk.bf16.gmra.mxu0 %vm79_vm0, %v602_v54  ;;  %v230_v54 = vadd.f32 1e-08, %v198_v27  ;;  %v390_v40 = vmul.f32 0.5, %v389_v13 }
  0xcd   :  { %v371_v42 = vsub.f32 1.5, %v370_v3  ;;  %v3286_v3 = vld [vmem:[%s4712_s1 + $0x10] sm:$0xff] }
  0xce   :  { %3341 = vrsqrt.f32 %v230_v54  ;;  %v391_v27 = vsub.f32 1.5, %v390_v40  ;;  %vm403_vm1 = vweird.f32 %v230_v54  ;;  %993 = vmatpush.bf16.msra.mxu1 %v3286_v3 }
  0xcf   :  { %v372_v23 = vmul.f32 %v3338_v44, %v371_v42  ;;  %3343 = vrsqrt.f32 %v3837_v24 }
  0xd0   :  { %3345 = vrsqrt.f32 %v3839_v5  ;;  %v392_v41 = vmul.f32 %v3340_v31, %v391_v27  ;;  %v3903_v27 = vld [vmem:[%s4713_s2] ss:$0 sm:$0xff] }
  0xd1   :  { %v376_v61 = vsel %vm375_vm13, %v3338_v44, %v372_v23 }
  0xd2   :  { %v579_v17 = vmul.f32 %v376_v61, %v3501_v37  ;;  %v202_v37 = vmul.f32 %v3560_v8, %v139_v39  ;;  %v396_v46 = vsel %vm3850_vm3, %v3340_v31, %v392_v41 }
  0xd4   :  { %v3342_v21 = vpop.eup %3341  ;;  %v3857_v57 = vadd.f32 1e-08, %v202_v37 }
  0xd5   :  { %v398_v22 = vmul.f32 %v3342_v21, %v230_v54  ;;  %v3845_v20 = vpop.eup %3343  ;;  %vm404_vm2 = vweird.f32 %v3342_v21 }
  0xd6   :  { %v3346_v51 = vpop.eup %3345  ;;  %v418_v56 = vmul.f32 %v3845_v20, %v3837_v24  ;;  %vm405_vm4 = vmor %vm403_vm1, %vm404_vm2  ;;  %3347 = vrsqrt.f32 %v3857_v57  ;;  %vm424_vm6 = vweird.f32 %v3845_v20  ;;  %vm443_vm11 = vweird.f32 %v3857_v57 }
  0xd7   :  { %v399_v47 = vmul.f32 %v3342_v21, %v398_v22  ;;  %v408_v25 = vmul.f32 %v3346_v51, %v3839_v5  ;;  %vm414_vm8 = vweird.f32 %v3346_v51  ;;  %vm425_vm9 = vmor %vm423_vm5, %vm424_vm6 }
  0xd8   :  { %v419_v32 = vmul.f32 %v3845_v20, %v418_v56  ;;  %vm415_vm10 = vmor %vm413_vm7, %vm414_vm8 }
  0xd9   :  { %v400_v35 = vmul.f32 0.5, %v399_v47  ;;  %v409_v43 = vmul.f32 %v3346_v51, %v408_v25 }
  0xda   :  { %v420_v12 = vmul.f32 0.5, %v419_v32 }
  0xdb   :  { %v401_v2 = vsub.f32 1.5, %v400_v35  ;;  %v410_v31 = vmul.f32 0.5, %v409_v43 }
  0xdc   :  { %3069 = vmatmul.msk.bf16.gmra.mxu0 %vm79_vm0, %v603_v30  ;;  %v580_v30 = vmul.f32 %v386_v26, %v3496_v36  ;;  %v201_v36 = vmul.f32 %v3560_v8, %v136_v11  ;;  %v421_v7 = vsub.f32 1.5, %v420_v12 }
  0xdd   :  { %v402_v52 = vmul.f32 %v3342_v21, %v401_v2  ;;  %v411_v28 = vsub.f32 1.5, %v410_v31 }
  0xde   :  { %v605_v63 = vpack.c.bf16 %v580_v30, %v579_v17  ;;  %v3859_v54 = vadd.f32 1e-08, %v201_v36  ;;  %v422_v14 = vmul.f32 %v3845_v20, %v421_v7 }
  0xdf   :  { %v406_v33 = vsel %vm405_vm4, %v3342_v21, %v402_v52  ;;  %v3874_v21 = vpop.eup %3347  ;;  %v412_v22 = vmul.f32 %v3346_v51, %v411_v28 }
  0xe0   :  { %3349 = vrsqrt.f32 %v3859_v54  ;;  %v582_v9 = vmul.f32 %v406_v33, %v3520_v45  ;;  %v204_v45 = vmul.f32 %v3560_v8, %v145_v29  ;;  %v438_v13 = vmul.f32 %v3874_v21, %v3857_v57 }
  0xe1   :  { %v416_v17 = vsel %vm415_vm10, %v3346_v51, %v412_v22  ;;  %v426_v30 = vsel %vm425_vm9, %v3845_v20, %v422_v14  ;;  %vm444_vm12 = vweird.f32 %v3874_v21  ;;  %vm433_vm13 = vweird.f32 %v3859_v54 }
  0xe2   :  { %v3891_v61 = vadd.f32 1e-08, %v204_v45  ;;  %v439_v5 = vmul.f32 %v3874_v21, %v438_v13  ;;  %v583_v40 = vmul.f32 %v416_v17, %v3533_v49  ;;  %v584_v35 = vmul.f32 %v426_v30, %v3528_v48  ;;  %vm3918_vm15 = vmor %vm443_vm11, %vm444_vm12 }
  0xe4   :  { %v607_v11 = vpack.c.bf16 %v584_v35, %v583_v40  ;;  %vm463_vm6 = vweird.f32 %v3891_v61 }
  0xe6   :  { %v3876_v23 = vpop.eup %3349 }
  0xe7   :  { %v428_v24 = vmul.f32 %v3876_v23, %v3859_v54  ;;  %vm434_vm14 = vweird.f32 %v3876_v23 }
  0xe8   :  { %vm3927_vm1 = vmor %vm433_vm13, %vm434_vm14 }
  0xe9   :  { %v429_v26 = vmul.f32 %v3876_v23, %v428_v24 }
  0xeb   :  { %v430_v39 = vmul.f32 0.5, %v429_v26 }
  0xec   :  { %3070 = vmatmul.msk.bf16.gmra.mxu0 %vm79_vm0, %v604_v34  ;;  %v581_v34 = vmul.f32 %v396_v46, %v3506_v38  ;;  %v203_v38 = vmul.f32 %v3560_v8, %v142_v60 }
  0xed   :  { %v151_v51 = vpop.xlane.xlu2 %150  ;;  %v431_v36 = vsub.f32 1.5, %v430_v39 }
  0xee   :  { %v606_v42 = vpack.c.bf16 %v582_v9, %v581_v34  ;;  %v3889_v47 = vadd.f32 1e-08, %v203_v38  ;;  %v206_v49 = vmul.f32 %v3560_v8, %v151_v51 }
  0xef   :  { %v148_v41 = vpop.xlane.xlu1 %147  ;;  %v432_v57 = vmul.f32 %v3876_v23, %v431_v36 }
  0xf0   :  { %3351 = vrsqrt.f32 %v3889_v47  ;;  %v205_v52 = vmul.f32 %v3560_v8, %v148_v41  ;;  %v3931_v62 = vadd.f32 1e-08, %v206_v49  ;;  %vm453_vm4 = vweird.f32 %v3889_v47 }
  0xf1   :  { %3353 = vrsqrt.f32 %v3891_v61  ;;  %v436_v31 = vsel %vm3927_vm1, %v3876_v23, %v432_v57 }
  0xf2   :  { %v3934_v34 = vadd.f32 1e-08, %v205_v52  ;;  %3355 = vrsqrt.f32 %v3931_v62  ;;  %v585_v29 = vmul.f32 %v436_v31, %v3549_v59  ;;  %vm483_vm12 = vweird.f32 %v3931_v62 }
  0xf4   :  { %3357 = vrsqrt.f32 %v3934_v34  ;;  %vm473_vm14 = vweird.f32 %v3934_v34 }
  0xf6   :  { %v3905_v37 = vpop.eup %3351 }
  0xf7   :  { %v3907_v44 = vpop.eup %3353  ;;  %v448_v32 = vmul.f32 %v3905_v37, %v3889_v47  ;;  %vm454_vm5 = vweird.f32 %v3905_v37 }
  0xf8   :  { %v458_v54 = vmul.f32 %v3907_v44, %v3891_v61  ;;  %v3948_v26 = vpop.eup %3355  ;;  %vm464_vm7 = vweird.f32 %v3907_v44  ;;  %vm3962_vm8 = vmor %vm453_vm4, %vm454_vm5 }
  0xf9   :  { %v449_v9 = vmul.f32 %v3905_v37, %v448_v32  ;;  %vm3971_vm9 = vmor %vm463_vm6, %vm464_vm7  ;;  %vm484_vm13 = vweird.f32 %v3948_v26 }
  0xfa   :  { %v459_v12 = vmul.f32 %v3907_v44, %v458_v54  ;;  %v3951_v35 = vpop.eup %3357  ;;  %vm4006_vm1 = vmor %vm483_vm12, %vm484_vm13 }
  0xfb   :  { %v450_v45 = vmul.f32 0.5, %v449_v9  ;;  %v468_v61 = vmul.f32 %v3951_v35, %v3934_v34 }
  0xfc   :  { %3071 = vmatmul.msk.bf16.gmra.mxu0 %vm79_vm0, %v605_v63  ;;  %v440_v63 = vmul.f32 0.5, %v439_v5  ;;  %v460_v14 = vmul.f32 0.5, %v459_v12 }
  0xfd   :  { %v451_v17 = vsub.f32 1.5, %v450_v45 }
  0xfe   :  { %v441_v20 = vsub.f32 1.5, %v440_v63  ;;  %v461_v30 = vsub.f32 1.5, %v460_v14 }
  0xff   :  { %v452_v39 = vmul.f32 %v3905_v37, %v451_v17 }
 0x100   :  { %v442_v56 = vmul.f32 %v3874_v21, %v441_v20  ;;  %v462_v47 = vmul.f32 %v3907_v44, %v461_v30 }
 0x101   :  { %v456_v25 = vsel %vm3962_vm8, %v3905_v37, %v452_v39 }
 0x102   :  { %v466_v57 = vsel %vm3971_vm9, %v3907_v44, %v462_v47 }
 0x10c   :  { %3072 = vmatmul.msk.bf16.gmra.mxu0 %vm79_vm0, %v606_v42  ;;  %v446_v42 = vsel %vm3918_vm15, %v3874_v21, %v442_v56  ;;  %v157_v21 = vpop.xlane.xlu1 %156  ;;  %v469_v56 = vmul.f32 %v3951_v35, %v468_v61  ;;  %vm474_vm15 = vweird.f32 %v3951_v35 }
 0x10d   :  { %v586_v38 = vmul.f32 %v446_v42, %v3544_v58  ;;  %v208_v59 = vmul.f32 %v3560_v8, %v157_v21 }
 0x10e   :  { %v470_v9 = vmul.f32 0.5, %v469_v56 }
 0x10f   :  { %v608_v5 = vpack.c.bf16 %v586_v38, %v585_v29  ;;  %v154_v40 = vpop.xlane.xlu0 %153  ;;  %v3975_v41 = vadd.f32 1e-08, %v208_v59 }
 0x110   :  { %v207_v63 = vmul.f32 %v3560_v8, %v154_v40  ;;  %v160_v44 = vpop.xlane.xlu2 %159  ;;  %v471_v29 = vsub.f32 1.5, %v470_v9 }
 0x111   :  { %3359 = vrsqrt.f32 %v3975_v41  ;;  %vm503_vm5 = vweird.f32 %v3975_v41 }
 0x112   :  { %v3978_v49 = vadd.f32 1e-08, %v207_v63 }
 0x114   :  { %3361 = vrsqrt.f32 %v3978_v49  ;;  %vm493_vm7 = vweird.f32 %v3978_v49 }
 0x117   :  { %v163_v38 = vpop.xlane.xlu0 %162 }
 0x118   :  { %v210_v14 = vmul.f32 %v3560_v8, %v163_v38 }
 0x119   :  { %v692_v2 = vpop.f32.mrf.mxu0 }
 0x11a   :  { %v693_v48 = vadd.f32 %v3903_v27, %v692_v2  ;;  %v4022_v40 = vadd.f32 1e-08, %v210_v14 }
 0x11c   :  { %3073 = vmatmul.msk.bf16.gmra.mxu0 %vm79_vm0, %v607_v11  ;;  %v804_v46 = vmul.f32 0.2, %v693_v48  ;;  %vm772_vm2 = vcmp.ge.f32.partialorder %v693_v48, 0.0  ;;  %v478_v11 = vmul.f32 %v3948_v26, %v3931_v62  ;;  %v472_v62 = vmul.f32 %v3951_v35, %v471_v29 }
 0x11e   :  { %v836_v60 = vsel %vm772_vm2, %v693_v48, %v804_v46  ;;  %v479_v52 = vmul.f32 %v3948_v26, %v478_v11  ;;  %v587_v46 = vmul.f32 %v456_v25, %v3569_v15  ;;  %vm4015_vm2 = vmor %vm473_vm14, %vm474_vm15  ;;  %vm523_vm15 = vweird.f32 %v4022_v40 }
 0x11f   :  { %v868_v22 = vmul.f32 1.4142135, %v836_v60  ;;  %v476_v63 = vsel %vm4015_vm2, %v3951_v35, %v472_v62 }
 0x120   :  { %v589_v61 = vmul.f32 %v476_v63, %v3605_v55 }
 0x121   :  { %v694_v33 = vpop.f32.mrf.mxu0 }
 0x122   :  { %v695_v3 = vadd.f32 %v3903_v27, %v694_v33  ;;  %v588_v33 = vmul.f32 %v466_v57, %v3574_v16  ;;  %v209_v16 = vmul.f32 %v3560_v8, %v160_v44 }
 0x124   :  { %vm773_vm3 = vcmp.ge.f32.partialorder %v695_v3, 0.0  ;;  %v805_v7 = vmul.f32 0.2, %v695_v3  ;;  %v609_v60 = vpack.c.bf16 %v588_v33, %v587_v46  ;;  %v4019_v17 = vadd.f32 1e-08, %v209_v16 }
 0x126   :  { %v837_v28 = vsel %vm773_vm3, %v695_v3, %v805_v7  ;;  %v480_v3 = vmul.f32 0.5, %v479_v52  ;;  %v3992_v7 = vpop.eup %3359  ;;  %3363 = vrsqrt.f32 %v4019_v17  ;;  %vm513_vm13 = vweird.f32 %v4019_v17 }
 0x127   :  { %v869_v23 = vmul.f32 1.4142135, %v837_v28  ;;  %v3995_v45 = vpop.eup %3361  ;;  %3365 = vrsqrt.f32 %v4022_v40  ;;  %vm504_vm6 = vweird.f32 %v3992_v7 }
 0x128   :  { %v481_v28 = vsub.f32 1.5, %v480_v3  ;;  %v488_v34 = vmul.f32 %v3995_v45, %v3978_v49  ;;  %vm494_vm8 = vweird.f32 %v3995_v45  ;;  %vm4050_vm9 = vmor %vm503_vm5, %vm504_vm6 }
 0x129   :  { %v697_v13 = vpop.f32.mrf.mxu0  ;;  %v900_v24 = vpack.c.bf16 %v869_v23, %v868_v22 }
 0x12a   :  { %v698_v58 = vadd.f32 %v3903_v27, %v697_v13  ;;  %v482_v22 = vmul.f32 %v3948_v26, %v481_v28  ;;  %v498_v13 = vmul.f32 %v3992_v7, %v3975_v41  ;;  %v489_v59 = vmul.f32 %v3995_v45, %v488_v34 }
 0x12b   :  { %3094 = vmatmul.msk.bf16.vlgmr.msra.gmra.mxu1 %vm79_vm0, %v900_v24 }
 0x12c   :  { %3074 = vmatmul.msk.bf16.gmra.mxu0 %vm79_vm0, %v608_v5  ;;  %v806_v20 = vmul.f32 0.2, %v698_v58  ;;  %vm774_vm10 = vcmp.ge.f32.partialorder %v698_v58, 0.0  ;;  %v486_v39 = vsel %vm4006_vm1, %v3948_v26, %v482_v22  ;;  %v169_v26 = vpop.xlane.xlu2 %168  ;;  %v4036_v57 = vpop.eup %3363 }
 0x12d   :  { %v590_v51 = vmul.f32 %v486_v39, %v3599_v53  ;;  %v4039_v46 = vpop.eup %3365  ;;  %v212_v55 = vmul.f32 %v3560_v8, %v169_v26  ;;  %vm514_vm14 = vweird.f32 %v4036_v57 }
 0x12e   :  { %v838_v32 = vsel %vm774_vm10, %v698_v58, %v806_v20  ;;  %v499_v58 = vmul.f32 %v3992_v7, %v498_v13  ;;  %v518_v49 = vmul.f32 %v4039_v46, %v4022_v40  ;;  %vm4059_vm10 = vmor %vm493_vm7, %vm494_vm8  ;;  %vm524_vm1 = vweird.f32 %v4039_v46 }
 0x12f   :  { %v870_v12 = vmul.f32 1.4142135, %v838_v32  ;;  %v610_v25 = vpack.c.bf16 %v590_v51, %v589_v61  ;;  %vm4094_vm2 = vmor %vm513_vm13, %vm514_vm14 }
 0x130   :  { %v500_v20 = vmul.f32 0.5, %v499_v58  ;;  %v519_v16 = vmul.f32 %v4039_v46, %v518_v49 }
 0x131   :  { %v699_v36 = vpop.f32.mrf.mxu0 }
 0x132   :  { %v700_v48 = vadd.f32 %v3903_v27, %v699_v36  ;;  %v490_v36 = vmul.f32 0.5, %v489_v59  ;;  %v501_v32 = vsub.f32 1.5, %v500_v20  ;;  %v520_v34 = vmul.f32 0.5, %v519_v16 }
 0x134   :  { %vm775_vm11 = vcmp.ge.f32.partialorder %v700_v48, 0.0  ;;  %v807_v54 = vmul.f32 0.2, %v700_v48  ;;  %v502_v3 = vmul.f32 %v3992_v7, %v501_v32  ;;  %v521_v39 = vsub.f32 1.5, %v520_v34 }
 0x136   :  { %v839_v43 = vsel %vm775_vm11, %v700_v48, %v807_v54  ;;  %v491_v54 = vsub.f32 1.5, %v490_v36  ;;  %v506_v29 = vsel %vm4050_vm9, %v3992_v7, %v502_v3 }
 0x137   :  { %v871_v37 = vmul.f32 1.4142135, %v839_v43  ;;  %v166_v43 = vpop.xlane.xlu1 %165  ;;  %v592_v7 = vmul.f32 %v506_v29, %v3637_v1 }
 0x138   :  { %v211_v33 = vmul.f32 %v3560_v8, %v166_v43  ;;  %v492_v41 = vmul.f32 %v3995_v45, %v491_v54 }
 0x139   :  { %v702_v31 = vpop.f32.mrf.mxu0  ;;  %v901_v42 = vpack.c.bf16 %v871_v37, %v870_v12  ;;  %v508_v12 = vmul.f32 %v4036_v57, %v4019_v17  ;;  %v522_v17 = vmul.f32 %v4039_v46, %v521_v39 }
 0x13a   :  { %v703_v15 = vadd.f32 %v3903_v27, %v702_v31  ;;  %v4066_v28 = vadd.f32 1e-08, %v211_v33  ;;  %v496_v38 = vsel %vm4059_vm10, %v3995_v45, %v492_v41 }
 0x13b   :  { %3095 = vmatmul.msk.bf16.gmra.mxu1 %vm79_vm0, %v901_v42  ;;  %v591_v62 = vmul.f32 %v496_v38, %v3642_v6 }
 0x13c   :  { %3075 = vmatmul.msk.bf16.gmra.mxu0 %vm79_vm0, %v609_v60  ;;  %v808_v5 = vmul.f32 0.2, %v703_v15  ;;  %vm776_vm3 = vcmp.ge.f32.partialorder %v703_v15, 0.0  ;;  %v4063_v60 = vadd.f32 1e-08, %v212_v55  ;;  %vm533_vm8 = vweird.f32 %v4066_v28 }
 0x13e   :  { %v840_v2 = vsel %vm776_vm3, %v703_v15, %v808_v5  ;;  %v509_v15 = vmul.f32 %v4036_v57, %v508_v12  ;;  %3367 = vrsqrt.f32 %v4063_v60  ;;  %vm4103_vm3 = vmor %vm523_vm15, %vm524_vm1  ;;  %vm543_vm6 = vweird.f32 %v4063_v60 }
 0x13f   :  { %v872_v48 = vmul.f32 1.4142135, %v840_v2  ;;  %3369 = vrsqrt.f32 %v4066_v28  ;;  %v175_v58 = vpop.xlane.xlu1 %174  ;;  %v172_v2 = vpop.xlane.xlu0 %171  ;;  %v526_v26 = vsel %vm4103_vm3, %v4039_v46, %v522_v17 }
 0x140   :  { %v510_v13 = vmul.f32 0.5, %v509_v15  ;;  %v214_v6 = vmul.f32 %v3560_v8, %v175_v58 }
 0x141   :  { %v704_v21 = vpop.f32.mrf.mxu0 }
 0x142   :  { %v705_v30 = vadd.f32 %v3903_v27, %v704_v21  ;;  %v511_v63 = vsub.f32 1.5, %v510_v13 }
 0x144   :  { %vm777_vm4 = vcmp.ge.f32.partialorder %v705_v30, 0.0  ;;  %v809_v47 = vmul.f32 0.2, %v705_v30  ;;  %v4080_v59 = vpop.eup %3367  ;;  %v512_v61 = vmul.f32 %v4036_v57, %v511_v63 }
 0x145   :  { %v538_v20 = vmul.f32 %v4080_v59, %v4063_v60  ;;  %vm544_vm7 = vweird.f32 %v4080_v59 }
 0x146   :  { %v841_v11 = vsel %vm777_vm4, %v705_v30, %v809_v47  ;;  %v611_v30 = vpack.c.bf16 %v592_v7, %v591_v62  ;;  %v4083_v47 = vpop.eup %3369  ;;  %vm4134_vm10 = vmor %vm543_vm6, %vm544_vm7 }
 0x147   :  { %v873_v35 = vmul.f32 1.4142135, %v841_v11  ;;  %v213_v11 = vmul.f32 %v3560_v8, %v172_v2  ;;  %v528_v40 = vmul.f32 %v4083_v47, %v4066_v28  ;;  %v539_v32 = vmul.f32 %v4080_v59, %v538_v20 }
 0x148   :  { %vm534_vm9 = vweird.f32 %v4083_v47 }
 0x149   :  { %v707_v52 = vpop.f32.mrf.mxu0  ;;  %v902_v56 = vpack.c.bf16 %v873_v35, %v872_v48  ;;  %v4107_v35 = vadd.f32 1e-08, %v214_v6  ;;  %v529_v54 = vmul.f32 %v4083_v47, %v528_v40  ;;  %v540_v3 = vmul.f32 0.5, %v539_v32 }
 0x14a   :  { %v708_v53 = vadd.f32 %v3903_v27, %v707_v52 }
 0x14b   :  { %3096 = vmatmul.msk.bf16.gmra.mxu1 %vm79_vm0, %v902_v56  ;;  %v4110_v56 = vadd.f32 1e-08, %v213_v11  ;;  %3371 = vrsqrt.f32 %v4107_v35  ;;  %v530_v9 = vmul.f32 0.5, %v529_v54  ;;  %vm563_vm14 = vweird.f32 %v4107_v35 }
 0x14c   :  { %3076 = vmatmul.msk.bf16.gmra.mxu0 %vm79_vm0, %v610_v25  ;;  %v810_v31 = vmul.f32 0.2, %v708_v53  ;;  %vm778_vm11 = vcmp.ge.f32.partialorder %v708_v53, 0.0  ;;  %v516_v25 = vsel %vm4094_vm2, %v4036_v57, %v512_v61  ;;  %v594_v57 = vmul.f32 %v526_v26, %v3691_v50 }
 0x14d   :  { %3373 = vrsqrt.f32 %v4110_v56  ;;  %v593_v33 = vmul.f32 %v516_v25, %v3686_v0  ;;  %vm553_vm1 = vweird.f32 %v4110_v56 }
 0x14e   :  { %v842_v14 = vsel %vm778_vm11, %v708_v53, %v810_v31  ;;  %vm535_vm11 = vmor %vm533_vm8, %vm534_vm9 }
 0x14f   :  { %v874_v24 = vmul.f32 1.4142135, %v842_v14  ;;  %v612_v37 = vpack.c.bf16 %v594_v57, %v593_v33 }
 0x151   :  { %v709_v42 = vpop.f32.mrf.mxu0  ;;  %v4124_v31 = vpop.eup %3371 }
 0x152   :  { %v710_v44 = vadd.f32 %v3903_v27, %v709_v42  ;;  %v541_v42 = vsub.f32 1.5, %v540_v3  ;;  %v558_v60 = vmul.f32 %v4124_v31, %v4107_v35  ;;  %vm564_vm15 = vweird.f32 %v4124_v31  ;;  %v3288_v3 = vld [vmem:[%s4712_s1 + $0x20] sm:$0xff] }
 0x153   :  { %v3374_v29 = vpop.eup %3373  ;;  %vm565_vm3 = vmor %vm563_vm14, %vm564_vm15 }
 0x154   :  { %vm779_vm12 = vcmp.ge.f32.partialorder %v710_v44, 0.0  ;;  %v811_v22 = vmul.f32 0.2, %v710_v44  ;;  %v542_v50 = vmul.f32 %v4080_v59, %v541_v42  ;;  %v548_v16 = vmul.f32 %v3374_v29, %v4110_v56 }
 0x155   :  { %v559_v7 = vmul.f32 %v4124_v31, %v558_v60  ;;  %vm554_vm2 = vweird.f32 %v3374_v29 }
 0x156   :  { %v843_v23 = vsel %vm779_vm12, %v710_v44, %v811_v22  ;;  %v531_v44 = vsub.f32 1.5, %v530_v9  ;;  %v549_v13 = vmul.f32 %v3374_v29, %v548_v16 }
 0x157   :  { %v875_v45 = vmul.f32 1.4142135, %v843_v23  ;;  %v546_v23 = vsel %vm4134_vm10, %v4080_v59, %v542_v50 }
 0x158   :  { %v532_v15 = vmul.f32 %v4083_v47, %v531_v44  ;;  %v550_v58 = vmul.f32 0.5, %v549_v13 }
 0x159   :  { %v712_v5 = vpop.f32.mrf.mxu0  ;;  %v903_v21 = vpack.c.bf16 %v875_v45, %v874_v24 }
 0x15a   :  { %v713_v1 = vadd.f32 %v3903_v27, %v712_v5  ;;  %v536_v62 = vsel %vm535_vm11, %v4083_v47, %v532_v15  ;;  %v551_v47 = vsub.f32 1.5, %v550_v58  ;;  %v4177_v15 = vld [vmem:[%s4713_s2 + $0x1] ss:$0 sm:$0xff] }
 0x15b   :  { %3097 = vmatmul.msk.bf16.gmra.mxu1 %vm79_vm0, %v903_v21  ;;  %v595_v5 = vmul.f32 %v536_v62, %v3743_v10  ;;  %v596_v21 = vmul.f32 %v546_v23, %v3738_v4 }
 0x15c   :  { %3077 = vmatmul.msk.bf16.gmra.mxu0 %vm79_vm0, %v611_v30  ;;  %v812_v48 = vmul.f32 0.2, %v713_v1  ;;  %vm780_vm4 = vcmp.ge.f32.partialorder %v713_v1, 0.0  ;;  %v560_v30 = vmul.f32 0.5, %v559_v7  ;;  %v552_v10 = vmul.f32 %v3374_v29, %v551_v47 }
 0x15d   :  { %v613_v59 = vpack.c.bf16 %v596_v21, %v595_v5 }
 0x15e   :  { %v844_v43 = vsel %vm780_vm4, %v713_v1, %v812_v48  ;;  %v561_v6 = vsub.f32 1.5, %v560_v30  ;;  %vm555_vm4 = vmor %vm553_vm1, %vm554_vm2 }
 0x15f   :  { %v876_v41 = vmul.f32 1.4142135, %v844_v43  ;;  %v556_v40 = vsel %vm555_vm4, %v3374_v29, %v552_v10 }
 0x160   :  { %v562_v4 = vmul.f32 %v4124_v31, %v561_v6  ;;  %v597_v35 = vmul.f32 %v556_v40, %v3790_v19 }
 0x161   :  { %v714_v8 = vpop.f32.mrf.mxu0 }
 0x162   :  { %v715_v52 = vadd.f32 %v3903_v27, %v714_v8  ;;  %v566_v20 = vsel %vm565_vm3, %v4124_v31, %v562_v4 }
 0x164   :  { %vm781_vm5 = vcmp.ge.f32.partialorder %v715_v52, 0.0  ;;  %v813_v53 = vmul.f32 0.2, %v715_v52 }
 0x166   :  { %v845_v55 = vsel %vm781_vm5, %v715_v52, %v813_v53  ;;  %v598_v52 = vmul.f32 %v566_v20, %v3785_v18  ;;  %v3289_v18 = vld [vmem:[%s4712_s1 + $0x28] sm:$0xff] }
 0x167   :  { %v877_v46 = vmul.f32 1.4142135, %v845_v55  ;;  %1295 = vmatpush.bf16.msra.mxu2 %v3289_v18 }
 0x168   :  { %v614_v54 = vpack.c.bf16 %v598_v52, %v597_v35 }
 0x169   :  { %v717_v12 = vpop.f32.mrf.mxu0  ;;  %v904_v49 = vpack.c.bf16 %v877_v46, %v876_v41 }
 0x16a   :  { %v718_v0 = vadd.f32 %v3903_v27, %v717_v12 }
 0x16b   :  { %3098 = vmatmul.msk.bf16.gmra.mxu1 %vm79_vm0, %v904_v49  ;;  %1296 = vmatpush.bf16.msra.mxu2 %v3288_v3 }
 0x16c   :  { %3078 = vmatmul.msk.bf16.gmra.mxu0 %vm79_vm0, %v612_v37  ;;  %v814_v14 = vmul.f32 0.2, %v718_v0  ;;  %vm782_vm12 = vcmp.ge.f32.partialorder %v718_v0, 0.0 }
 0x16e   :  { %v846_v34 = vsel %vm782_vm12, %v718_v0, %v814_v14 }
 0x16f   :  { %v878_v63 = vmul.f32 1.4142135, %v846_v34 }
 0x171   :  { %v719_v22 = vpop.f32.mrf.mxu0 }
 0x172   :  { %v720_v28 = vadd.f32 %v3903_v27, %v719_v22 }
 0x174   :  { %vm783_vm13 = vcmp.ge.f32.partialorder %v720_v28, 0.0  ;;  %v815_v24 = vmul.f32 0.2, %v720_v28 }
 0x176   :  { %v847_v45 = vsel %vm783_vm13, %v720_v28, %v815_v24 }
 0x177   :  { %v879_v39 = vmul.f32 1.4142135, %v847_v45 }
 0x179   :  { %v722_v2 = vpop.f32.mrf.mxu0  ;;  %v905_v1 = vpack.c.bf16 %v879_v39, %v878_v63 }
 0x17a   :  { %v723_v11 = vadd.f32 %v3903_v27, %v722_v2 }
 0x17b   :  { %3099 = vmatmul.msk.bf16.gmra.mxu1 %vm79_vm0, %v905_v1 }
 0x17c   :  { %3079 = vmatmul.msk.bf16.gmra.mxu0 %vm79_vm0, %v613_v59  ;;  %v816_v61 = vmul.f32 0.2, %v723_v11  ;;  %vm784_vm5 = vcmp.ge.f32.partialorder %v723_v11, 0.0 }
 0x17e   :  { %v848_v36 = vsel %vm784_vm5, %v723_v11, %v816_v61 }
 0x17f   :  { %v880_v56 = vmul.f32 1.4142135, %v848_v36 }
 0x181   :  { %v724_v51 = vpop.f32.mrf.mxu0 }
 0x182   :  { %v725_v17 = vadd.f32 %v3903_v27, %v724_v51 }
 0x184   :  { %vm785_vm6 = vcmp.ge.f32.partialorder %v725_v17, 0.0  ;;  %v817_v48 = vmul.f32 0.2, %v725_v17 }
 0x186   :  { %v849_v8 = vsel %vm785_vm6, %v725_v17, %v817_v48 }
 0x187   :  { %v881_v25 = vmul.f32 1.4142135, %v849_v8 }
 0x189   :  { %v727_v26 = vpop.f32.mrf.mxu0  ;;  %v906_v32 = vpack.c.bf16 %v881_v25, %v880_v56 }
 0x18a   :  { %v728_v43 = vadd.f32 %v3903_v27, %v727_v26 }
 0x18b   :  { %3100 = vmatmul.msk.bf16.gmra.mxu1 %vm79_vm0, %v906_v32 }
 0x18c   :  { %3080 = vmatmul.msk.bf16.gmra.mxu0 %vm79_vm0, %v614_v54  ;;  %v818_v53 = vmul.f32 0.2, %v728_v43  ;;  %vm786_vm7 = vcmp.ge.f32.partialorder %v728_v43, 0.0 }
 0x18e   :  { %v850_v19 = vsel %vm786_vm7, %v728_v43, %v818_v53 }
 0x18f   :  { %v882_v41 = vmul.f32 1.4142135, %v850_v19 }
 0x191   :  { %v729_v55 = vpop.f32.mrf.mxu0 }
 0x192   :  { %v730_v33 = vadd.f32 %v3903_v27, %v729_v55 }
 0x194   :  { %vm787_vm8 = vcmp.ge.f32.partialorder %v730_v33, 0.0  ;;  %v819_v57 = vmul.f32 0.2, %v730_v33 }
 0x196   :  { %v851_v9 = vsel %vm787_vm8, %v730_v33, %v819_v57  ;;  %v3293_v33 = vld [vmem:[%s4712_s1 + $0x48] sm:$0xff] }
 0x197   :  { %v883_v46 = vmul.f32 1.4142135, %v851_v9  ;;  %1901 = vmatpush.bf16.msrb.mxu0 %v3293_v33 }
 0x199   :  { %v732_v12 = vpop.f32.mrf.mxu0  ;;  %v907_v49 = vpack.c.bf16 %v883_v46, %v882_v41 }
 0x19a   :  { %v733_v37 = vadd.f32 %v3903_v27, %v732_v12 }
 0x19b   :  { %3101 = vmatmul.msk.bf16.gmra.mxu1 %vm79_vm0, %v907_v49 }
 0x19c   :  { %v820_v31 = vmul.f32 0.2, %v733_v37  ;;  %vm788_vm9 = vcmp.ge.f32.partialorder %v733_v37, 0.0 }
 0x19e   :  { %v852_v29 = vsel %vm788_vm9, %v733_v37, %v820_v31 }
 0x19f   :  { %v884_v38 = vmul.f32 1.4142135, %v852_v29 }
 0x1a1   :  { %v734_v42 = vpop.f32.mrf.mxu0 }
 0x1a2   :  { %v735_v44 = vadd.f32 %v3903_v27, %v734_v42 }
 0x1a4   :  { %vm789_vm10 = vcmp.ge.f32.partialorder %v735_v44, 0.0  ;;  %v821_v0 = vmul.f32 0.2, %v735_v44 }
 0x1a6   :  { %v853_v50 = vsel %vm789_vm10, %v735_v44, %v821_v0 }
 0x1a7   :  { %v885_v60 = vmul.f32 1.4142135, %v853_v50 }
 0x1a8   :  { %v995_v16 = vpop.f32.mrf.mxu1 }
 0x1a9   :  { %v737_v14 = vpop.f32.mrf.mxu0  ;;  %v908_v22 = vpack.c.bf16 %v885_v60, %v884_v38  ;;  %v996_v28 = vadd.f32 %v4177_v15, %v995_v16 }
 0x1aa   :  { %v738_v23 = vadd.f32 %v3903_v27, %v737_v14 }
 0x1ab   :  { %3102 = vmatmul.msk.bf16.gmra.mxu1 %vm79_vm0, %v908_v22  ;;  %v1107_v62 = vmul.f32 0.2, %v996_v28  ;;  %vm1075_vm11 = vcmp.ge.f32.partialorder %v996_v28, 0.0 }
 0x1ac   :  { %v822_v7 = vmul.f32 0.2, %v738_v23  ;;  %vm790_vm12 = vcmp.ge.f32.partialorder %v738_v23, 0.0 }
 0x1ad   :  { %v1139_v5 = vsel %vm1075_vm11, %v996_v28, %v1107_v62 }
 0x1ae   :  { %v854_v30 = vsel %vm790_vm12, %v738_v23, %v822_v7  ;;  %v1171_v39 = vmul.f32 1.4142135, %v1139_v5 }
 0x1af   :  { %v886_v59 = vmul.f32 1.4142135, %v854_v30 }
 0x1b0   :  { %v997_v13 = vpop.f32.mrf.mxu1 }
 0x1b1   :  { %v998_v34 = vadd.f32 %v4177_v15, %v997_v13  ;;  %v739_v24 = vpop.f32.mrf.mxu0 }
 0x1b2   :  { %v740_v45 = vadd.f32 %v3903_v27, %v739_v24 }
 0x1b3   :  { %vm1076_vm13 = vcmp.ge.f32.partialorder %v998_v34, 0.0  ;;  %v1108_v21 = vmul.f32 0.2, %v998_v34 }
 0x1b4   :  { %vm791_vm14 = vcmp.ge.f32.partialorder %v740_v45, 0.0  ;;  %v823_v58 = vmul.f32 0.2, %v740_v45 }
 0x1b5   :  { %v1140_v63 = vsel %vm1076_vm13, %v998_v34, %v1108_v21 }
 0x1b6   :  { %v1172_v2 = vmul.f32 1.4142135, %v1140_v63  ;;  %v855_v1 = vsel %vm791_vm14, %v740_v45, %v823_v58 }
 0x1b7   :  { %v887_v6 = vmul.f32 1.4142135, %v855_v1 }
 0x1b8   :  { %v1000_v47 = vpop.f32.mrf.mxu1  ;;  %v1203_v11 = vpack.c.bf16 %v1172_v2, %v1171_v39 }
 0x1b9   :  { %v742_v4 = vpop.f32.mrf.mxu0  ;;  %v909_v10 = vpack.c.bf16 %v887_v6, %v886_v59  ;;  %v1001_v61 = vadd.f32 %v4177_v15, %v1000_v47 }
 0x1ba   :  { %3123 = vmatmul.msk.bf16.vlgmr.msra.gmra.mxu2 %vm79_vm0, %v1203_v11  ;;  %v743_v51 = vadd.f32 %v3903_v27, %v742_v4 }
 0x1bb   :  { %3103 = vmatmul.msk.bf16.gmra.mxu1 %vm79_vm0, %v909_v10  ;;  %v1109_v17 = vmul.f32 0.2, %v1001_v61  ;;  %vm1077_vm15 = vcmp.ge.f32.partialorder %v1001_v61, 0.0 }
 0x1bc   :  { %v824_v20 = vmul.f32 0.2, %v743_v51  ;;  %vm792_vm1 = vcmp.ge.f32.partialorder %v743_v51, 0.0 }
 0x1bd   :  { %v1141_v35 = vsel %vm1077_vm15, %v1001_v61, %v1109_v17 }
 0x1be   :  { %v856_v56 = vsel %vm792_vm1, %v743_v51, %v824_v20  ;;  %v1173_v32 = vmul.f32 1.4142135, %v1141_v35 }
 0x1bf   :  { %v888_v53 = vmul.f32 1.4142135, %v856_v56 }
 0x1c0   :  { %v1002_v40 = vpop.f32.mrf.mxu1 }
 0x1c1   :  { %v1003_v36 = vadd.f32 %v4177_v15, %v1002_v40  ;;  %v744_v48 = vpop.f32.mrf.mxu0 }
 0x1c2   :  { %v745_v8 = vadd.f32 %v3903_v27, %v744_v48 }
 0x1c3   :  { %vm1078_vm2 = vcmp.ge.f32.partialorder %v1003_v36, 0.0  ;;  %v1110_v52 = vmul.f32 0.2, %v1003_v36 }
 0x1c4   :  { %vm793_vm3 = vcmp.ge.f32.partialorder %v745_v8, 0.0  ;;  %v825_v25 = vmul.f32 0.2, %v745_v8 }
 0x1c5   :  { %v1142_v26 = vsel %vm1078_vm2, %v1003_v36, %v1110_v52 }
 0x1c6   :  { %v1174_v54 = vmul.f32 1.4142135, %v1142_v26  ;;  %v857_v43 = vsel %vm793_vm3, %v745_v8, %v825_v25 }
 0x1c7   :  { %v889_v55 = vmul.f32 1.4142135, %v857_v43 }
 0x1c8   :  { %v1005_v18 = vpop.f32.mrf.mxu1  ;;  %v1204_v19 = vpack.c.bf16 %v1174_v54, %v1173_v32 }
 0x1c9   :  { %v747_v57 = vpop.f32.mrf.mxu0  ;;  %v910_v3 = vpack.c.bf16 %v889_v55, %v888_v53  ;;  %v1006_v9 = vadd.f32 %v4177_v15, %v1005_v18 }
 0x1ca   :  { %3124 = vmatmul.msk.bf16.gmra.mxu2 %vm79_vm0, %v1204_v19  ;;  %v748_v41 = vadd.f32 %v3903_v27, %v747_v57 }
 0x1cb   :  { %3104 = vmatmul.msk.bf16.gmra.mxu1 %vm79_vm0, %v910_v3  ;;  %v1111_v46 = vmul.f32 0.2, %v1006_v9  ;;  %vm1079_vm4 = vcmp.ge.f32.partialorder %v1006_v9, 0.0 }
 0x1cc   :  { %v826_v12 = vmul.f32 0.2, %v748_v41  ;;  %vm794_vm5 = vcmp.ge.f32.partialorder %v748_v41, 0.0 }
 0x1cd   :  { %v1143_v44 = vsel %vm1079_vm4, %v1006_v9, %v1111_v46 }
 0x1ce   :  { %v858_v0 = vsel %vm794_vm5, %v748_v41, %v826_v12  ;;  %v1175_v60 = vmul.f32 1.4142135, %v1143_v44 }
 0x1cf   :  { %v890_v22 = vmul.f32 1.4142135, %v858_v0 }
 0x1d0   :  { %v1007_v49 = vpop.f32.mrf.mxu1 }
 0x1d1   :  { %v1008_v37 = vadd.f32 %v4177_v15, %v1007_v49  ;;  %v749_v31 = vpop.f32.mrf.mxu0 }
 0x1d2   :  { %v750_v42 = vadd.f32 %v3903_v27, %v749_v31 }
 0x1d3   :  { %vm1080_vm6 = vcmp.ge.f32.partialorder %v1008_v37, 0.0  ;;  %v1112_v29 = vmul.f32 0.2, %v1008_v37 }
 0x1d4   :  { %vm795_vm7 = vcmp.ge.f32.partialorder %v750_v42, 0.0  ;;  %v827_v50 = vmul.f32 0.2, %v750_v42 }
 0x1d5   :  { %v1144_v38 = vsel %vm1080_vm6, %v1008_v37, %v1112_v29 }
 0x1d6   :  { %v1176_v16 = vmul.f32 1.4142135, %v1144_v38  ;;  %v859_v14 = vsel %vm795_vm7, %v750_v42, %v827_v50 }
 0x1d7   :  { %v891_v28 = vmul.f32 1.4142135, %v859_v14 }
 0x1d8   :  { %v1010_v23 = vpop.f32.mrf.mxu1  ;;  %v1205_v62 = vpack.c.bf16 %v1176_v16, %v1175_v60 }
 0x1d9   :  { %v752_v7 = vpop.f32.mrf.mxu0  ;;  %v911_v13 = vpack.c.bf16 %v891_v28, %v890_v22  ;;  %v1011_v34 = vadd.f32 %v4177_v15, %v1010_v23 }
 0x1da   :  { %3125 = vmatmul.msk.bf16.gmra.mxu2 %vm79_vm0, %v1205_v62  ;;  %v753_v24 = vadd.f32 %v3903_v27, %v752_v7 }
 0x1db   :  { %3105 = vmatmul.msk.bf16.gmra.mxu1 %vm79_vm0, %v911_v13  ;;  %v1113_v45 = vmul.f32 0.2, %v1011_v34  ;;  %vm1081_vm8 = vcmp.ge.f32.partialorder %v1011_v34, 0.0 }
 0x1dc   :  { %v828_v5 = vmul.f32 0.2, %v753_v24  ;;  %vm796_vm9 = vcmp.ge.f32.partialorder %v753_v24, 0.0 }
 0x1dd   :  { %v1145_v39 = vsel %vm1081_vm8, %v1011_v34, %v1113_v45 }
 0x1de   :  { %v860_v1 = vsel %vm796_vm9, %v753_v24, %v828_v5  ;;  %v1177_v47 = vmul.f32 1.4142135, %v1145_v39 }
 0x1df   :  { %v892_v10 = vmul.f32 1.4142135, %v860_v1 }
 0x1e0   :  { %v1012_v21 = vpop.f32.mrf.mxu1 }
 0x1e1   :  { %v1013_v30 = vadd.f32 %v4177_v15, %v1012_v21  ;;  %v754_v58 = vpop.f32.mrf.mxu0 }
 0x1e2   :  { %v755_v63 = vadd.f32 %v3903_v27, %v754_v58 }
 0x1e3   :  { %vm1082_vm10 = vcmp.ge.f32.partialorder %v1013_v30, 0.0  ;;  %v1114_v2 = vmul.f32 0.2, %v1013_v30 }
 0x1e4   :  { %vm797_vm11 = vcmp.ge.f32.partialorder %v755_v63, 0.0  ;;  %v829_v59 = vmul.f32 0.2, %v755_v63 }
 0x1e5   :  { %v1146_v6 = vsel %vm1082_vm10, %v1013_v30, %v1114_v2 }
 0x1e6   :  { %v861_v11 = vsel %vm797_vm11, %v755_v63, %v829_v59  ;;  %v1178_v4 = vmul.f32 1.4142135, %v1146_v6  ;;  %v3375_v59 = vld [vmem:[%s4713_s2] ss:$0 sm:$0xff] }
 0x1e7   :  { %v893_v61 = vmul.f32 1.4142135, %v861_v11 }
 0x1e8   :  { %v1015_v51 = vpop.f32.mrf.mxu1  ;;  %v1206_v17 = vpack.c.bf16 %v1178_v4, %v1177_v47 }
 0x1e9   :  { %v757_v20 = vpop.f32.mrf.mxu0  ;;  %v912_v40 = vpack.c.bf16 %v893_v61, %v892_v10  ;;  %v1016_v36 = vadd.f32 %v4177_v15, %v1015_v51 }
 0x1ea   :  { %3126 = vmatmul.msk.bf16.gmra.mxu2 %vm79_vm0, %v1206_v17  ;;  %v758_v48 = vadd.f32 %v3903_v27, %v757_v20 }
 0x1eb   :  { %3106 = vmatmul.msk.bf16.gmra.mxu1 %vm79_vm0, %v912_v40  ;;  %v1115_v8 = vmul.f32 0.2, %v1016_v36  ;;  %vm1083_vm12 = vcmp.ge.f32.partialorder %v1016_v36, 0.0 }
 0x1ec   :  { %v830_v35 = vmul.f32 0.2, %v758_v48  ;;  %vm798_vm13 = vcmp.ge.f32.partialorder %v758_v48, 0.0 }
 0x1ed   :  { %v1147_v32 = vsel %vm1083_vm12, %v1016_v36, %v1115_v8 }
 0x1ee   :  { %v862_v43 = vsel %vm798_vm13, %v758_v48, %v830_v35  ;;  %v1179_v33 = vmul.f32 1.4142135, %v1147_v32 }
 0x1ef   :  { %v894_v57 = vmul.f32 1.4142135, %v862_v43 }
 0x1f0   :  { %v1017_v52 = vpop.f32.mrf.mxu1 }
 0x1f1   :  { %v1018_v56 = vadd.f32 %v4177_v15, %v1017_v52  ;;  %v759_v25 = vpop.f32.mrf.mxu0 }
 0x1f2   :  { %v760_v26 = vadd.f32 %v3903_v27, %v759_v25 }
 0x1f3   :  { %vm1084_vm14 = vcmp.ge.f32.partialorder %v1018_v56, 0.0  ;;  %v1116_v54 = vmul.f32 0.2, %v1018_v56 }
 0x1f4   :  { %vm799_vm15 = vcmp.ge.f32.partialorder %v760_v26, 0.0  ;;  %v831_v53 = vmul.f32 0.2, %v760_v26 }
 0x1f5   :  { %v1148_v55 = vsel %vm1084_vm14, %v1018_v56, %v1116_v54 }
 0x1f6   :  { %v863_v18 = vsel %vm799_vm15, %v760_v26, %v831_v53  ;;  %v1180_v19 = vmul.f32 1.4142135, %v1148_v55  ;;  %v3291_v55 = vld [vmem:[%s4712_s1 + $0x38] sm:$0xff] }
 0x1f7   :  { %v895_v3 = vmul.f32 1.4142135, %v863_v18  ;;  %1598 = vmatpush.bf16.msra.mxu3 %v3291_v55 }
 0x1f8   :  { %v1020_v9 = vpop.f32.mrf.mxu1  ;;  %v1207_v41 = vpack.c.bf16 %v1180_v19, %v1179_v33 }
 0x1f9   :  { %v762_v46 = vpop.f32.mrf.mxu0  ;;  %v913_v12 = vpack.c.bf16 %v895_v3, %v894_v57  ;;  %v1021_v49 = vadd.f32 %v4177_v15, %v1020_v9  ;;  %v3290_v57 = vld [vmem:[%s4712_s1 + $0x30] sm:$0xff] }
 0x1fa   :  { %3127 = vmatmul.msk.bf16.gmra.mxu2 %vm79_vm0, %v1207_v41  ;;  %v763_v37 = vadd.f32 %v3903_v27, %v762_v46 }
 0x1fb   :  { %3107 = vmatmul.msk.bf16.gmra.mxu1 %vm79_vm0, %v913_v12  ;;  %v1117_v31 = vmul.f32 0.2, %v1021_v49  ;;  %vm1085_vm1 = vcmp.ge.f32.partialorder %v1021_v49, 0.0  ;;  %1599 = vmatpush.bf16.msra.mxu3 %v3290_v57 }
 0x1fc   :  { %v832_v42 = vmul.f32 0.2, %v763_v37  ;;  %vm800_vm2 = vcmp.ge.f32.partialorder %v763_v37, 0.0 }
 0x1fd   :  { %v1149_v38 = vsel %vm1085_vm1, %v1021_v49, %v1117_v31 }
 0x1fe   :  { %v864_v16 = vsel %vm800_vm2, %v763_v37, %v832_v42  ;;  %v1181_v28 = vmul.f32 1.4142135, %v1149_v38 }
 0x1ff   :  { %v896_v7 = vmul.f32 1.4142135, %v864_v16 }
 0x200   :  { %v1022_v44 = vpop.f32.mrf.mxu1 }
 0x201   :  { %v1023_v29 = vadd.f32 %v4177_v15, %v1022_v44  ;;  %v764_v0 = vpop.f32.mrf.mxu0 }
 0x202   :  { %v765_v50 = vadd.f32 %v3903_v27, %v764_v0  ;;  %v4243_v0 = vld [vmem:[%s4713_s2 + $0x2] ss:$0 sm:$0xff] }
 0x203   :  { %vm1086_vm3 = vcmp.ge.f32.partialorder %v1023_v29, 0.0  ;;  %v1118_v60 = vmul.f32 0.2, %v1023_v29 }
 0x204   :  { %vm801_vm4 = vcmp.ge.f32.partialorder %v765_v50, 0.0  ;;  %v833_v14 = vmul.f32 0.2, %v765_v50 }
 0x205   :  { %v1150_v22 = vsel %vm1086_vm3, %v1023_v29, %v1118_v60 }
 0x206   :  { %v865_v23 = vsel %vm801_vm4, %v765_v50, %v833_v14  ;;  %v1182_v62 = vmul.f32 1.4142135, %v1150_v22 }
 0x207   :  { %v897_v13 = vmul.f32 1.4142135, %v865_v23  ;;  %v3292_v23 = vld [vmem:[%s4712_s1 + $0x40] sm:$0xff] }
 0x208   :  { %v1025_v34 = vpop.f32.mrf.mxu1  ;;  %v1208_v24 = vpack.c.bf16 %v1182_v62, %v1181_v28  ;;  %1902 = vmatpush.bf16.msrb.mxu0 %v3292_v23 }
 0x209   :  { %v767_v45 = vpop.f32.mrf.mxu0  ;;  %v914_v5 = vpack.c.bf16 %v897_v13, %v896_v7  ;;  %v1026_v21 = vadd.f32 %v4177_v15, %v1025_v34 }
 0x20a   :  { %3128 = vmatmul.msk.bf16.gmra.mxu2 %vm79_vm0, %v1208_v24  ;;  %v768_v30 = vadd.f32 %v3903_v27, %v767_v45 }
 0x20b   :  { %3108 = vmatmul.msk.bf16.gmra.mxu1 %vm79_vm0, %v914_v5  ;;  %v1119_v58 = vmul.f32 0.2, %v1026_v21  ;;  %vm1087_vm5 = vcmp.ge.f32.partialorder %v1026_v21, 0.0 }
 0x20c   :  { %v834_v63 = vmul.f32 0.2, %v768_v30  ;;  %vm802_vm6 = vcmp.ge.f32.partialorder %v768_v30, 0.0 }
 0x20d   :  { %v1151_v47 = vsel %vm1087_vm5, %v1026_v21, %v1119_v58 }
 0x20e   :  { %v866_v4 = vsel %vm802_vm6, %v768_v30, %v834_v63  ;;  %v1183_v61 = vmul.f32 1.4142135, %v1151_v47 }
 0x20f   :  { %v898_v20 = vmul.f32 1.4142135, %v866_v4 }
 0x210   :  { %v1027_v39 = vpop.f32.mrf.mxu1 }
 0x211   :  { %v1028_v2 = vadd.f32 %v4177_v15, %v1027_v39  ;;  %v769_v1 = vpop.f32.mrf.mxu0 }
 0x212   :  { %v770_v6 = vadd.f32 %v3375_v59, %v769_v1 }
 0x213   :  { %vm1088_vm7 = vcmp.ge.f32.partialorder %v1028_v2, 0.0  ;;  %v1120_v11 = vmul.f32 0.2, %v1028_v2 }
 0x214   :  { %vm803_vm8 = vcmp.ge.f32.partialorder %v770_v6, 0.0  ;;  %v835_v10 = vmul.f32 0.2, %v770_v6 }
 0x215   :  { %v1152_v27 = vsel %vm1088_vm7, %v1028_v2, %v1120_v11 }
 0x216   :  { %v867_v51 = vsel %vm803_vm8, %v770_v6, %v835_v10  ;;  %v1184_v17 = vmul.f32 1.4142135, %v1152_v27 }
 0x217   :  { %v899_v40 = vmul.f32 1.4142135, %v867_v51 }
 0x218   :  { %v1030_v36 = vpop.f32.mrf.mxu1  ;;  %v1209_v48 = vpack.c.bf16 %v1184_v17, %v1183_v61 }
 0x219   :  { %v915_v8 = vpack.c.bf16 %v899_v40, %v898_v20  ;;  %v1031_v35 = vadd.f32 %v4177_v15, %v1030_v36 }
 0x21a   :  { %3129 = vmatmul.msk.bf16.gmra.mxu2 %vm79_vm0, %v1209_v48 }
 0x21b   :  { %3109 = vmatmul.msk.bf16.gmra.mxu1 %vm79_vm0, %v915_v8  ;;  %v1121_v52 = vmul.f32 0.2, %v1031_v35  ;;  %vm1089_vm9 = vcmp.ge.f32.partialorder %v1031_v35, 0.0  ;;  %v3295_v8 = vld [vmem:[%s4712_s1 + $0x58] sm:$0xff] }
 0x21c   :  { %2204 = vmatpush.bf16.msrb.mxu1 %v3295_v8 }
 0x21d   :  { %v1153_v26 = vsel %vm1089_vm9, %v1031_v35, %v1121_v52 }
 0x21e   :  { %v1185_v43 = vmul.f32 1.4142135, %v1153_v26 }
 0x220   :  { %v1032_v56 = vpop.f32.mrf.mxu1 }
 0x221   :  { %v1033_v25 = vadd.f32 %v4177_v15, %v1032_v56 }
 0x223   :  { %vm1090_vm10 = vcmp.ge.f32.partialorder %v1033_v25, 0.0  ;;  %v1122_v32 = vmul.f32 0.2, %v1033_v25 }
 0x225   :  { %v1154_v54 = vsel %vm1090_vm10, %v1033_v25, %v1122_v32 }
 0x226   :  { %v1186_v53 = vmul.f32 1.4142135, %v1154_v54 }
 0x228   :  { %v1035_v33 = vpop.f32.mrf.mxu1  ;;  %v1210_v18 = vpack.c.bf16 %v1186_v53, %v1185_v43 }
 0x229   :  { %v1036_v19 = vadd.f32 %v4177_v15, %v1035_v33 }
 0x22a   :  { %3130 = vmatmul.msk.bf16.gmra.mxu2 %vm79_vm0, %v1210_v18 }
 0x22b   :  { %v1123_v3 = vmul.f32 0.2, %v1036_v19  ;;  %vm1091_vm11 = vcmp.ge.f32.partialorder %v1036_v19, 0.0 }
 0x22d   :  { %v1155_v46 = vsel %vm1091_vm11, %v1036_v19, %v1123_v3 }
 0x22e   :  { %v1187_v37 = vmul.f32 1.4142135, %v1155_v46 }
 0x230   :  { %v1037_v9 = vpop.f32.mrf.mxu1 }
 0x231   :  { %v1038_v41 = vadd.f32 %v4177_v15, %v1037_v9 }
 0x233   :  { %vm1092_vm12 = vcmp.ge.f32.partialorder %v1038_v41, 0.0  ;;  %v1124_v12 = vmul.f32 0.2, %v1038_v41 }
 0x235   :  { %v1156_v49 = vsel %vm1092_vm12, %v1038_v41, %v1124_v12 }
 0x236   :  { %v1188_v31 = vmul.f32 1.4142135, %v1156_v49 }
 0x238   :  { %v1040_v42 = vpop.f32.mrf.mxu1  ;;  %v1211_v44 = vpack.c.bf16 %v1188_v31, %v1187_v37 }
 0x239   :  { %v1041_v29 = vadd.f32 %v4177_v15, %v1040_v42 }
 0x23a   :  { %3131 = vmatmul.msk.bf16.gmra.mxu2 %vm79_vm0, %v1211_v44 }
 0x23b   :  { %v1125_v38 = vmul.f32 0.2, %v1041_v29  ;;  %vm1093_vm13 = vcmp.ge.f32.partialorder %v1041_v29, 0.0 }
 0x23d   :  { %v1298_v50 = vpop.f32.mrf.mxu2  ;;  %v1157_v22 = vsel %vm1093_vm13, %v1041_v29, %v1125_v38 }
 0x23e   :  { %v1299_v60 = vadd.f32 %v4243_v0, %v1298_v50  ;;  %v1189_v34 = vmul.f32 1.4142135, %v1157_v22 }
 0x240   :  { %v1042_v16 = vpop.f32.mrf.mxu1  ;;  %v1410_v62 = vmul.f32 0.2, %v1299_v60  ;;  %vm1378_vm15 = vcmp.ge.f32.partialorder %v1299_v60, 0.0 }
 0x241   :  { %v1043_v14 = vadd.f32 %v4177_v15, %v1042_v16 }
 0x242   :  { %v1442_v5 = vsel %vm1378_vm15, %v1299_v60, %v1410_v62 }
 0x243   :  { %vm1094_vm14 = vcmp.ge.f32.partialorder %v1043_v14, 0.0  ;;  %v1126_v28 = vmul.f32 0.2, %v1043_v14  ;;  %v1474_v39 = vmul.f32 1.4142135, %v1442_v5 }
 0x245   :  { %v1300_v7 = vpop.f32.mrf.mxu2  ;;  %v1158_v13 = vsel %vm1094_vm14, %v1043_v14, %v1126_v28 }
 0x246   :  { %v1301_v24 = vadd.f32 %v4243_v0, %v1300_v7  ;;  %v1190_v45 = vmul.f32 1.4142135, %v1158_v13 }
 0x248   :  { %vm1379_vm1 = vcmp.ge.f32.partialorder %v1301_v24, 0.0  ;;  %v1411_v21 = vmul.f32 0.2, %v1301_v24  ;;  %v1045_v30 = vpop.f32.mrf.mxu1  ;;  %v1212_v58 = vpack.c.bf16 %v1190_v45, %v1189_v34 }
 0x249   :  { %v1046_v2 = vadd.f32 %v4177_v15, %v1045_v30 }
 0x24a   :  { %3132 = vmatmul.msk.bf16.gmra.mxu2 %vm79_vm0, %v1212_v58  ;;  %v1443_v63 = vsel %vm1379_vm1, %v1301_v24, %v1411_v21 }
 0x24b   :  { %v1475_v1 = vmul.f32 1.4142135, %v1443_v63  ;;  %v1127_v47 = vmul.f32 0.2, %v1046_v2  ;;  %vm1095_vm2 = vcmp.ge.f32.partialorder %v1046_v2, 0.0 }
 0x24d   :  { %v1303_v59 = vpop.f32.mrf.mxu2  ;;  %v1506_v6 = vpack.c.bf16 %v1475_v1, %v1474_v39  ;;  %v1159_v27 = vsel %vm1095_vm2, %v1046_v2, %v1127_v47 }
 0x24e   :  { %v1304_v11 = vadd.f32 %v4243_v0, %v1303_v59  ;;  %v1191_v40 = vmul.f32 1.4142135, %v1159_v27 }
 0x24f   :  { %3152 = vmatmul.msk.bf16.vlgmr.msra.gmra.mxu3 %vm79_vm0, %v1506_v6 }
 0x250   :  { %v1047_v4 = vpop.f32.mrf.mxu1  ;;  %v1412_v51 = vmul.f32 0.2, %v1304_v11  ;;  %vm1380_vm4 = vcmp.ge.f32.partialorder %v1304_v11, 0.0 }
 0x251   :  { %v1048_v10 = vadd.f32 %v4177_v15, %v1047_v4 }
 0x252   :  { %v1444_v35 = vsel %vm1380_vm4, %v1304_v11, %v1412_v51 }
 0x253   :  { %vm1096_vm3 = vcmp.ge.f32.partialorder %v1048_v10, 0.0  ;;  %v1128_v61 = vmul.f32 0.2, %v1048_v10  ;;  %v1476_v32 = vmul.f32 1.4142135, %v1444_v35 }
 0x255   :  { %v1305_v17 = vpop.f32.mrf.mxu2  ;;  %v1160_v20 = vsel %vm1096_vm3, %v1048_v10, %v1128_v61 }
 0x256   :  { %v1306_v36 = vadd.f32 %v4243_v0, %v1305_v17  ;;  %v1192_v48 = vmul.f32 1.4142135, %v1160_v20 }
 0x258   :  { %vm1381_vm5 = vcmp.ge.f32.partialorder %v1306_v36, 0.0  ;;  %v1413_v52 = vmul.f32 0.2, %v1306_v36  ;;  %v1050_v56 = vpop.f32.mrf.mxu1  ;;  %v1213_v25 = vpack.c.bf16 %v1192_v48, %v1191_v40 }
 0x259   :  { %v1051_v54 = vadd.f32 %v4177_v15, %v1050_v56 }
 0x25a   :  { %3133 = vmatmul.msk.bf16.gmra.mxu2 %vm79_vm0, %v1213_v25  ;;  %v1445_v26 = vsel %vm1381_vm5, %v1306_v36, %v1413_v52 }
 0x25b   :  { %v1477_v43 = vmul.f32 1.4142135, %v1445_v26  ;;  %v1129_v33 = vmul.f32 0.2, %v1051_v54  ;;  %vm1097_vm6 = vcmp.ge.f32.partialorder %v1051_v54, 0.0 }
 0x25d   :  { %v1308_v53 = vpop.f32.mrf.mxu2  ;;  %v1507_v55 = vpack.c.bf16 %v1477_v43, %v1476_v32  ;;  %v1161_v3 = vsel %vm1097_vm6, %v1051_v54, %v1129_v33 }
 0x25e   :  { %v1309_v18 = vadd.f32 %v4243_v0, %v1308_v53  ;;  %v1193_v49 = vmul.f32 1.4142135, %v1161_v3 }
 0x25f   :  { %3153 = vmatmul.msk.bf16.gmra.mxu3 %vm79_vm0, %v1507_v55 }
 0x260   :  { %v1052_v19 = vpop.f32.mrf.mxu1  ;;  %v1414_v41 = vmul.f32 0.2, %v1309_v18  ;;  %vm1382_vm8 = vcmp.ge.f32.partialorder %v1309_v18, 0.0 }
 0x261   :  { %v1053_v57 = vadd.f32 %v4177_v15, %v1052_v19 }
 0x262   :  { %v1446_v42 = vsel %vm1382_vm8, %v1309_v18, %v1414_v41 }
 0x263   :  { %vm1098_vm7 = vcmp.ge.f32.partialorder %v1053_v57, 0.0  ;;  %v1130_v9 = vmul.f32 0.2, %v1053_v57  ;;  %v1478_v60 = vmul.f32 1.4142135, %v1446_v42 }
 0x265   :  { %v1310_v46 = vpop.f32.mrf.mxu2  ;;  %v1162_v12 = vsel %vm1098_vm7, %v1053_v57, %v1130_v9 }
 0x266   :  { %v1311_v37 = vadd.f32 %v4243_v0, %v1310_v46  ;;  %v1194_v31 = vmul.f32 1.4142135, %v1162_v12 }
 0x268   :  { %vm1383_vm9 = vcmp.ge.f32.partialorder %v1311_v37, 0.0  ;;  %v1415_v44 = vmul.f32 0.2, %v1311_v37  ;;  %v1055_v29 = vpop.f32.mrf.mxu1  ;;  %v1214_v50 = vpack.c.bf16 %v1194_v31, %v1193_v49 }
 0x269   :  { %v1056_v16 = vadd.f32 %v4177_v15, %v1055_v29 }
 0x26a   :  { %3134 = vmatmul.msk.bf16.gmra.mxu2 %vm79_vm0, %v1214_v50  ;;  %v1447_v38 = vsel %vm1383_vm9, %v1311_v37, %v1415_v44 }
 0x26b   :  { %v1479_v14 = vmul.f32 1.4142135, %v1447_v38  ;;  %v1131_v23 = vmul.f32 0.2, %v1056_v16  ;;  %vm1099_vm10 = vcmp.ge.f32.partialorder %v1056_v16, 0.0 }
 0x26d   :  { %v1313_v22 = vpop.f32.mrf.mxu2  ;;  %v1508_v28 = vpack.c.bf16 %v1479_v14, %v1478_v60  ;;  %v1163_v34 = vsel %vm1099_vm10, %v1056_v16, %v1131_v23 }
 0x26e   :  { %v1314_v62 = vadd.f32 %v4243_v0, %v1313_v22  ;;  %v1195_v30 = vmul.f32 1.4142135, %v1163_v34 }
 0x26f   :  { %3154 = vmatmul.msk.bf16.gmra.mxu3 %vm79_vm0, %v1508_v28 }
 0x270   :  { %v1057_v7 = vpop.f32.mrf.mxu1  ;;  %v1416_v45 = vmul.f32 0.2, %v1314_v62  ;;  %vm1384_vm12 = vcmp.ge.f32.partialorder %v1314_v62, 0.0 }
 0x271   :  { %v1058_v13 = vadd.f32 %v4177_v15, %v1057_v7 }
 0x272   :  { %v1448_v39 = vsel %vm1384_vm12, %v1314_v62, %v1416_v45 }
 0x273   :  { %vm1100_vm11 = vcmp.ge.f32.partialorder %v1058_v13, 0.0  ;;  %v1132_v24 = vmul.f32 0.2, %v1058_v13  ;;  %v1480_v47 = vmul.f32 1.4142135, %v1448_v39 }
 0x275   :  { %v1164_v5 = vsel %vm1100_vm11, %v1058_v13, %v1132_v24  ;;  %v1315_v21 = vpop.f32.mrf.mxu2 }
 0x276   :  { %v1196_v58 = vmul.f32 1.4142135, %v1164_v5  ;;  %v1316_v63 = vadd.f32 %v4243_v0, %v1315_v21 }
 0x278   :  { %vm1385_vm13 = vcmp.ge.f32.partialorder %v1316_v63, 0.0  ;;  %v1417_v2 = vmul.f32 0.2, %v1316_v63  ;;  %v1060_v1 = vpop.f32.mrf.mxu1  ;;  %v1215_v59 = vpack.c.bf16 %v1196_v58, %v1195_v30 }
 0x279   :  { %v1061_v11 = vadd.f32 %v4177_v15, %v1060_v1 }
 0x27a   :  { %3135 = vmatmul.msk.bf16.gmra.mxu2 %vm79_vm0, %v1215_v59  ;;  %v1449_v6 = vsel %vm1385_vm13, %v1316_v63, %v1417_v2 }
 0x27b   :  { %v1481_v4 = vmul.f32 1.4142135, %v1449_v6  ;;  %v1133_v61 = vmul.f32 0.2, %v1061_v11  ;;  %vm1101_vm14 = vcmp.ge.f32.partialorder %v1061_v11, 0.0 }
 0x27d   :  { %v1318_v10 = vpop.f32.mrf.mxu2  ;;  %v1509_v27 = vpack.c.bf16 %v1481_v4, %v1480_v47  ;;  %v1165_v40 = vsel %vm1101_vm14, %v1061_v11, %v1133_v61 }
 0x27e   :  { %v1319_v51 = vadd.f32 %v4243_v0, %v1318_v10  ;;  %v1197_v52 = vmul.f32 1.4142135, %v1165_v40 }
 0x27f   :  { %3155 = vmatmul.msk.bf16.gmra.mxu3 %vm79_vm0, %v1509_v27 }
 0x280   :  { %v1062_v17 = vpop.f32.mrf.mxu1  ;;  %v1418_v48 = vmul.f32 0.2, %v1319_v51  ;;  %vm1386_vm1 = vcmp.ge.f32.partialorder %v1319_v51, 0.0 }
 0x281   :  { %v1063_v20 = vadd.f32 %v4177_v15, %v1062_v17 }
 0x282   :  { %v1450_v26 = vsel %vm1386_vm1, %v1319_v51, %v1418_v48 }
 0x283   :  { %vm1102_vm15 = vcmp.ge.f32.partialorder %v1063_v20, 0.0  ;;  %v1134_v36 = vmul.f32 0.2, %v1063_v20  ;;  %v1482_v55 = vmul.f32 1.4142135, %v1450_v26 }
 0x285   :  { %v1166_v8 = vsel %vm1102_vm15, %v1063_v20, %v1134_v36  ;;  %v1320_v35 = vpop.f32.mrf.mxu2 }
 0x286   :  { %v1198_v56 = vmul.f32 1.4142135, %v1166_v8  ;;  %v1321_v25 = vadd.f32 %v4243_v0, %v1320_v35 }
 0x288   :  { %vm1387_vm2 = vcmp.ge.f32.partialorder %v1321_v25, 0.0  ;;  %v1419_v32 = vmul.f32 0.2, %v1321_v25  ;;  %v1065_v54 = vpop.f32.mrf.mxu1  ;;  %v1216_v43 = vpack.c.bf16 %v1198_v56, %v1197_v52 }
 0x289   :  { %v1066_v33 = vadd.f32 %v4177_v15, %v1065_v54 }
 0x28a   :  { %3136 = vmatmul.msk.bf16.gmra.mxu2 %vm79_vm0, %v1216_v43  ;;  %v1451_v53 = vsel %vm1387_vm2, %v1321_v25, %v1419_v32 }
 0x28b   :  { %v1483_v18 = vmul.f32 1.4142135, %v1451_v53  ;;  %v1135_v3 = vmul.f32 0.2, %v1066_v33  ;;  %vm1103_vm3 = vcmp.ge.f32.partialorder %v1066_v33, 0.0 }
 0x28d   :  { %v1323_v19 = vpop.f32.mrf.mxu2  ;;  %v1510_v57 = vpack.c.bf16 %v1483_v18, %v1482_v55  ;;  %v1167_v12 = vsel %vm1103_vm3, %v1066_v33, %v1135_v3 }
 0x28e   :  { %v1324_v9 = vadd.f32 %v4243_v0, %v1323_v19  ;;  %v1199_v44 = vmul.f32 1.4142135, %v1167_v12 }
 0x28f   :  { %3156 = vmatmul.msk.bf16.gmra.mxu3 %vm79_vm0, %v1510_v57 }
 0x290   :  { %v1067_v41 = vpop.f32.mrf.mxu1  ;;  %v1420_v37 = vmul.f32 0.2, %v1324_v9  ;;  %vm1388_vm5 = vcmp.ge.f32.partialorder %v1324_v9, 0.0 }
 0x291   :  { %v1068_v46 = vadd.f32 %v4177_v15, %v1067_v41  ;;  %v4302_v41 = vld [vmem:[%s4713_s2 + $0x3] ss:$0 sm:$0xff] }
 0x292   :  { %v1452_v38 = vsel %vm1388_vm5, %v1324_v9, %v1420_v37 }
 0x293   :  { %vm1104_vm4 = vcmp.ge.f32.partialorder %v1068_v46, 0.0  ;;  %v1136_v49 = vmul.f32 0.2, %v1068_v46  ;;  %v1484_v28 = vmul.f32 1.4142135, %v1452_v38 }
 0x295   :  { %v1168_v31 = vsel %vm1104_vm4, %v1068_v46, %v1136_v49  ;;  %v1325_v42 = vpop.f32.mrf.mxu2 }
 0x296   :  { %v1200_v29 = vmul.f32 1.4142135, %v1168_v31  ;;  %v1326_v50 = vadd.f32 %v4243_v0, %v1325_v42 }
 0x298   :  { %vm1389_vm6 = vcmp.ge.f32.partialorder %v1326_v50, 0.0  ;;  %v1421_v60 = vmul.f32 0.2, %v1326_v50  ;;  %v1070_v16 = vpop.f32.mrf.mxu1  ;;  %v1217_v14 = vpack.c.bf16 %v1200_v29, %v1199_v44  ;;  %v3294_v29 = vld [vmem:[%s4712_s1 + $0x50] sm:$0xff] }
 0x299   :  { %v1071_v23 = vadd.f32 %v4177_v15, %v1070_v16  ;;  %2205 = vmatpush.bf16.msrb.mxu1 %v3294_v29 }
 0x29a   :  { %3137 = vmatmul.msk.bf16.gmra.mxu2 %vm79_vm0, %v1217_v14  ;;  %v1453_v22 = vsel %vm1389_vm6, %v1326_v50, %v1421_v60 }
 0x29b   :  { %v1485_v62 = vmul.f32 1.4142135, %v1453_v22  ;;  %v1137_v34 = vmul.f32 0.2, %v1071_v23  ;;  %vm1105_vm7 = vcmp.ge.f32.partialorder %v1071_v23, 0.0 }
 0x29d   :  { %v1328_v7 = vpop.f32.mrf.mxu2  ;;  %v1511_v13 = vpack.c.bf16 %v1485_v62, %v1484_v28  ;;  %v1169_v21 = vsel %vm1105_vm7, %v1071_v23, %v1137_v34 }
 0x29e   :  { %v1329_v24 = vadd.f32 %v4243_v0, %v1328_v7  ;;  %v1201_v2 = vmul.f32 1.4142135, %v1169_v21 }
 0x29f   :  { %3157 = vmatmul.msk.bf16.gmra.mxu3 %vm79_vm0, %v1511_v13 }
 0x2a0   :  { %v1072_v45 = vpop.f32.mrf.mxu1  ;;  %v1422_v58 = vmul.f32 0.2, %v1329_v24  ;;  %vm1390_vm9 = vcmp.ge.f32.partialorder %v1329_v24, 0.0 }
 0x2a1   :  { %v1073_v5 = vadd.f32 %v4177_v15, %v1072_v45 }
 0x2a2   :  { %v1454_v6 = vsel %vm1390_vm9, %v1329_v24, %v1422_v58 }
 0x2a3   :  { %vm1106_vm8 = vcmp.ge.f32.partialorder %v1073_v5, 0.0  ;;  %v1138_v30 = vmul.f32 0.2, %v1073_v5  ;;  %v1486_v10 = vmul.f32 1.4142135, %v1454_v6 }
 0x2a5   :  { %v1170_v63 = vsel %vm1106_vm8, %v1073_v5, %v1138_v30  ;;  %v1330_v39 = vpop.f32.mrf.mxu2 }
 0x2a6   :  { %v1202_v1 = vmul.f32 1.4142135, %v1170_v63  ;;  %v1331_v59 = vadd.f32 %v4243_v0, %v1330_v39 }
 0x2a8   :  { %vm1391_vm10 = vcmp.ge.f32.partialorder %v1331_v59, 0.0  ;;  %v1423_v47 = vmul.f32 0.2, %v1331_v59  ;;  %v1218_v11 = vpack.c.bf16 %v1202_v1, %v1201_v2 }
 0x2aa   :  { %3138 = vmatmul.msk.bf16.gmra.mxu2 %vm79_vm0, %v1218_v11  ;;  %v1455_v4 = vsel %vm1391_vm10, %v1331_v59, %v1423_v47  ;;  %v3297_v59 = vld [vmem:[%s4712_s1 + $0x68] sm:$0xff] }
 0x2ab   :  { %v1487_v15 = vmul.f32 1.4142135, %v1455_v4  ;;  %2507 = vmatpush.bf16.msrb.mxu2 %v3297_v59 }
 0x2ad   :  { %v1333_v27 = vpop.f32.mrf.mxu2  ;;  %v1512_v61 = vpack.c.bf16 %v1487_v15, %v1486_v10 }
 0x2ae   :  { %v1334_v51 = vadd.f32 %v4243_v0, %v1333_v27 }
 0x2af   :  { %3158 = vmatmul.msk.bf16.gmra.mxu3 %vm79_vm0, %v1512_v61 }
 0x2b0   :  { %v1424_v17 = vmul.f32 0.2, %v1334_v51  ;;  %vm1392_vm11 = vcmp.ge.f32.partialorder %v1334_v51, 0.0 }
 0x2b2   :  { %v1456_v36 = vsel %vm1392_vm11, %v1334_v51, %v1424_v17 }
 0x2b3   :  { %v1488_v35 = vmul.f32 1.4142135, %v1456_v36 }
 0x2b5   :  { %v1335_v20 = vpop.f32.mrf.mxu2 }
 0x2b6   :  { %v1336_v40 = vadd.f32 %v4243_v0, %v1335_v20 }
 0x2b8   :  { %vm1393_vm12 = vcmp.ge.f32.partialorder %v1336_v40, 0.0  ;;  %v1425_v48 = vmul.f32 0.2, %v1336_v40 }
 0x2ba   :  { %v1457_v8 = vsel %vm1393_vm12, %v1336_v40, %v1425_v48 }
 0x2bb   :  { %v1489_v52 = vmul.f32 1.4142135, %v1457_v8 }
 0x2bd   :  { %v1338_v56 = vpop.f32.mrf.mxu2  ;;  %v1513_v25 = vpack.c.bf16 %v1489_v52, %v1488_v35 }
 0x2be   :  { %v1339_v26 = vadd.f32 %v4243_v0, %v1338_v56 }
 0x2bf   :  { %3159 = vmatmul.msk.bf16.gmra.mxu3 %vm79_vm0, %v1513_v25 }
 0x2c0   :  { %v1426_v32 = vmul.f32 0.2, %v1339_v26  ;;  %vm1394_vm13 = vcmp.ge.f32.partialorder %v1339_v26, 0.0 }
 0x2c2   :  { %v1458_v53 = vsel %vm1394_vm13, %v1339_v26, %v1426_v32 }
 0x2c3   :  { %v1490_v18 = vmul.f32 1.4142135, %v1458_v53 }
 0x2c5   :  { %v1340_v54 = vpop.f32.mrf.mxu2 }
 0x2c6   :  { %v1341_v43 = vadd.f32 %v4243_v0, %v1340_v54 }
 0x2c8   :  { %vm1395_vm14 = vcmp.ge.f32.partialorder %v1341_v43, 0.0  ;;  %v1427_v55 = vmul.f32 0.2, %v1341_v43 }
 0x2ca   :  { %v1459_v33 = vsel %vm1395_vm14, %v1341_v43, %v1427_v55 }
 0x2cb   :  { %v1491_v19 = vmul.f32 1.4142135, %v1459_v33 }
 0x2cd   :  { %v1343_v57 = vpop.f32.mrf.mxu2  ;;  %v1514_v3 = vpack.c.bf16 %v1491_v19, %v1490_v18 }
 0x2ce   :  { %v1344_v9 = vadd.f32 %v4243_v0, %v1343_v57 }
 0x2cf   :  { %3160 = vmatmul.msk.bf16.gmra.mxu3 %vm79_vm0, %v1514_v3 }
 0x2d0   :  { %v1428_v12 = vmul.f32 0.2, %v1344_v9  ;;  %vm1396_vm15 = vcmp.ge.f32.partialorder %v1344_v9, 0.0 }
 0x2d2   :  { %v1601_v46 = vpop.f32.mrf.mxu3  ;;  %v1460_v42 = vsel %vm1396_vm15, %v1344_v9, %v1428_v12 }
 0x2d3   :  { %v1602_v49 = vadd.f32 %v4302_v41, %v1601_v46  ;;  %v1492_v16 = vmul.f32 1.4142135, %v1460_v42 }
 0x2d5   :  { %v1345_v37 = vpop.f32.mrf.mxu2  ;;  %v1713_v50 = vmul.f32 0.2, %v1602_v49  ;;  %vm1681_vm2 = vcmp.ge.f32.partialorder %v1602_v49, 0.0 }
 0x2d6   :  { %v1346_v31 = vadd.f32 %v4243_v0, %v1345_v37 }
 0x2d7   :  { %v1745_v28 = vsel %vm1681_vm2, %v1602_v49, %v1713_v50 }
 0x2d8   :  { %vm1397_vm1 = vcmp.ge.f32.partialorder %v1346_v31, 0.0  ;;  %v1429_v44 = vmul.f32 0.2, %v1346_v31  ;;  %v1777_v34 = vmul.f32 1.4142135, %v1745_v28 }
 0x2da   :  { %v1603_v38 = vpop.f32.mrf.mxu3  ;;  %v1461_v60 = vsel %vm1397_vm1, %v1346_v31, %v1429_v44 }
 0x2db   :  { %v1604_v14 = vadd.f32 %v4302_v41, %v1603_v38  ;;  %v1493_v22 = vmul.f32 1.4142135, %v1461_v60 }
 0x2dd   :  { %vm1682_vm3 = vcmp.ge.f32.partialorder %v1604_v14, 0.0  ;;  %v1714_v23 = vmul.f32 0.2, %v1604_v14  ;;  %v1348_v62 = vpop.f32.mrf.mxu2  ;;  %v1515_v7 = vpack.c.bf16 %v1493_v22, %v1492_v16 }
 0x2de   :  { %v1349_v45 = vadd.f32 %v4243_v0, %v1348_v62 }
 0x2df   :  { %v1746_v13 = vsel %vm1682_vm3, %v1604_v14, %v1714_v23  ;;  %3161 = vmatmul.msk.bf16.gmra.mxu3 %vm79_vm0, %v1515_v7 }
 0x2e0   :  { %v1778_v24 = vmul.f32 1.4142135, %v1746_v13  ;;  %v1430_v30 = vmul.f32 0.2, %v1349_v45  ;;  %vm1398_vm4 = vcmp.ge.f32.partialorder %v1349_v45, 0.0 }
 0x2e2   :  { %v1809_v5 = vpack.c.bf16 %v1778_v24, %v1777_v34  ;;  %v1606_v21 = vpop.f32.mrf.mxu3  ;;  %v1462_v2 = vsel %vm1398_vm4, %v1349_v45, %v1430_v30 }
 0x2e3   :  { %v1607_v58 = vadd.f32 %v4302_v41, %v1606_v21  ;;  %v1494_v4 = vmul.f32 1.4142135, %v1462_v2 }
 0x2e4   :  { %3181 = vmatmul.msk.bf16.vlgmr.msrb.gmra.mxu0 %vm79_vm0, %v1809_v5 }
 0x2e5   :  { %v1350_v63 = vpop.f32.mrf.mxu2  ;;  %v1715_v6 = vmul.f32 0.2, %v1607_v58  ;;  %vm1683_vm6 = vcmp.ge.f32.partialorder %v1607_v58, 0.0 }
 0x2e6   :  { %v1351_v39 = vadd.f32 %v4243_v0, %v1350_v63 }
 0x2e7   :  { %v1747_v27 = vsel %vm1683_vm6, %v1607_v58, %v1715_v6 }
 0x2e8   :  { %vm1399_vm5 = vcmp.ge.f32.partialorder %v1351_v39, 0.0  ;;  %v1431_v1 = vmul.f32 0.2, %v1351_v39  ;;  %v1779_v40 = vmul.f32 1.4142135, %v1747_v27 }
 0x2ea   :  { %v1608_v47 = vpop.f32.mrf.mxu3  ;;  %v1463_v11 = vsel %vm1399_vm5, %v1351_v39, %v1431_v1 }
 0x2eb   :  { %v1609_v10 = vadd.f32 %v4302_v41, %v1608_v47  ;;  %v1495_v15 = vmul.f32 1.4142135, %v1463_v11 }
 0x2ed   :  { %vm1684_vm7 = vcmp.ge.f32.partialorder %v1609_v10, 0.0  ;;  %v1716_v61 = vmul.f32 0.2, %v1609_v10  ;;  %v1353_v51 = vpop.f32.mrf.mxu2  ;;  %v1516_v17 = vpack.c.bf16 %v1495_v15, %v1494_v4 }
 0x2ee   :  { %v1354_v48 = vadd.f32 %v4243_v0, %v1353_v51 }
 0x2ef   :  { %v1748_v20 = vsel %vm1684_vm7, %v1609_v10, %v1716_v61  ;;  %3162 = vmatmul.msk.bf16.gmra.mxu3 %vm79_vm0, %v1516_v17 }
 0x2f0   :  { %v1780_v36 = vmul.f32 1.4142135, %v1748_v20  ;;  %v1432_v52 = vmul.f32 0.2, %v1354_v48  ;;  %vm1400_vm8 = vcmp.ge.f32.partialorder %v1354_v48, 0.0 }
 0x2f2   :  { %v1611_v8 = vpop.f32.mrf.mxu3  ;;  %v1810_v35 = vpack.c.bf16 %v1780_v36, %v1779_v40  ;;  %v1464_v32 = vsel %vm1400_vm8, %v1354_v48, %v1432_v52 }
 0x2f3   :  { %v1612_v56 = vadd.f32 %v4302_v41, %v1611_v8  ;;  %v1496_v33 = vmul.f32 1.4142135, %v1464_v32 }
 0x2f4   :  { %3182 = vmatmul.msk.bf16.gmra.mxu0 %vm79_vm0, %v1810_v35 }
 0x2f5   :  { %v1355_v25 = vpop.f32.mrf.mxu2  ;;  %v1717_v43 = vmul.f32 0.2, %v1612_v56  ;;  %vm1685_vm10 = vcmp.ge.f32.partialorder %v1612_v56, 0.0 }
 0x2f6   :  { %v1356_v26 = vadd.f32 %v4243_v0, %v1355_v25 }
 0x2f7   :  { %v1749_v57 = vsel %vm1685_vm10, %v1612_v56, %v1717_v43 }
 0x2f8   :  { %vm1401_vm9 = vcmp.ge.f32.partialorder %v1356_v26, 0.0  ;;  %v1433_v54 = vmul.f32 0.2, %v1356_v26  ;;  %v1781_v49 = vmul.f32 1.4142135, %v1749_v57 }
 0x2fa   :  { %v1613_v53 = vpop.f32.mrf.mxu3  ;;  %v1465_v55 = vsel %vm1401_vm9, %v1356_v26, %v1433_v54 }
 0x2fb   :  { %v1614_v18 = vadd.f32 %v4302_v41, %v1613_v53  ;;  %v1497_v19 = vmul.f32 1.4142135, %v1465_v55 }
 0x2fd   :  { %vm1686_vm11 = vcmp.ge.f32.partialorder %v1614_v18, 0.0  ;;  %v1718_v3 = vmul.f32 0.2, %v1614_v18  ;;  %v1358_v9 = vpop.f32.mrf.mxu2  ;;  %v1517_v46 = vpack.c.bf16 %v1497_v19, %v1496_v33 }
 0x2fe   :  { %v1359_v31 = vadd.f32 %v4243_v0, %v1358_v9 }
 0x2ff   :  { %v1750_v12 = vsel %vm1686_vm11, %v1614_v18, %v1718_v3  ;;  %3163 = vmatmul.msk.bf16.gmra.mxu3 %vm79_vm0, %v1517_v46 }
 0x300   :  { %v1782_v37 = vmul.f32 1.4142135, %v1750_v12  ;;  %v1434_v29 = vmul.f32 0.2, %v1359_v31  ;;  %vm1402_vm12 = vcmp.ge.f32.partialorder %v1359_v31, 0.0 }
 0x302   :  { %v1616_v42 = vpop.f32.mrf.mxu3  ;;  %v1811_v44 = vpack.c.bf16 %v1782_v37, %v1781_v49  ;;  %v1466_v16 = vsel %vm1402_vm12, %v1359_v31, %v1434_v29 }
 0x303   :  { %v1617_v50 = vadd.f32 %v4302_v41, %v1616_v42  ;;  %v1498_v62 = vmul.f32 1.4142135, %v1466_v16 }
 0x304   :  { %3183 = vmatmul.msk.bf16.gmra.mxu0 %vm79_vm0, %v1811_v44 }
 0x305   :  { %v1360_v38 = vpop.f32.mrf.mxu2  ;;  %v1719_v22 = vmul.f32 0.2, %v1617_v50  ;;  %vm1687_vm14 = vcmp.ge.f32.partialorder %v1617_v50, 0.0 }
 0x306   :  { %v1361_v60 = vadd.f32 %v4243_v0, %v1360_v38 }
 0x307   :  { %v1751_v34 = vsel %vm1687_vm14, %v1617_v50, %v1719_v22 }
 0x308   :  { %vm1403_vm13 = vcmp.ge.f32.partialorder %v1361_v60, 0.0  ;;  %v1435_v14 = vmul.f32 0.2, %v1361_v60  ;;  %v1783_v30 = vmul.f32 1.4142135, %v1751_v34 }
 0x30a   :  { %v1467_v28 = vsel %vm1403_vm13, %v1361_v60, %v1435_v14  ;;  %v1618_v23 = vpop.f32.mrf.mxu3 }
 0x30b   :  { %v1499_v7 = vmul.f32 1.4142135, %v1467_v28  ;;  %v1619_v13 = vadd.f32 %v4302_v41, %v1618_v23 }
 0x30d   :  { %vm1688_vm15 = vcmp.ge.f32.partialorder %v1619_v13, 0.0  ;;  %v1720_v24 = vmul.f32 0.2, %v1619_v13  ;;  %v1363_v45 = vpop.f32.mrf.mxu2  ;;  %v1518_v5 = vpack.c.bf16 %v1499_v7, %v1498_v62 }
 0x30e   :  { %v1364_v63 = vadd.f32 %v4243_v0, %v1363_v45 }
 0x30f   :  { %v1752_v21 = vsel %vm1688_vm15, %v1619_v13, %v1720_v24  ;;  %3164 = vmatmul.msk.bf16.gmra.mxu3 %vm79_vm0, %v1518_v5 }
 0x310   :  { %v1784_v58 = vmul.f32 1.4142135, %v1752_v21  ;;  %v1436_v1 = vmul.f32 0.2, %v1364_v63  ;;  %vm1404_vm1 = vcmp.ge.f32.partialorder %v1364_v63, 0.0 }
 0x312   :  { %v1621_v39 = vpop.f32.mrf.mxu3  ;;  %v1812_v2 = vpack.c.bf16 %v1784_v58, %v1783_v30  ;;  %v1468_v11 = vsel %vm1404_vm1, %v1364_v63, %v1436_v1 }
 0x313   :  { %v1622_v59 = vadd.f32 %v4302_v41, %v1621_v39  ;;  %v1500_v61 = vmul.f32 1.4142135, %v1468_v11 }
 0x314   :  { %3184 = vmatmul.msk.bf16.gmra.mxu0 %vm79_vm0, %v1812_v2 }
 0x315   :  { %v1365_v6 = vpop.f32.mrf.mxu2  ;;  %v1721_v10 = vmul.f32 0.2, %v1622_v59  ;;  %vm1689_vm3 = vcmp.ge.f32.partialorder %v1622_v59, 0.0 }
 0x316   :  { %v1366_v47 = vadd.f32 %v4243_v0, %v1365_v6 }
 0x317   :  { %v1753_v20 = vsel %vm1689_vm3, %v1622_v59, %v1721_v10 }
 0x318   :  { %vm1405_vm2 = vcmp.ge.f32.partialorder %v1366_v47, 0.0  ;;  %v1437_v4 = vmul.f32 0.2, %v1366_v47  ;;  %v1785_v35 = vmul.f32 1.4142135, %v1753_v20 }
 0x31a   :  { %v1469_v15 = vsel %vm1405_vm2, %v1366_v47, %v1437_v4  ;;  %v1623_v27 = vpop.f32.mrf.mxu3 }
 0x31b   :  { %v1501_v51 = vmul.f32 1.4142135, %v1469_v15  ;;  %v1624_v17 = vadd.f32 %v4302_v41, %v1623_v27 }
 0x31d   :  { %vm1690_vm4 = vcmp.ge.f32.partialorder %v1624_v17, 0.0  ;;  %v1722_v40 = vmul.f32 0.2, %v1624_v17  ;;  %v1368_v36 = vpop.f32.mrf.mxu2  ;;  %v1519_v48 = vpack.c.bf16 %v1501_v51, %v1500_v61 }
 0x31e   :  { %v1369_v56 = vadd.f32 %v4243_v0, %v1368_v36 }
 0x31f   :  { %v1754_v8 = vsel %vm1690_vm4, %v1624_v17, %v1722_v40  ;;  %3165 = vmatmul.msk.bf16.gmra.mxu3 %vm79_vm0, %v1519_v48 }
 0x320   :  { %v1786_v52 = vmul.f32 1.4142135, %v1754_v8  ;;  %v1438_v32 = vmul.f32 0.2, %v1369_v56  ;;  %vm1406_vm5 = vcmp.ge.f32.partialorder %v1369_v56, 0.0 }
 0x322   :  { %v1626_v25 = vpop.f32.mrf.mxu3  ;;  %v1813_v26 = vpack.c.bf16 %v1786_v52, %v1785_v35  ;;  %v1470_v55 = vsel %vm1406_vm5, %v1369_v56, %v1438_v32 }
 0x323   :  { %v1627_v54 = vadd.f32 %v4302_v41, %v1626_v25  ;;  %v1502_v3 = vmul.f32 1.4142135, %v1470_v55 }
 0x324   :  { %3185 = vmatmul.msk.bf16.gmra.mxu0 %vm79_vm0, %v1813_v26  ;;  %v4359_v26 = vld [vmem:[%s4713_s2 + $0x4] ss:$0 sm:$0xff] }
 0x325   :  { %v1370_v43 = vpop.f32.mrf.mxu2  ;;  %v1723_v18 = vmul.f32 0.2, %v1627_v54  ;;  %vm1691_vm7 = vcmp.ge.f32.partialorder %v1627_v54, 0.0 }
 0x326   :  { %v1371_v53 = vadd.f32 %v4243_v0, %v1370_v43 }
 0x327   :  { %v1755_v12 = vsel %vm1691_vm7, %v1627_v54, %v1723_v18  ;;  %v3296_v18 = vld [vmem:[%s4712_s1 + $0x60] sm:$0xff] }
 0x328   :  { %vm1407_vm6 = vcmp.ge.f32.partialorder %v1371_v53, 0.0  ;;  %v1439_v33 = vmul.f32 0.2, %v1371_v53  ;;  %v1787_v44 = vmul.f32 1.4142135, %v1755_v12  ;;  %2508 = vmatpush.bf16.msrb.mxu2 %v3296_v18 }
 0x32a   :  { %v1471_v19 = vsel %vm1407_vm6, %v1371_v53, %v1439_v33  ;;  %v1628_v57 = vpop.f32.mrf.mxu3 }
 0x32b   :  { %v1503_v9 = vmul.f32 1.4142135, %v1471_v19  ;;  %v1629_v46 = vadd.f32 %v4302_v41, %v1628_v57 }
 0x32d   :  { %vm1692_vm8 = vcmp.ge.f32.partialorder %v1629_v46, 0.0  ;;  %v1724_v49 = vmul.f32 0.2, %v1629_v46  ;;  %v1373_v37 = vpop.f32.mrf.mxu2  ;;  %v1520_v31 = vpack.c.bf16 %v1503_v9, %v1502_v3 }
 0x32e   :  { %v1374_v50 = vadd.f32 %v4243_v0, %v1373_v37 }
 0x32f   :  { %v1756_v42 = vsel %vm1692_vm8, %v1629_v46, %v1724_v49  ;;  %3166 = vmatmul.msk.bf16.gmra.mxu3 %vm79_vm0, %v1520_v31 }
 0x330   :  { %v1788_v29 = vmul.f32 1.4142135, %v1756_v42  ;;  %v1440_v16 = vmul.f32 0.2, %v1374_v50  ;;  %vm1408_vm9 = vcmp.ge.f32.partialorder %v1374_v50, 0.0 }
 0x332   :  { %v1631_v38 = vpop.f32.mrf.mxu3  ;;  %v1814_v60 = vpack.c.bf16 %v1788_v29, %v1787_v44  ;;  %v1472_v23 = vsel %vm1408_vm9, %v1374_v50, %v1440_v16 }
 0x333   :  { %v1632_v14 = vadd.f32 %v4302_v41, %v1631_v38  ;;  %v1504_v24 = vmul.f32 1.4142135, %v1472_v23 }
 0x334   :  { %3186 = vmatmul.msk.bf16.gmra.mxu0 %vm79_vm0, %v1814_v60 }
 0x335   :  { %v1375_v22 = vpop.f32.mrf.mxu2  ;;  %v1725_v7 = vmul.f32 0.2, %v1632_v14  ;;  %vm1693_vm11 = vcmp.ge.f32.partialorder %v1632_v14, 0.0 }
 0x336   :  { %v1376_v28 = vadd.f32 %v4243_v0, %v1375_v22 }
 0x337   :  { %v1757_v21 = vsel %vm1693_vm11, %v1632_v14, %v1725_v7 }
 0x338   :  { %vm1409_vm10 = vcmp.ge.f32.partialorder %v1376_v28, 0.0  ;;  %v1441_v62 = vmul.f32 0.2, %v1376_v28  ;;  %v1789_v39 = vmul.f32 1.4142135, %v1757_v21 }
 0x33a   :  { %v1473_v13 = vsel %vm1409_vm10, %v1376_v28, %v1441_v62  ;;  %v1633_v34 = vpop.f32.mrf.mxu3 }
 0x33b   :  { %v1505_v45 = vmul.f32 1.4142135, %v1473_v13  ;;  %v1634_v5 = vadd.f32 %v4302_v41, %v1633_v34  ;;  %v3299_v13 = vld [vmem:[%s4712_s1 + $0x78] sm:$0xff] }
 0x33c   :  { %2810 = vmatpush.bf16.msrb.mxu3 %v3299_v13 }
 0x33d   :  { %vm1694_vm12 = vcmp.ge.f32.partialorder %v1634_v5, 0.0  ;;  %v1726_v30 = vmul.f32 0.2, %v1634_v5  ;;  %v1521_v58 = vpack.c.bf16 %v1505_v45, %v1504_v24 }
 0x33f   :  { %v1758_v63 = vsel %vm1694_vm12, %v1634_v5, %v1726_v30  ;;  %3167 = vmatmul.msk.bf16.gmra.mxu3 %vm79_vm0, %v1521_v58 }
 0x340   :  { %v1790_v0 = vmul.f32 1.4142135, %v1758_v63 }
 0x342   :  { %v1636_v2 = vpop.f32.mrf.mxu3  ;;  %v1815_v1 = vpack.c.bf16 %v1790_v0, %v1789_v39 }
 0x343   :  { %v1637_v59 = vadd.f32 %v4302_v41, %v1636_v2 }
 0x344   :  { %3187 = vmatmul.msk.bf16.gmra.mxu0 %vm79_vm0, %v1815_v1 }
 0x345   :  { %v1727_v6 = vmul.f32 0.2, %v1637_v59  ;;  %vm1695_vm13 = vcmp.ge.f32.partialorder %v1637_v59, 0.0 }
 0x347   :  { %v1759_v4 = vsel %vm1695_vm13, %v1637_v59, %v1727_v6 }
 0x348   :  { %v1791_v27 = vmul.f32 1.4142135, %v1759_v4 }
 0x34a   :  { %v1638_v47 = vpop.f32.mrf.mxu3 }
 0x34b   :  { %v1639_v11 = vadd.f32 %v4302_v41, %v1638_v47 }
 0x34d   :  { %vm1696_vm14 = vcmp.ge.f32.partialorder %v1639_v11, 0.0  ;;  %v1728_v10 = vmul.f32 0.2, %v1639_v11 }
 0x34f   :  { %v1760_v15 = vsel %vm1696_vm14, %v1639_v11, %v1728_v10 }
 0x350   :  { %v1792_v61 = vmul.f32 1.4142135, %v1760_v15 }
 0x352   :  { %v1641_v51 = vpop.f32.mrf.mxu3  ;;  %v1816_v17 = vpack.c.bf16 %v1792_v61, %v1791_v27 }
 0x353   :  { %v1642_v20 = vadd.f32 %v4302_v41, %v1641_v51 }
 0x354   :  { %3188 = vmatmul.msk.bf16.gmra.mxu0 %vm79_vm0, %v1816_v17 }
 0x355   :  { %v1729_v40 = vmul.f32 0.2, %v1642_v20  ;;  %vm1697_vm15 = vcmp.ge.f32.partialorder %v1642_v20, 0.0 }
 0x357   :  { %v1761_v8 = vsel %vm1697_vm15, %v1642_v20, %v1729_v40 }
 0x358   :  { %v1793_v56 = vmul.f32 1.4142135, %v1761_v8 }
 0x35a   :  { %v1643_v36 = vpop.f32.mrf.mxu3 }
 0x35b   :  { %v1644_v48 = vadd.f32 %v4302_v41, %v1643_v36 }
 0x35d   :  { %vm1698_vm1 = vcmp.ge.f32.partialorder %v1644_v48, 0.0  ;;  %v1730_v35 = vmul.f32 0.2, %v1644_v48 }
 0x35f   :  { %v1762_v52 = vsel %vm1698_vm1, %v1644_v48, %v1730_v35 }
 0x360   :  { %v1794_v25 = vmul.f32 1.4142135, %v1762_v52 }
 0x361   :  { %v1904_v32 = vpop.f32.mrf.mxu0 }
 0x362   :  { %v1646_v54 = vpop.f32.mrf.mxu3  ;;  %v1817_v43 = vpack.c.bf16 %v1794_v25, %v1793_v56  ;;  %v1905_v53 = vadd.f32 %v4359_v26, %v1904_v32 }
 0x363   :  { %v1647_v55 = vadd.f32 %v4302_v41, %v1646_v54 }
 0x364   :  { %3189 = vmatmul.msk.bf16.gmra.mxu0 %vm79_vm0, %v1817_v43  ;;  %v2016_v33 = vmul.f32 0.2, %v1905_v53  ;;  %vm1984_vm2 = vcmp.ge.f32.partialorder %v1905_v53, 0.0 }
 0x365   :  { %v1731_v19 = vmul.f32 0.2, %v1647_v55  ;;  %vm1699_vm3 = vcmp.ge.f32.partialorder %v1647_v55, 0.0 }
 0x366   :  { %v2048_v12 = vsel %vm1984_vm2, %v1905_v53, %v2016_v33 }
 0x367   :  { %v1763_v37 = vsel %vm1699_vm3, %v1647_v55, %v1731_v19  ;;  %v2080_v44 = vmul.f32 1.4142135, %v2048_v12 }
 0x368   :  { %v1795_v38 = vmul.f32 1.4142135, %v1763_v37 }
 0x369   :  { %v1906_v57 = vpop.f32.mrf.mxu0 }
 0x36a   :  { %v1907_v3 = vadd.f32 %v4359_v26, %v1906_v57  ;;  %v1648_v9 = vpop.f32.mrf.mxu3 }
 0x36b   :  { %v1649_v46 = vadd.f32 %v4302_v41, %v1648_v9 }
 0x36c   :  { %vm1985_vm4 = vcmp.ge.f32.partialorder %v1907_v3, 0.0  ;;  %v2017_v49 = vmul.f32 0.2, %v1907_v3 }
 0x36d   :  { %vm1700_vm5 = vcmp.ge.f32.partialorder %v1649_v46, 0.0  ;;  %v1732_v31 = vmul.f32 0.2, %v1649_v46 }
 0x36e   :  { %v2049_v42 = vsel %vm1985_vm4, %v1907_v3, %v2017_v49 }
 0x36f   :  { %v2081_v29 = vmul.f32 1.4142135, %v2049_v42  ;;  %v1764_v50 = vsel %vm1700_vm5, %v1649_v46, %v1732_v31 }
 0x370   :  { %v1796_v60 = vmul.f32 1.4142135, %v1764_v50 }
 0x371   :  { %v2112_v16 = vpack.c.bf16 %v2081_v29, %v2080_v44  ;;  %v1909_v14 = vpop.f32.mrf.mxu0 }
 0x372   :  { %v1651_v22 = vpop.f32.mrf.mxu3  ;;  %v1818_v28 = vpack.c.bf16 %v1796_v60, %v1795_v38  ;;  %v1910_v23 = vadd.f32 %v4359_v26, %v1909_v14 }
 0x373   :  { %3210 = vmatmul.msk.bf16.vlgmr.msrb.gmra.mxu1 %vm79_vm0, %v2112_v16  ;;  %v1652_v62 = vadd.f32 %v4302_v41, %v1651_v22 }
 0x374   :  { %3190 = vmatmul.msk.bf16.gmra.mxu0 %vm79_vm0, %v1818_v28  ;;  %v2018_v7 = vmul.f32 0.2, %v1910_v23  ;;  %vm1986_vm6 = vcmp.ge.f32.partialorder %v1910_v23, 0.0 }
 0x375   :  { %v1733_v34 = vmul.f32 0.2, %v1652_v62  ;;  %vm1701_vm7 = vcmp.ge.f32.partialorder %v1652_v62, 0.0 }
 0x376   :  { %v2050_v30 = vsel %vm1986_vm6, %v1910_v23, %v2018_v7 }
 0x377   :  { %v1765_v63 = vsel %vm1701_vm7, %v1652_v62, %v1733_v34  ;;  %v2082_v2 = vmul.f32 1.4142135, %v2050_v30 }
 0x378   :  { %v1797_v6 = vmul.f32 1.4142135, %v1765_v63 }
 0x379   :  { %v1911_v24 = vpop.f32.mrf.mxu0 }
 0x37a   :  { %v1912_v45 = vadd.f32 %v4359_v26, %v1911_v24  ;;  %v1653_v5 = vpop.f32.mrf.mxu3 }
 0x37b   :  { %v1654_v21 = vadd.f32 %v4302_v41, %v1653_v5 }
 0x37c   :  { %vm1987_vm8 = vcmp.ge.f32.partialorder %v1912_v45, 0.0  ;;  %v2019_v58 = vmul.f32 0.2, %v1912_v45 }
 0x37d   :  { %vm1702_vm9 = vcmp.ge.f32.partialorder %v1654_v21, 0.0  ;;  %v1734_v39 = vmul.f32 0.2, %v1654_v21 }
 0x37e   :  { %v2051_v0 = vsel %vm1987_vm8, %v1912_v45, %v2019_v58 }
 0x37f   :  { %v2083_v1 = vmul.f32 1.4142135, %v2051_v0  ;;  %v1766_v59 = vsel %vm1702_vm9, %v1654_v21, %v1734_v39 }
 0x380   :  { %v1798_v47 = vmul.f32 1.4142135, %v1766_v59 }
 0x381   :  { %v1914_v11 = vpop.f32.mrf.mxu0  ;;  %v2113_v4 = vpack.c.bf16 %v2083_v1, %v2082_v2 }
 0x382   :  { %v1656_v10 = vpop.f32.mrf.mxu3  ;;  %v1819_v15 = vpack.c.bf16 %v1798_v47, %v1797_v6  ;;  %v1915_v27 = vadd.f32 %v4359_v26, %v1914_v11 }
 0x383   :  { %3211 = vmatmul.msk.bf16.gmra.mxu1 %vm79_vm0, %v2113_v4  ;;  %v1657_v61 = vadd.f32 %v4302_v41, %v1656_v10 }
 0x384   :  { %3191 = vmatmul.msk.bf16.gmra.mxu0 %vm79_vm0, %v1819_v15  ;;  %v2020_v51 = vmul.f32 0.2, %v1915_v27  ;;  %vm1988_vm10 = vcmp.ge.f32.partialorder %v1915_v27, 0.0 }
 0x385   :  { %v1735_v17 = vmul.f32 0.2, %v1657_v61  ;;  %vm1703_vm11 = vcmp.ge.f32.partialorder %v1657_v61, 0.0 }
 0x386   :  { %v2052_v8 = vsel %vm1988_vm10, %v1915_v27, %v2020_v51 }
 0x387   :  { %v1767_v52 = vsel %vm1703_vm11, %v1657_v61, %v1735_v17  ;;  %v2084_v32 = vmul.f32 1.4142135, %v2052_v8 }
 0x388   :  { %v1799_v53 = vmul.f32 1.4142135, %v1767_v52 }
 0x389   :  { %v1916_v20 = vpop.f32.mrf.mxu0 }
 0x38a   :  { %v1917_v40 = vadd.f32 %v4359_v26, %v1916_v20  ;;  %v1658_v36 = vpop.f32.mrf.mxu3 }
 0x38b   :  { %v1659_v48 = vadd.f32 %v4302_v41, %v1658_v36 }
 0x38c   :  { %vm1989_vm12 = vcmp.ge.f32.partialorder %v1917_v40, 0.0  ;;  %v2021_v35 = vmul.f32 0.2, %v1917_v40 }
 0x38d   :  { %vm1704_vm13 = vcmp.ge.f32.partialorder %v1659_v48, 0.0  ;;  %v1736_v56 = vmul.f32 0.2, %v1659_v48 }
 0x38e   :  { %v2053_v25 = vsel %vm1989_vm12, %v1917_v40, %v2021_v35 }
 0x38f   :  { %v2085_v54 = vmul.f32 1.4142135, %v2053_v25  ;;  %v1768_v43 = vsel %vm1704_vm13, %v1659_v48, %v1736_v56 }
 0x390   :  { %v1800_v55 = vmul.f32 1.4142135, %v1768_v43 }
 0x391   :  { %v1919_v33 = vpop.f32.mrf.mxu0  ;;  %v2114_v18 = vpack.c.bf16 %v2085_v54, %v2084_v32 }
 0x392   :  { %v1661_v19 = vpop.f32.mrf.mxu3  ;;  %v1820_v57 = vpack.c.bf16 %v1800_v55, %v1799_v53  ;;  %v1920_v3 = vadd.f32 %v4359_v26, %v1919_v33 }
 0x393   :  { %3212 = vmatmul.msk.bf16.gmra.mxu1 %vm79_vm0, %v2114_v18  ;;  %v1662_v9 = vadd.f32 %v4302_v41, %v1661_v19 }
 0x394   :  { %3192 = vmatmul.msk.bf16.gmra.mxu0 %vm79_vm0, %v1820_v57  ;;  %v2022_v46 = vmul.f32 0.2, %v1920_v3  ;;  %vm1990_vm14 = vcmp.ge.f32.partialorder %v1920_v3, 0.0 }
 0x395   :  { %v1737_v12 = vmul.f32 0.2, %v1662_v9  ;;  %vm1705_vm15 = vcmp.ge.f32.partialorder %v1662_v9, 0.0 }
 0x396   :  { %v2054_v44 = vsel %vm1990_vm14, %v1920_v3, %v2022_v46 }
 0x397   :  { %v1769_v50 = vsel %vm1705_vm15, %v1662_v9, %v1737_v12  ;;  %v2086_v16 = vmul.f32 1.4142135, %v2054_v44 }
 0x398   :  { %v1801_v28 = vmul.f32 1.4142135, %v1769_v50 }
 0x399   :  { %v1921_v49 = vpop.f32.mrf.mxu0 }
 0x39a   :  { %v1922_v37 = vadd.f32 %v4359_v26, %v1921_v49  ;;  %v1663_v31 = vpop.f32.mrf.mxu3 }
 0x39b   :  { %v1664_v42 = vadd.f32 %v4302_v41, %v1663_v31 }
 0x39c   :  { %vm1991_vm1 = vcmp.ge.f32.partialorder %v1922_v37, 0.0  ;;  %v2023_v29 = vmul.f32 0.2, %v1922_v37 }
 0x39d   :  { %vm1706_vm2 = vcmp.ge.f32.partialorder %v1664_v42, 0.0  ;;  %v1738_v38 = vmul.f32 0.2, %v1664_v42 }
 0x39e   :  { %v2055_v60 = vsel %vm1991_vm1, %v1922_v37, %v2023_v29 }
 0x39f   :  { %v2087_v14 = vmul.f32 1.4142135, %v2055_v60  ;;  %v1770_v22 = vsel %vm1706_vm2, %v1664_v42, %v1738_v38 }
 0x3a0   :  { %v1802_v23 = vmul.f32 1.4142135, %v1770_v22 }
 0x3a1   :  { %v1924_v62 = vpop.f32.mrf.mxu0  ;;  %v2115_v7 = vpack.c.bf16 %v2087_v14, %v2086_v16 }
 0x3a2   :  { %v1666_v13 = vpop.f32.mrf.mxu3  ;;  %v1821_v34 = vpack.c.bf16 %v1802_v23, %v1801_v28  ;;  %v1925_v24 = vadd.f32 %v4359_v26, %v1924_v62 }
 0x3a3   :  { %3213 = vmatmul.msk.bf16.gmra.mxu1 %vm79_vm0, %v2115_v7  ;;  %v1667_v45 = vadd.f32 %v4302_v41, %v1666_v13 }
 0x3a4   :  { %3193 = vmatmul.msk.bf16.gmra.mxu0 %vm79_vm0, %v1821_v34  ;;  %v2024_v5 = vmul.f32 0.2, %v1925_v24  ;;  %vm1992_vm3 = vcmp.ge.f32.partialorder %v1925_v24, 0.0 }
 0x3a5   :  { %v1739_v21 = vmul.f32 0.2, %v1667_v45  ;;  %vm1707_vm4 = vcmp.ge.f32.partialorder %v1667_v45, 0.0 }
 0x3a6   :  { %v2056_v0 = vsel %vm1992_vm3, %v1925_v24, %v2024_v5 }
 0x3a7   :  { %v1771_v1 = vsel %vm1707_vm4, %v1667_v45, %v1739_v21  ;;  %v2088_v47 = vmul.f32 1.4142135, %v2056_v0 }
 0x3a8   :  { %v1803_v10 = vmul.f32 1.4142135, %v1771_v1 }
 0x3a9   :  { %v1926_v30 = vpop.f32.mrf.mxu0 }
 0x3aa   :  { %v1927_v58 = vadd.f32 %v4359_v26, %v1926_v30  ;;  %v1668_v63 = vpop.f32.mrf.mxu3 }
 0x3ab   :  { %v1669_v39 = vadd.f32 %v4302_v41, %v1668_v63 }
 0x3ac   :  { %vm1993_vm5 = vcmp.ge.f32.partialorder %v1927_v58, 0.0  ;;  %v2025_v2 = vmul.f32 0.2, %v1927_v58 }
 0x3ad   :  { %vm1708_vm6 = vcmp.ge.f32.partialorder %v1669_v39, 0.0  ;;  %v1740_v59 = vmul.f32 0.2, %v1669_v39 }
 0x3ae   :  { %v2057_v6 = vsel %vm1993_vm5, %v1927_v58, %v2025_v2 }
 0x3af   :  { %v2089_v11 = vmul.f32 1.4142135, %v2057_v6  ;;  %v1772_v4 = vsel %vm1708_vm6, %v1669_v39, %v1740_v59 }
 0x3b0   :  { %v1804_v15 = vmul.f32 1.4142135, %v1772_v4 }
 0x3b1   :  { %v2116_v27 = vpack.c.bf16 %v2089_v11, %v2088_v47  ;;  %v1929_v61 = vpop.f32.mrf.mxu0 }
 0x3b2   :  { %v1671_v51 = vpop.f32.mrf.mxu3  ;;  %v1822_v17 = vpack.c.bf16 %v1804_v15, %v1803_v10  ;;  %v1930_v20 = vadd.f32 %v4359_v26, %v1929_v61 }
 0x3b3   :  { %3214 = vmatmul.msk.bf16.gmra.mxu1 %vm79_vm0, %v2116_v27  ;;  %v1672_v40 = vadd.f32 %v4302_v41, %v1671_v51 }
 0x3b4   :  { %3194 = vmatmul.msk.bf16.gmra.mxu0 %vm79_vm0, %v1822_v17  ;;  %v2026_v36 = vmul.f32 0.2, %v1930_v20  ;;  %vm1994_vm7 = vcmp.ge.f32.partialorder %v1930_v20, 0.0 }
 0x3b5   :  { %v1741_v48 = vmul.f32 0.2, %v1672_v40  ;;  %vm1709_vm8 = vcmp.ge.f32.partialorder %v1672_v40, 0.0 }
 0x3b6   :  { %v2058_v25 = vsel %vm1994_vm7, %v1930_v20, %v2026_v36  ;;  %v4418_v20 = vld [vmem:[%s4713_s2 + $0x5] ss:$0 sm:$0xff] }
 0x3b7   :  { %v1773_v54 = vsel %vm1709_vm8, %v1672_v40, %v1741_v48  ;;  %v2090_v55 = vmul.f32 1.4142135, %v2058_v25 }
 0x3b8   :  { %v1805_v19 = vmul.f32 1.4142135, %v1773_v54 }
 0x3b9   :  { %v1931_v8 = vpop.f32.mrf.mxu0 }
 0x3ba   :  { %v1932_v35 = vadd.f32 %v4359_v26, %v1931_v8  ;;  %v1673_v52 = vpop.f32.mrf.mxu3 }
 0x3bb   :  { %v1674_v56 = vadd.f32 %v4302_v41, %v1673_v52 }
 0x3bc   :  { %vm1995_vm9 = vcmp.ge.f32.partialorder %v1932_v35, 0.0  ;;  %v2027_v32 = vmul.f32 0.2, %v1932_v35 }
 0x3bd   :  { %vm1710_vm10 = vcmp.ge.f32.partialorder %v1674_v56, 0.0  ;;  %v1742_v43 = vmul.f32 0.2, %v1674_v56 }
 0x3be   :  { %v2059_v53 = vsel %vm1995_vm9, %v1932_v35, %v2027_v32 }
 0x3bf   :  { %v2091_v33 = vmul.f32 1.4142135, %v2059_v53  ;;  %v1774_v18 = vsel %vm1710_vm10, %v1674_v56, %v1742_v43  ;;  %v3298_v56 = vld [vmem:[%s4712_s1 + $0x70] sm:$0xff] }
 0x3c0   :  { %v1806_v57 = vmul.f32 1.4142135, %v1774_v18  ;;  %2811 = vmatpush.bf16.msrb.mxu3 %v3298_v56 }
 0x3c1   :  { %v2117_v3 = vpack.c.bf16 %v2091_v33, %v2090_v55  ;;  %v1934_v9 = vpop.f32.mrf.mxu0 }
 0x3c2   :  { %v1676_v46 = vpop.f32.mrf.mxu3  ;;  %v1823_v12 = vpack.c.bf16 %v1806_v57, %v1805_v19  ;;  %v1935_v49 = vadd.f32 %v4359_v26, %v1934_v9 }
 0x3c3   :  { %3215 = vmatmul.msk.bf16.gmra.mxu1 %vm79_vm0, %v2117_v3  ;;  %v1677_v37 = vadd.f32 %v4302_v41, %v1676_v46 }
 0x3c4   :  { %3195 = vmatmul.msk.bf16.gmra.mxu0 %vm79_vm0, %v1823_v12  ;;  %v2028_v31 = vmul.f32 0.2, %v1935_v49  ;;  %vm1996_vm11 = vcmp.ge.f32.partialorder %v1935_v49, 0.0 }
 0x3c5   :  { %v1743_v42 = vmul.f32 0.2, %v1677_v37  ;;  %vm1711_vm12 = vcmp.ge.f32.partialorder %v1677_v37, 0.0 }
 0x3c6   :  { %v2060_v60 = vsel %vm1996_vm11, %v1935_v49, %v2028_v31 }
 0x3c7   :  { %v1775_v14 = vsel %vm1711_vm12, %v1677_v37, %v1743_v42  ;;  %v2092_v23 = vmul.f32 1.4142135, %v2060_v60 }
 0x3c8   :  { %v1807_v13 = vmul.f32 1.4142135, %v1775_v14 }
 0x3c9   :  { %v1936_v44 = vpop.f32.mrf.mxu0 }
 0x3ca   :  { %v1937_v29 = vadd.f32 %v4359_v26, %v1936_v44  ;;  %v1678_v50 = vpop.f32.mrf.mxu3 }
 0x3cb   :  { %v1679_v38 = vadd.f32 %v4302_v41, %v1678_v50 }
 0x3cc   :  { %vm1997_vm13 = vcmp.ge.f32.partialorder %v1937_v29, 0.0  ;;  %v2029_v16 = vmul.f32 0.2, %v1937_v29 }
 0x3cd   :  { %vm1712_vm14 = vcmp.ge.f32.partialorder %v1679_v38, 0.0  ;;  %v1744_v22 = vmul.f32 0.2, %v1679_v38 }
 0x3ce   :  { %v2061_v28 = vsel %vm1997_vm13, %v1937_v29, %v2029_v16 }
 0x3cf   :  { %v2093_v62 = vmul.f32 1.4142135, %v2061_v28  ;;  %v1776_v7 = vsel %vm1712_vm14, %v1679_v38, %v1744_v22 }
 0x3d0   :  { %v1808_v34 = vmul.f32 1.4142135, %v1776_v7 }
 0x3d1   :  { %v2118_v24 = vpack.c.bf16 %v2093_v62, %v2092_v23  ;;  %v1939_v45 = vpop.f32.mrf.mxu0 }
 0x3d2   :  { %v1824_v5 = vpack.c.bf16 %v1808_v34, %v1807_v13  ;;  %v1940_v21 = vadd.f32 %v4359_v26, %v1939_v45 }
 0x3d3   :  { %3216 = vmatmul.msk.bf16.gmra.mxu1 %vm79_vm0, %v2118_v24 }
 0x3d4   :  { %3196 = vmatmul.msk.bf16.gmra.mxu0 %vm79_vm0, %v1824_v5  ;;  %v2030_v41 = vmul.f32 0.2, %v1940_v21  ;;  %vm1998_vm15 = vcmp.ge.f32.partialorder %v1940_v21, 0.0 }
 0x3d6   :  { %v2062_v63 = vsel %vm1998_vm15, %v1940_v21, %v2030_v41 }
 0x3d7   :  { %v2094_v2 = vmul.f32 1.4142135, %v2062_v63 }
 0x3d9   :  { %v1941_v30 = vpop.f32.mrf.mxu0 }
 0x3da   :  { %v1942_v58 = vadd.f32 %v4359_v26, %v1941_v30 }
 0x3dc   :  { %vm1999_vm1 = vcmp.ge.f32.partialorder %v1942_v58, 0.0  ;;  %v2031_v39 = vmul.f32 0.2, %v1942_v58 }
 0x3de   :  { %v2063_v0 = vsel %vm1999_vm1, %v1942_v58, %v2031_v39 }
 0x3df   :  { %v2095_v1 = vmul.f32 1.4142135, %v2063_v0 }
 0x3e1   :  { %v2119_v59 = vpack.c.bf16 %v2095_v1, %v2094_v2  ;;  %v1944_v6 = vpop.f32.mrf.mxu0 }
 0x3e2   :  { %v1945_v47 = vadd.f32 %v4359_v26, %v1944_v6 }
 0x3e3   :  { %3217 = vmatmul.msk.bf16.gmra.mxu1 %vm79_vm0, %v2119_v59 }
 0x3e4   :  { %v2032_v11 = vmul.f32 0.2, %v1945_v47  ;;  %vm2000_vm2 = vcmp.ge.f32.partialorder %v1945_v47, 0.0 }
 0x3e6   :  { %v2064_v15 = vsel %vm2000_vm2, %v1945_v47, %v2032_v11 }
 0x3e7   :  { %v2096_v51 = vmul.f32 1.4142135, %v2064_v15 }
 0x3e9   :  { %v1946_v4 = vpop.f32.mrf.mxu0 }
 0x3ea   :  { %v1947_v10 = vadd.f32 %v4359_v26, %v1946_v4 }
 0x3ec   :  { %vm2001_vm3 = vcmp.ge.f32.partialorder %v1947_v10, 0.0  ;;  %v2033_v27 = vmul.f32 0.2, %v1947_v10 }
 0x3ee   :  { %v2065_v61 = vsel %vm2001_vm3, %v1947_v10, %v2033_v27 }
 0x3ef   :  { %v2097_v17 = vmul.f32 1.4142135, %v2065_v61 }
 0x3f0   :  { %v2207_v40 = vpop.f32.mrf.mxu1 }
 0x3f1   :  { %v2120_v36 = vpack.c.bf16 %v2097_v17, %v2096_v51  ;;  %v1949_v48 = vpop.f32.mrf.mxu0  ;;  %v2208_v8 = vadd.f32 %v4418_v20, %v2207_v40 }
 0x3f2   :  { %v1950_v35 = vadd.f32 %v4359_v26, %v1949_v48 }
 0x3f3   :  { %3218 = vmatmul.msk.bf16.gmra.mxu1 %vm79_vm0, %v2120_v36  ;;  %v2319_v52 = vmul.f32 0.2, %v2208_v8  ;;  %vm2287_vm4 = vcmp.ge.f32.partialorder %v2208_v8, 0.0 }
 0x3f4   :  { %v2034_v25 = vmul.f32 0.2, %v1950_v35  ;;  %vm2002_vm5 = vcmp.ge.f32.partialorder %v1950_v35, 0.0 }
 0x3f5   :  { %v2351_v55 = vsel %vm2287_vm4, %v2208_v8, %v2319_v52 }
 0x3f6   :  { %v2066_v18 = vsel %vm2002_vm5, %v1950_v35, %v2034_v25  ;;  %v2383_v3 = vmul.f32 1.4142135, %v2351_v55 }
 0x3f7   :  { %v2098_v12 = vmul.f32 1.4142135, %v2066_v18 }
 0x3f8   :  { %v2209_v32 = vpop.f32.mrf.mxu1 }
 0x3f9   :  { %v2210_v54 = vadd.f32 %v4418_v20, %v2209_v32  ;;  %v1951_v43 = vpop.f32.mrf.mxu0 }
 0x3fa   :  { %v1952_v53 = vadd.f32 %v4359_v26, %v1951_v43 }
 0x3fb   :  { %vm2288_vm6 = vcmp.ge.f32.partialorder %v2210_v54, 0.0  ;;  %v2320_v33 = vmul.f32 0.2, %v2210_v54 }
 0x3fc   :  { %vm2003_vm7 = vcmp.ge.f32.partialorder %v1952_v53, 0.0  ;;  %v2035_v19 = vmul.f32 0.2, %v1952_v53 }
 0x3fd   :  { %v2352_v57 = vsel %vm2288_vm6, %v2210_v54, %v2320_v33 }
 0x3fe   :  { %v2384_v9 = vmul.f32 1.4142135, %v2352_v57  ;;  %v2067_v46 = vsel %vm2003_vm7, %v1952_v53, %v2035_v19 }
 0x3ff   :  { %v2099_v49 = vmul.f32 1.4142135, %v2067_v46 }
 0x400   :  { %v2415_v37 = vpack.c.bf16 %v2384_v9, %v2383_v3  ;;  %v2212_v31 = vpop.f32.mrf.mxu1 }
 0x401   :  { %v2121_v42 = vpack.c.bf16 %v2099_v49, %v2098_v12  ;;  %v1954_v44 = vpop.f32.mrf.mxu0  ;;  %v2213_v29 = vadd.f32 %v4418_v20, %v2212_v31 }
 0x402   :  { %3239 = vmatmul.msk.bf16.vlgmr.msrb.gmra.mxu2 %vm79_vm0, %v2415_v37  ;;  %v1955_v50 = vadd.f32 %v4359_v26, %v1954_v44 }
 0x403   :  { %3219 = vmatmul.msk.bf16.gmra.mxu1 %vm79_vm0, %v2121_v42  ;;  %v2321_v38 = vmul.f32 0.2, %v2213_v29  ;;  %vm2289_vm8 = vcmp.ge.f32.partialorder %v2213_v29, 0.0 }
 0x404   :  { %v2036_v60 = vmul.f32 0.2, %v1955_v50  ;;  %vm2004_vm9 = vcmp.ge.f32.partialorder %v1955_v50, 0.0 }
 0x405   :  { %v2353_v23 = vsel %vm2289_vm8, %v2213_v29, %v2321_v38 }
 0x406   :  { %v2068_v7 = vsel %vm2004_vm9, %v1955_v50, %v2036_v60  ;;  %v2385_v24 = vmul.f32 1.4142135, %v2353_v23 }
 0x407   :  { %v2100_v21 = vmul.f32 1.4142135, %v2068_v7 }
 0x408   :  { %v2214_v16 = vpop.f32.mrf.mxu1 }
 0x409   :  { %v2215_v14 = vadd.f32 %v4418_v20, %v2214_v16  ;;  %v1956_v22 = vpop.f32.mrf.mxu0 }
 0x40a   :  { %v1957_v28 = vadd.f32 %v4359_v26, %v1956_v22 }
 0x40b   :  { %vm2290_vm10 = vcmp.ge.f32.partialorder %v2215_v14, 0.0  ;;  %v2322_v62 = vmul.f32 0.2, %v2215_v14 }
 0x40c   :  { %vm2005_vm11 = vcmp.ge.f32.partialorder %v1957_v28, 0.0  ;;  %v2037_v13 = vmul.f32 0.2, %v1957_v28 }
 0x40d   :  { %v2354_v34 = vsel %vm2290_vm10, %v2215_v14, %v2322_v62 }
 0x40e   :  { %v2386_v45 = vmul.f32 1.4142135, %v2354_v34  ;;  %v2069_v5 = vsel %vm2005_vm11, %v1957_v28, %v2037_v13 }
 0x40f   :  { %v2101_v41 = vmul.f32 1.4142135, %v2069_v5 }
 0x410   :  { %v2217_v30 = vpop.f32.mrf.mxu1  ;;  %v2416_v58 = vpack.c.bf16 %v2386_v45, %v2385_v24 }
 0x411   :  { %v2122_v63 = vpack.c.bf16 %v2101_v41, %v2100_v21  ;;  %v1959_v39 = vpop.f32.mrf.mxu0  ;;  %v2218_v0 = vadd.f32 %v4418_v20, %v2217_v30 }
 0x412   :  { %3240 = vmatmul.msk.bf16.gmra.mxu2 %vm79_vm0, %v2416_v58  ;;  %v1960_v2 = vadd.f32 %v4359_v26, %v1959_v39 }
 0x413   :  { %3220 = vmatmul.msk.bf16.gmra.mxu1 %vm79_vm0, %v2122_v63  ;;  %v2323_v1 = vmul.f32 0.2, %v2218_v0  ;;  %vm2291_vm12 = vcmp.ge.f32.partialorder %v2218_v0, 0.0 }
 0x414   :  { %v2038_v59 = vmul.f32 0.2, %v1960_v2  ;;  %vm2006_vm13 = vcmp.ge.f32.partialorder %v1960_v2, 0.0 }
 0x415   :  { %v2355_v10 = vsel %vm2291_vm12, %v2218_v0, %v2323_v1 }
 0x416   :  { %v2070_v27 = vsel %vm2006_vm13, %v1960_v2, %v2038_v59  ;;  %v2387_v17 = vmul.f32 1.4142135, %v2355_v10 }
 0x417   :  { %v2102_v48 = vmul.f32 1.4142135, %v2070_v27 }
 0x418   :  { %v2219_v6 = vpop.f32.mrf.mxu1 }
 0x419   :  { %v2220_v47 = vadd.f32 %v4418_v20, %v2219_v6  ;;  %v1961_v11 = vpop.f32.mrf.mxu0 }
 0x41a   :  { %v1962_v4 = vadd.f32 %v4359_v26, %v1961_v11 }
 0x41b   :  { %vm2292_vm14 = vcmp.ge.f32.partialorder %v2220_v47, 0.0  ;;  %v2324_v15 = vmul.f32 0.2, %v2220_v47 }
 0x41c   :  { %vm2007_vm15 = vcmp.ge.f32.partialorder %v1962_v4, 0.0  ;;  %v2039_v61 = vmul.f32 0.2, %v1962_v4 }
 0x41d   :  { %v2356_v51 = vsel %vm2292_vm14, %v2220_v47, %v2324_v15 }
 0x41e   :  { %v2388_v40 = vmul.f32 1.4142135, %v2356_v51  ;;  %v2071_v36 = vsel %vm2007_vm15, %v1962_v4, %v2039_v61 }
 0x41f   :  { %v2103_v8 = vmul.f32 1.4142135, %v2071_v36 }
 0x420   :  { %v2222_v35 = vpop.f32.mrf.mxu1  ;;  %v2417_v52 = vpack.c.bf16 %v2388_v40, %v2387_v17 }
 0x421   :  { %v2123_v56 = vpack.c.bf16 %v2103_v8, %v2102_v48  ;;  %v1964_v25 = vpop.f32.mrf.mxu0  ;;  %v2223_v32 = vadd.f32 %v4418_v20, %v2222_v35 }
 0x422   :  { %3241 = vmatmul.msk.bf16.gmra.mxu2 %vm79_vm0, %v2417_v52  ;;  %v1965_v54 = vadd.f32 %v4359_v26, %v1964_v25 }
 0x423   :  { %3221 = vmatmul.msk.bf16.gmra.mxu1 %vm79_vm0, %v2123_v56  ;;  %v2325_v43 = vmul.f32 0.2, %v2223_v32  ;;  %vm2293_vm1 = vcmp.ge.f32.partialorder %v2223_v32, 0.0 }
 0x424   :  { %v2040_v53 = vmul.f32 0.2, %v1965_v54  ;;  %vm2008_vm2 = vcmp.ge.f32.partialorder %v1965_v54, 0.0 }
 0x425   :  { %v2357_v57 = vsel %vm2293_vm1, %v2223_v32, %v2325_v43 }
 0x426   :  { %v2072_v9 = vsel %vm2008_vm2, %v1965_v54, %v2040_v53  ;;  %v2389_v49 = vmul.f32 1.4142135, %v2357_v57 }
 0x427   :  { %v2104_v42 = vmul.f32 1.4142135, %v2072_v9 }
 0x428   :  { %v2224_v55 = vpop.f32.mrf.mxu1 }
 0x429   :  { %v2225_v33 = vadd.f32 %v4418_v20, %v2224_v55  ;;  %v1966_v18 = vpop.f32.mrf.mxu0 }
 0x42a   :  { %v1967_v19 = vadd.f32 %v4359_v26, %v1966_v18 }
 0x42b   :  { %vm2294_vm3 = vcmp.ge.f32.partialorder %v2225_v33, 0.0  ;;  %v2326_v3 = vmul.f32 0.2, %v2225_v33 }
 0x42c   :  { %vm2009_vm4 = vcmp.ge.f32.partialorder %v1967_v19, 0.0  ;;  %v2041_v46 = vmul.f32 0.2, %v1967_v19 }
 0x42d   :  { %v2358_v12 = vsel %vm2294_vm3, %v2225_v33, %v2326_v3 }
 0x42e   :  { %v2390_v37 = vmul.f32 1.4142135, %v2358_v12  ;;  %v2073_v31 = vsel %vm2009_vm4, %v1967_v19, %v2041_v46 }
 0x42f   :  { %v2105_v44 = vmul.f32 1.4142135, %v2073_v31 }
 0x430   :  { %v2227_v29 = vpop.f32.mrf.mxu1  ;;  %v2418_v50 = vpack.c.bf16 %v2390_v37, %v2389_v49 }
 0x431   :  { %v2124_v38 = vpack.c.bf16 %v2105_v44, %v2104_v42  ;;  %v1969_v60 = vpop.f32.mrf.mxu0  ;;  %v2228_v16 = vadd.f32 %v4418_v20, %v2227_v29 }
 0x432   :  { %3242 = vmatmul.msk.bf16.gmra.mxu2 %vm79_vm0, %v2418_v50  ;;  %v1970_v14 = vadd.f32 %v4359_v26, %v1969_v60 }
 0x433   :  { %3222 = vmatmul.msk.bf16.gmra.mxu1 %vm79_vm0, %v2124_v38  ;;  %v2327_v22 = vmul.f32 0.2, %v2228_v16  ;;  %vm2295_vm5 = vcmp.ge.f32.partialorder %v2228_v16, 0.0 }
 0x434   :  { %v2042_v28 = vmul.f32 0.2, %v1970_v14  ;;  %vm2010_vm6 = vcmp.ge.f32.partialorder %v1970_v14, 0.0 }
 0x435   :  { %v2359_v34 = vsel %vm2295_vm5, %v2228_v16, %v2327_v22 }
 0x436   :  { %v2074_v45 = vsel %vm2010_vm6, %v1970_v14, %v2042_v28  ;;  %v2391_v41 = vmul.f32 1.4142135, %v2359_v34 }
 0x437   :  { %v2106_v63 = vmul.f32 1.4142135, %v2074_v45 }
 0x438   :  { %v2229_v23 = vpop.f32.mrf.mxu1 }
 0x439   :  { %v2230_v62 = vadd.f32 %v4418_v20, %v2229_v23  ;;  %v1971_v7 = vpop.f32.mrf.mxu0 }
 0x43a   :  { %v1972_v13 = vadd.f32 %v4359_v26, %v1971_v7 }
 0x43b   :  { %vm2296_vm7 = vcmp.ge.f32.partialorder %v2230_v62, 0.0  ;;  %v2328_v24 = vmul.f32 0.2, %v2230_v62 }
 0x43c   :  { %vm2011_vm8 = vcmp.ge.f32.partialorder %v1972_v13, 0.0  ;;  %v2043_v5 = vmul.f32 0.2, %v1972_v13 }
 0x43d   :  { %v2360_v21 = vsel %vm2296_vm7, %v2230_v62, %v2328_v24 }
 0x43e   :  { %v2392_v30 = vmul.f32 1.4142135, %v2360_v21  ;;  %v2075_v58 = vsel %vm2011_vm8, %v1972_v13, %v2043_v5 }
 0x43f   :  { %v2107_v39 = vmul.f32 1.4142135, %v2075_v58 }
 0x440   :  { %v2419_v0 = vpack.c.bf16 %v2392_v30, %v2391_v41  ;;  %v2232_v2 = vpop.f32.mrf.mxu1 }
 0x441   :  { %v2125_v1 = vpack.c.bf16 %v2107_v39, %v2106_v63  ;;  %v1974_v59 = vpop.f32.mrf.mxu0  ;;  %v2233_v6 = vadd.f32 %v4418_v20, %v2232_v2 }
 0x442   :  { %3243 = vmatmul.msk.bf16.gmra.mxu2 %vm79_vm0, %v2419_v0  ;;  %v1975_v47 = vadd.f32 %v4359_v26, %v1974_v59 }
 0x443   :  { %3223 = vmatmul.msk.bf16.gmra.mxu1 %vm79_vm0, %v2125_v1  ;;  %v2329_v11 = vmul.f32 0.2, %v2233_v6  ;;  %vm2297_vm9 = vcmp.ge.f32.partialorder %v2233_v6, 0.0 }
 0x444   :  { %v2044_v4 = vmul.f32 0.2, %v1975_v47  ;;  %vm2012_vm10 = vcmp.ge.f32.partialorder %v1975_v47, 0.0 }
 0x445   :  { %v2361_v51 = vsel %vm2297_vm9, %v2233_v6, %v2329_v11 }
 0x446   :  { %v2076_v40 = vsel %vm2012_vm10, %v1975_v47, %v2044_v4  ;;  %v2393_v8 = vmul.f32 1.4142135, %v2361_v51  ;;  %v4476_v4 = vld [vmem:[%s4713_s2 + $0x6] ss:$0 sm:$0xff] }
 0x447   :  { %v2108_v56 = vmul.f32 1.4142135, %v2076_v40 }
 0x448   :  { %v2234_v10 = vpop.f32.mrf.mxu1 }
 0x449   :  { %v2235_v15 = vadd.f32 %v4418_v20, %v2234_v10  ;;  %v1976_v27 = vpop.f32.mrf.mxu0 }
 0x44a   :  { %v1977_v61 = vadd.f32 %v4359_v26, %v1976_v27 }
 0x44b   :  { %vm2298_vm11 = vcmp.ge.f32.partialorder %v2235_v15, 0.0  ;;  %v2330_v17 = vmul.f32 0.2, %v2235_v15 }
 0x44c   :  { %vm2013_vm12 = vcmp.ge.f32.partialorder %v1977_v61, 0.0  ;;  %v2045_v36 = vmul.f32 0.2, %v1977_v61 }
 0x44d   :  { %v2362_v48 = vsel %vm2298_vm11, %v2235_v15, %v2330_v17 }
 0x44e   :  { %v2394_v35 = vmul.f32 1.4142135, %v2362_v48  ;;  %v2077_v52 = vsel %vm2013_vm12, %v1977_v61, %v2045_v36 }
 0x44f   :  { %v2109_v25 = vmul.f32 1.4142135, %v2077_v52 }
 0x450   :  { %v2420_v32 = vpack.c.bf16 %v2394_v35, %v2393_v8  ;;  %v2237_v54 = vpop.f32.mrf.mxu1 }
 0x451   :  { %v2126_v43 = vpack.c.bf16 %v2109_v25, %v2108_v56  ;;  %v1979_v53 = vpop.f32.mrf.mxu0  ;;  %v2238_v55 = vadd.f32 %v4418_v20, %v2237_v54 }
 0x452   :  { %3244 = vmatmul.msk.bf16.gmra.mxu2 %vm79_vm0, %v2420_v32  ;;  %v1980_v33 = vadd.f32 %v4359_v26, %v1979_v53 }
 0x453   :  { %3224 = vmatmul.msk.bf16.gmra.mxu1 %vm79_vm0, %v2126_v43  ;;  %v2331_v18 = vmul.f32 0.2, %v2238_v55  ;;  %vm2299_vm13 = vcmp.ge.f32.partialorder %v2238_v55, 0.0 }
 0x454   :  { %v2046_v19 = vmul.f32 0.2, %v1980_v33  ;;  %vm2014_vm14 = vcmp.ge.f32.partialorder %v1980_v33, 0.0 }
 0x455   :  { %v2363_v12 = vsel %vm2299_vm13, %v2238_v55, %v2331_v18 }
 0x456   :  { %v2078_v37 = vsel %vm2014_vm14, %v1980_v33, %v2046_v19  ;;  %v2395_v44 = vmul.f32 1.4142135, %v2363_v12 }
 0x457   :  { %v2110_v38 = vmul.f32 1.4142135, %v2078_v37 }
 0x458   :  { %v2239_v57 = vpop.f32.mrf.mxu1 }
 0x459   :  { %v2240_v3 = vadd.f32 %v4418_v20, %v2239_v57  ;;  %v1981_v9 = vpop.f32.mrf.mxu0 }
 0x45a   :  { %v1982_v46 = vadd.f32 %v4359_v26, %v1981_v9 }
 0x45b   :  { %vm2300_vm15 = vcmp.ge.f32.partialorder %v2240_v3, 0.0  ;;  %v2332_v49 = vmul.f32 0.2, %v2240_v3 }
 0x45c   :  { %vm2015_vm1 = vcmp.ge.f32.partialorder %v1982_v46, 0.0  ;;  %v2047_v31 = vmul.f32 0.2, %v1982_v46 }
 0x45d   :  { %v2364_v42 = vsel %vm2300_vm15, %v2240_v3, %v2332_v49 }
 0x45e   :  { %v2396_v29 = vmul.f32 1.4142135, %v2364_v42  ;;  %v2079_v50 = vsel %vm2015_vm1, %v1982_v46, %v2047_v31 }
 0x45f   :  { %v2111_v60 = vmul.f32 1.4142135, %v2079_v50 }
 0x460   :  { %v2421_v16 = vpack.c.bf16 %v2396_v29, %v2395_v44  ;;  %v2242_v14 = vpop.f32.mrf.mxu1 }
 0x461   :  { %v2127_v22 = vpack.c.bf16 %v2111_v60, %v2110_v38  ;;  %v2243_v28 = vadd.f32 %v4418_v20, %v2242_v14 }
 0x462   :  { %3245 = vmatmul.msk.bf16.gmra.mxu2 %vm79_vm0, %v2421_v16 }
 0x463   :  { %3225 = vmatmul.msk.bf16.gmra.mxu1 %vm79_vm0, %v2127_v22  ;;  %v2333_v26 = vmul.f32 0.2, %v2243_v28  ;;  %vm2301_vm2 = vcmp.ge.f32.partialorder %v2243_v28, 0.0 }
 0x465   :  { %v2365_v7 = vsel %vm2301_vm2, %v2243_v28, %v2333_v26 }
 0x466   :  { %v2397_v24 = vmul.f32 1.4142135, %v2365_v7 }
 0x468   :  { %v2244_v23 = vpop.f32.mrf.mxu1 }
 0x469   :  { %v2245_v62 = vadd.f32 %v4418_v20, %v2244_v23 }
 0x46b   :  { %vm2302_vm3 = vcmp.ge.f32.partialorder %v2245_v62, 0.0  ;;  %v2334_v13 = vmul.f32 0.2, %v2245_v62 }
 0x46d   :  { %v2366_v34 = vsel %vm2302_vm3, %v2245_v62, %v2334_v13 }
 0x46e   :  { %v2398_v45 = vmul.f32 1.4142135, %v2366_v34 }
 0x470   :  { %v2422_v5 = vpack.c.bf16 %v2398_v45, %v2397_v24  ;;  %v2247_v21 = vpop.f32.mrf.mxu1 }
 0x471   :  { %v2248_v41 = vadd.f32 %v4418_v20, %v2247_v21 }
 0x472   :  { %3246 = vmatmul.msk.bf16.gmra.mxu2 %vm79_vm0, %v2422_v5 }
 0x473   :  { %v2335_v30 = vmul.f32 0.2, %v2248_v41  ;;  %vm2303_vm4 = vcmp.ge.f32.partialorder %v2248_v41, 0.0 }
 0x475   :  { %v2367_v39 = vsel %vm2303_vm4, %v2248_v41, %v2335_v30 }
 0x476   :  { %v2399_v1 = vmul.f32 1.4142135, %v2367_v39 }
 0x478   :  { %v2249_v58 = vpop.f32.mrf.mxu1 }
 0x479   :  { %v2250_v63 = vadd.f32 %v4418_v20, %v2249_v58 }
 0x47b   :  { %vm2304_vm5 = vcmp.ge.f32.partialorder %v2250_v63, 0.0  ;;  %v2336_v0 = vmul.f32 0.2, %v2250_v63 }
 0x47d   :  { %v2368_v2 = vsel %vm2304_vm5, %v2250_v63, %v2336_v0 }
 0x47e   :  { %v2400_v59 = vmul.f32 1.4142135, %v2368_v2 }
 0x480   :  { %v2423_v6 = vpack.c.bf16 %v2400_v59, %v2399_v1  ;;  %v2252_v47 = vpop.f32.mrf.mxu1 }
 0x481   :  { %v2253_v11 = vadd.f32 %v4418_v20, %v2252_v47 }
 0x482   :  { %3247 = vmatmul.msk.bf16.gmra.mxu2 %vm79_vm0, %v2423_v6 }
 0x483   :  { %v2337_v15 = vmul.f32 0.2, %v2253_v11  ;;  %vm2305_vm6 = vcmp.ge.f32.partialorder %v2253_v11, 0.0 }
 0x485   :  { %v2510_v10 = vpop.f32.mrf.mxu2  ;;  %v2369_v17 = vsel %vm2305_vm6, %v2253_v11, %v2337_v15 }
 0x486   :  { %v2511_v27 = vadd.f32 %v4476_v4, %v2510_v10  ;;  %v2401_v35 = vmul.f32 1.4142135, %v2369_v17 }
 0x488   :  { %v2254_v61 = vpop.f32.mrf.mxu1  ;;  %v2622_v36 = vmul.f32 0.2, %v2511_v27  ;;  %vm2590_vm8 = vcmp.ge.f32.partialorder %v2511_v27, 0.0 }
 0x489   :  { %v2255_v51 = vadd.f32 %v4418_v20, %v2254_v61 }
 0x48a   :  { %v2654_v25 = vsel %vm2590_vm8, %v2511_v27, %v2622_v36 }
 0x48b   :  { %vm2306_vm7 = vcmp.ge.f32.partialorder %v2255_v51, 0.0  ;;  %v2338_v40 = vmul.f32 0.2, %v2255_v51  ;;  %v2686_v55 = vmul.f32 1.4142135, %v2654_v25 }
 0x48d   :  { %v2370_v48 = vsel %vm2306_vm7, %v2255_v51, %v2338_v40  ;;  %v2512_v8 = vpop.f32.mrf.mxu2 }
 0x48e   :  { %v2402_v52 = vmul.f32 1.4142135, %v2370_v48  ;;  %v2513_v56 = vadd.f32 %v4476_v4, %v2512_v8 }
 0x490   :  { %v2424_v32 = vpack.c.bf16 %v2402_v52, %v2401_v35  ;;  %vm2591_vm9 = vcmp.ge.f32.partialorder %v2513_v56, 0.0  ;;  %v2623_v54 = vmul.f32 0.2, %v2513_v56  ;;  %v2257_v43 = vpop.f32.mrf.mxu1 }
 0x491   :  { %v2258_v18 = vadd.f32 %v4418_v20, %v2257_v43 }
 0x492   :  { %v2655_v53 = vsel %vm2591_vm9, %v2513_v56, %v2623_v54  ;;  %3248 = vmatmul.msk.bf16.gmra.mxu2 %vm79_vm0, %v2424_v32 }
 0x493   :  { %v2687_v33 = vmul.f32 1.4142135, %v2655_v53  ;;  %v2339_v3 = vmul.f32 0.2, %v2258_v18  ;;  %vm2307_vm10 = vcmp.ge.f32.partialorder %v2258_v18, 0.0 }
 0x495   :  { %v2718_v19 = vpack.c.bf16 %v2687_v33, %v2686_v55  ;;  %v2515_v57 = vpop.f32.mrf.mxu2  ;;  %v2371_v49 = vsel %vm2307_vm10, %v2258_v18, %v2339_v3 }
 0x496   :  { %v2516_v9 = vadd.f32 %v4476_v4, %v2515_v57  ;;  %v2403_v29 = vmul.f32 1.4142135, %v2371_v49 }
 0x497   :  { %3268 = vmatmul.msk.bf16.vlgmr.msrb.gmra.mxu3 %vm79_vm0, %v2718_v19 }
 0x498   :  { %v2259_v46 = vpop.f32.mrf.mxu1  ;;  %v2624_v31 = vmul.f32 0.2, %v2516_v9  ;;  %vm2592_vm12 = vcmp.ge.f32.partialorder %v2516_v9, 0.0 }
 0x499   :  { %v2260_v12 = vadd.f32 %v4418_v20, %v2259_v46 }
 0x49a   :  { %v2656_v60 = vsel %vm2592_vm12, %v2516_v9, %v2624_v31 }
 0x49b   :  { %vm2308_vm11 = vcmp.ge.f32.partialorder %v2260_v12, 0.0  ;;  %v2340_v37 = vmul.f32 0.2, %v2260_v12  ;;  %v2688_v26 = vmul.f32 1.4142135, %v2656_v60 }
 0x49d   :  { %v2372_v42 = vsel %vm2308_vm11, %v2260_v12, %v2340_v37  ;;  %v2517_v44 = vpop.f32.mrf.mxu2 }
 0x49e   :  { %v2404_v50 = vmul.f32 1.4142135, %v2372_v42  ;;  %v2518_v38 = vadd.f32 %v4476_v4, %v2517_v44 }
 0x4a0   :  { %v2425_v16 = vpack.c.bf16 %v2404_v50, %v2403_v29  ;;  %vm2593_vm13 = vcmp.ge.f32.partialorder %v2518_v38, 0.0  ;;  %v2625_v14 = vmul.f32 0.2, %v2518_v38  ;;  %v2262_v22 = vpop.f32.mrf.mxu1 }
 0x4a1   :  { %v2263_v62 = vadd.f32 %v4418_v20, %v2262_v22 }
 0x4a2   :  { %v2657_v28 = vsel %vm2593_vm13, %v2518_v38, %v2625_v14  ;;  %3249 = vmatmul.msk.bf16.gmra.mxu2 %vm79_vm0, %v2425_v16 }
 0x4a3   :  { %v2689_v23 = vmul.f32 1.4142135, %v2657_v28  ;;  %v2341_v34 = vmul.f32 0.2, %v2263_v62  ;;  %vm2309_vm14 = vcmp.ge.f32.partialorder %v2263_v62, 0.0 }
 0x4a5   :  { %v2520_v7 = vpop.f32.mrf.mxu2  ;;  %v2719_v13 = vpack.c.bf16 %v2689_v23, %v2688_v26  ;;  %v2373_v21 = vsel %vm2309_vm14, %v2263_v62, %v2341_v34 }
 0x4a6   :  { %v2521_v24 = vadd.f32 %v4476_v4, %v2520_v7  ;;  %v2405_v39 = vmul.f32 1.4142135, %v2373_v21 }
 0x4a7   :  { %3269 = vmatmul.msk.bf16.gmra.mxu3 %vm79_vm0, %v2719_v13 }
 0x4a8   :  { %v2264_v45 = vpop.f32.mrf.mxu1  ;;  %v2626_v30 = vmul.f32 0.2, %v2521_v24  ;;  %vm2594_vm1 = vcmp.ge.f32.partialorder %v2521_v24, 0.0 }
 0x4a9   :  { %v2265_v5 = vadd.f32 %v4418_v20, %v2264_v45 }
 0x4aa   :  { %v2658_v1 = vsel %vm2594_vm1, %v2521_v24, %v2626_v30 }
 0x4ab   :  { %vm2310_vm15 = vcmp.ge.f32.partialorder %v2265_v5, 0.0  ;;  %v2342_v41 = vmul.f32 0.2, %v2265_v5  ;;  %v2690_v10 = vmul.f32 1.4142135, %v2658_v1 }
 0x4ad   :  { %v2374_v58 = vsel %vm2310_vm15, %v2265_v5, %v2342_v41  ;;  %v2522_v63 = vpop.f32.mrf.mxu2 }
 0x4ae   :  { %v2406_v0 = vmul.f32 1.4142135, %v2374_v58  ;;  %v2523_v2 = vadd.f32 %v4476_v4, %v2522_v63 }
 0x4b0   :  { %v2426_v59 = vpack.c.bf16 %v2406_v0, %v2405_v39  ;;  %vm2595_vm2 = vcmp.ge.f32.partialorder %v2523_v2, 0.0  ;;  %v2627_v6 = vmul.f32 0.2, %v2523_v2  ;;  %v2267_v47 = vpop.f32.mrf.mxu1 }
 0x4b1   :  { %v2268_v27 = vadd.f32 %v4418_v20, %v2267_v47 }
 0x4b2   :  { %v2659_v11 = vsel %vm2595_vm2, %v2523_v2, %v2627_v6  ;;  %3250 = vmatmul.msk.bf16.gmra.mxu2 %vm79_vm0, %v2426_v59 }
 0x4b3   :  { %v2691_v15 = vmul.f32 1.4142135, %v2659_v11  ;;  %v2343_v17 = vmul.f32 0.2, %v2268_v27  ;;  %vm2311_vm3 = vcmp.ge.f32.partialorder %v2268_v27, 0.0 }
 0x4b5   :  { %v2525_v61 = vpop.f32.mrf.mxu2  ;;  %v2720_v51 = vpack.c.bf16 %v2691_v15, %v2690_v10  ;;  %v2375_v8 = vsel %vm2311_vm3, %v2268_v27, %v2343_v17 }
 0x4b6   :  { %v2526_v40 = vadd.f32 %v4476_v4, %v2525_v61  ;;  %v2407_v32 = vmul.f32 1.4142135, %v2375_v8 }
 0x4b7   :  { %3270 = vmatmul.msk.bf16.gmra.mxu3 %vm79_vm0, %v2720_v51 }
 0x4b8   :  { %v2269_v36 = vpop.f32.mrf.mxu1  ;;  %v2628_v52 = vmul.f32 0.2, %v2526_v40  ;;  %vm2596_vm5 = vcmp.ge.f32.partialorder %v2526_v40, 0.0 }
 0x4b9   :  { %v2270_v48 = vadd.f32 %v4418_v20, %v2269_v36 }
 0x4ba   :  { %v2660_v53 = vsel %vm2596_vm5, %v2526_v40, %v2628_v52 }
 0x4bb   :  { %vm2312_vm4 = vcmp.ge.f32.partialorder %v2270_v48, 0.0  ;;  %v2344_v35 = vmul.f32 0.2, %v2270_v48  ;;  %v2692_v57 = vmul.f32 1.4142135, %v2660_v53 }
 0x4bd   :  { %v2376_v56 = vsel %vm2312_vm4, %v2270_v48, %v2344_v35  ;;  %v2527_v25 = vpop.f32.mrf.mxu2 }
 0x4be   :  { %v2408_v54 = vmul.f32 1.4142135, %v2376_v56  ;;  %v2528_v43 = vadd.f32 %v4476_v4, %v2527_v25 }
 0x4c0   :  { %v2427_v55 = vpack.c.bf16 %v2408_v54, %v2407_v32  ;;  %vm2597_vm6 = vcmp.ge.f32.partialorder %v2528_v43, 0.0  ;;  %v2629_v33 = vmul.f32 0.2, %v2528_v43  ;;  %v2272_v18 = vpop.f32.mrf.mxu1 }
 0x4c1   :  { %v2273_v9 = vadd.f32 %v4418_v20, %v2272_v18 }
 0x4c2   :  { %v2661_v19 = vsel %vm2597_vm6, %v2528_v43, %v2629_v33  ;;  %3251 = vmatmul.msk.bf16.gmra.mxu2 %vm79_vm0, %v2427_v55 }
 0x4c3   :  { %v2693_v3 = vmul.f32 1.4142135, %v2661_v19  ;;  %v2345_v49 = vmul.f32 0.2, %v2273_v9  ;;  %vm2313_vm7 = vcmp.ge.f32.partialorder %v2273_v9, 0.0 }
 0x4c5   :  { %v2530_v46 = vpop.f32.mrf.mxu2  ;;  %v2721_v12 = vpack.c.bf16 %v2693_v3, %v2692_v57  ;;  %v2377_v44 = vsel %vm2313_vm7, %v2273_v9, %v2345_v49 }
 0x4c6   :  { %v2531_v37 = vadd.f32 %v4476_v4, %v2530_v46  ;;  %v2409_v16 = vmul.f32 1.4142135, %v2377_v44 }
 0x4c7   :  { %3271 = vmatmul.msk.bf16.gmra.mxu3 %vm79_vm0, %v2721_v12 }
 0x4c8   :  { %v2274_v31 = vpop.f32.mrf.mxu1  ;;  %v2630_v50 = vmul.f32 0.2, %v2531_v37  ;;  %vm2598_vm9 = vcmp.ge.f32.partialorder %v2531_v37, 0.0 }
 0x4c9   :  { %v2275_v42 = vadd.f32 %v4418_v20, %v2274_v31 }
 0x4ca   :  { %v2662_v28 = vsel %vm2598_vm9, %v2531_v37, %v2630_v50 }
 0x4cb   :  { %vm2314_vm8 = vcmp.ge.f32.partialorder %v2275_v42, 0.0  ;;  %v2346_v29 = vmul.f32 0.2, %v2275_v42  ;;  %v2694_v13 = vmul.f32 1.4142135, %v2662_v28 }
 0x4cd   :  { %v2378_v38 = vsel %vm2314_vm8, %v2275_v42, %v2346_v29  ;;  %v2532_v60 = vpop.f32.mrf.mxu2 }
 0x4ce   :  { %v2410_v14 = vmul.f32 1.4142135, %v2378_v38  ;;  %v2533_v22 = vadd.f32 %v4476_v4, %v2532_v60 }
 0x4d0   :  { %v2428_v26 = vpack.c.bf16 %v2410_v14, %v2409_v16  ;;  %vm2599_vm10 = vcmp.ge.f32.partialorder %v2533_v22, 0.0  ;;  %v2631_v23 = vmul.f32 0.2, %v2533_v22  ;;  %v2277_v62 = vpop.f32.mrf.mxu1 }
 0x4d1   :  { %v2278_v24 = vadd.f32 %v4418_v20, %v2277_v62 }
 0x4d2   :  { %v2663_v7 = vsel %vm2599_vm10, %v2533_v22, %v2631_v23  ;;  %3252 = vmatmul.msk.bf16.gmra.mxu2 %vm79_vm0, %v2428_v26 }
 0x4d3   :  { %v2695_v34 = vmul.f32 1.4142135, %v2663_v7  ;;  %v2347_v21 = vmul.f32 0.2, %v2278_v24  ;;  %vm2315_vm11 = vcmp.ge.f32.partialorder %v2278_v24, 0.0 }
 0x4d5   :  { %v2722_v45 = vpack.c.bf16 %v2695_v34, %v2694_v13  ;;  %v2535_v5 = vpop.f32.mrf.mxu2  ;;  %v2379_v63 = vsel %vm2315_vm11, %v2278_v24, %v2347_v21 }
 0x4d6   :  { %v2536_v41 = vadd.f32 %v4476_v4, %v2535_v5  ;;  %v2411_v59 = vmul.f32 1.4142135, %v2379_v63 }
 0x4d7   :  { %3272 = vmatmul.msk.bf16.gmra.mxu3 %vm79_vm0, %v2722_v45 }
 0x4d8   :  { %v2279_v30 = vpop.f32.mrf.mxu1  ;;  %v2632_v0 = vmul.f32 0.2, %v2536_v41  ;;  %vm2600_vm13 = vcmp.ge.f32.partialorder %v2536_v41, 0.0 }
 0x4d9   :  { %v2280_v58 = vadd.f32 %v4418_v20, %v2279_v30 }
 0x4da   :  { %v2664_v11 = vsel %vm2600_vm13, %v2536_v41, %v2632_v0  ;;  %v4528_v41 = vld [vmem:[%s4713_s2 + $0x7] ss:$0 sm:$0xff] }
 0x4db   :  { %vm2316_vm12 = vcmp.ge.f32.partialorder %v2280_v58, 0.0  ;;  %v2348_v39 = vmul.f32 0.2, %v2280_v58  ;;  %v2696_v51 = vmul.f32 1.4142135, %v2664_v11 }
 0x4dd   :  { %v2380_v2 = vsel %vm2316_vm12, %v2280_v58, %v2348_v39  ;;  %v2537_v1 = vpop.f32.mrf.mxu2 }
 0x4de   :  { %v2412_v6 = vmul.f32 1.4142135, %v2380_v2  ;;  %v2538_v47 = vadd.f32 %v4476_v4, %v2537_v1 }
 0x4e0   :  { %v2429_v10 = vpack.c.bf16 %v2412_v6, %v2411_v59  ;;  %vm2601_vm14 = vcmp.ge.f32.partialorder %v2538_v47, 0.0  ;;  %v2633_v15 = vmul.f32 0.2, %v2538_v47  ;;  %v2282_v27 = vpop.f32.mrf.mxu1 }
 0x4e1   :  { %v2283_v40 = vadd.f32 %v4418_v20, %v2282_v27 }
 0x4e2   :  { %v2665_v61 = vsel %vm2601_vm14, %v2538_v47, %v2633_v15  ;;  %3253 = vmatmul.msk.bf16.gmra.mxu2 %vm79_vm0, %v2429_v10 }
 0x4e3   :  { %v2697_v17 = vmul.f32 1.4142135, %v2665_v61  ;;  %v2349_v8 = vmul.f32 0.2, %v2283_v40  ;;  %vm2317_vm15 = vcmp.ge.f32.partialorder %v2283_v40, 0.0 }
 0x4e5   :  { %v2723_v36 = vpack.c.bf16 %v2697_v17, %v2696_v51  ;;  %v2540_v48 = vpop.f32.mrf.mxu2  ;;  %v2381_v25 = vsel %vm2317_vm15, %v2283_v40, %v2349_v8 }
 0x4e6   :  { %v2541_v35 = vadd.f32 %v4476_v4, %v2540_v48  ;;  %v2413_v55 = vmul.f32 1.4142135, %v2381_v25 }
 0x4e7   :  { %3273 = vmatmul.msk.bf16.gmra.mxu3 %vm79_vm0, %v2723_v36 }
 0x4e8   :  { %v2284_v52 = vpop.f32.mrf.mxu1  ;;  %v2634_v54 = vmul.f32 0.2, %v2541_v35  ;;  %vm2602_vm2 = vcmp.ge.f32.partialorder %v2541_v35, 0.0 }
 0x4e9   :  { %v2285_v56 = vadd.f32 %v4418_v20, %v2284_v52 }
 0x4ea   :  { %v2666_v19 = vsel %vm2602_vm2, %v2541_v35, %v2634_v54 }
 0x4eb   :  { %vm2318_vm1 = vcmp.ge.f32.partialorder %v2285_v56, 0.0  ;;  %v2350_v32 = vmul.f32 0.2, %v2285_v56  ;;  %v2698_v46 = vmul.f32 1.4142135, %v2666_v19 }
 0x4ed   :  { %v2382_v43 = vsel %vm2318_vm1, %v2285_v56, %v2350_v32  ;;  %v2542_v53 = vpop.f32.mrf.mxu2 }
 0x4ee   :  { %v2414_v33 = vmul.f32 1.4142135, %v2382_v43  ;;  %v2543_v18 = vadd.f32 %v4476_v4, %v2542_v53 }
 0x4f0   :  { %v2430_v57 = vpack.c.bf16 %v2414_v33, %v2413_v55  ;;  %vm2603_vm3 = vcmp.ge.f32.partialorder %v2543_v18, 0.0  ;;  %v2635_v3 = vmul.f32 0.2, %v2543_v18 }
 0x4f2   :  { %v2667_v9 = vsel %vm2603_vm3, %v2543_v18, %v2635_v3  ;;  %3254 = vmatmul.msk.bf16.gmra.mxu2 %vm79_vm0, %v2430_v57 }
 0x4f3   :  { %v2699_v20 = vmul.f32 1.4142135, %v2667_v9 }
 0x4f5   :  { %v2724_v12 = vpack.c.bf16 %v2699_v20, %v2698_v46  ;;  %v2545_v49 = vpop.f32.mrf.mxu2 }
 0x4f6   :  { %v2546_v37 = vadd.f32 %v4476_v4, %v2545_v49 }
 0x4f7   :  { %3274 = vmatmul.msk.bf16.gmra.mxu3 %vm79_vm0, %v2724_v12 }
 0x4f8   :  { %v2636_v31 = vmul.f32 0.2, %v2546_v37  ;;  %vm2604_vm4 = vcmp.ge.f32.partialorder %v2546_v37, 0.0 }
 0x4fa   :  { %v2668_v29 = vsel %vm2604_vm4, %v2546_v37, %v2636_v31 }
 0x4fb   :  { %v2700_v60 = vmul.f32 1.4142135, %v2668_v29 }
 0x4fd   :  { %v2547_v42 = vpop.f32.mrf.mxu2 }
 0x4fe   :  { %v2548_v44 = vadd.f32 %v4476_v4, %v2547_v42 }
 0x500   :  { %vm2605_vm5 = vcmp.ge.f32.partialorder %v2548_v44, 0.0  ;;  %v2637_v50 = vmul.f32 0.2, %v2548_v44 }
 0x502   :  { %v2669_v38 = vsel %vm2605_vm5, %v2548_v44, %v2637_v50 }
 0x503   :  { %v2701_v16 = vmul.f32 1.4142135, %v2669_v38 }
 0x505   :  { %v2725_v14 = vpack.c.bf16 %v2701_v16, %v2700_v60  ;;  %v2550_v22 = vpop.f32.mrf.mxu2 }
 0x506   :  { %v2551_v28 = vadd.f32 %v4476_v4, %v2550_v22 }
 0x507   :  { %3275 = vmatmul.msk.bf16.gmra.mxu3 %vm79_vm0, %v2725_v14 }
 0x508   :  { %v2638_v26 = vmul.f32 0.2, %v2551_v28  ;;  %vm2606_vm6 = vcmp.ge.f32.partialorder %v2551_v28, 0.0 }
 0x50a   :  { %v2670_v7 = vsel %vm2606_vm6, %v2551_v28, %v2638_v26 }
 0x50b   :  { %v2702_v24 = vmul.f32 1.4142135, %v2670_v7 }
 0x50d   :  { %v2552_v23 = vpop.f32.mrf.mxu2 }
 0x50e   :  { %v2553_v62 = vadd.f32 %v4476_v4, %v2552_v23 }
 0x510   :  { %vm2607_vm7 = vcmp.ge.f32.partialorder %v2553_v62, 0.0  ;;  %v2639_v13 = vmul.f32 0.2, %v2553_v62 }
 0x512   :  { %v2671_v34 = vsel %vm2607_vm7, %v2553_v62, %v2639_v13 }
 0x513   :  { %v2703_v45 = vmul.f32 1.4142135, %v2671_v34 }
 0x515   :  { %v2726_v5 = vpack.c.bf16 %v2703_v45, %v2702_v24  ;;  %v2555_v21 = vpop.f32.mrf.mxu2 }
 0x516   :  { %v2556_v30 = vadd.f32 %v4476_v4, %v2555_v21 }
 0x517   :  { %3276 = vmatmul.msk.bf16.gmra.mxu3 %vm79_vm0, %v2726_v5 }
 0x518   :  { %v2640_v39 = vmul.f32 0.2, %v2556_v30  ;;  %vm2608_vm8 = vcmp.ge.f32.partialorder %v2556_v30, 0.0 }
 0x51a   :  { %v2813_v58 = vpop.f32.mrf.mxu3  ;;  %v2672_v6 = vsel %vm2608_vm8, %v2556_v30, %v2640_v39 }
 0x51b   :  { %v2814_v63 = vadd.f32 %v4528_v41, %v2813_v58  ;;  %v2704_v27 = vmul.f32 1.4142135, %v2672_v6 }
 0x51d   :  { %vm2893_vm9 = vcmp.ge.f32.partialorder %v2814_v63, 0.0  ;;  %v2925_v0 = vmul.f32 0.2, %v2814_v63  ;;  %v2557_v2 = vpop.f32.mrf.mxu2 }
 0x51e   :  { %v2558_v1 = vadd.f32 %v4476_v4, %v2557_v2 }
 0x51f   :  { %v2957_v59 = vsel %vm2893_vm9, %v2814_v63, %v2925_v0 }
 0x520   :  { %v2989_v47 = vmul.f32 1.4142135, %v2957_v59  ;;  %vm2609_vm10 = vcmp.ge.f32.partialorder %v2558_v1, 0.0  ;;  %v2641_v11 = vmul.f32 0.2, %v2558_v1 }
 0x522   :  { %3021 = vst.msk [vmem:[%s4714_s3] sm:$0xff] %vm79_vm0, %v2989_v47  ;;  %v2673_v10 = vsel %vm2609_vm10, %v2558_v1, %v2641_v11  ;;  %v2815_v15 = vpop.f32.mrf.mxu3 }
 0x523   :  { %v2705_v61 = vmul.f32 1.4142135, %v2673_v10  ;;  %v2816_v51 = vadd.f32 %v4528_v41, %v2815_v15 }
 0x525   :  { %v2727_v17 = vpack.c.bf16 %v2705_v61, %v2704_v27  ;;  %vm2894_vm11 = vcmp.ge.f32.partialorder %v2816_v51, 0.0  ;;  %v2926_v40 = vmul.f32 0.2, %v2816_v51  ;;  %v2560_v36 = vpop.f32.mrf.mxu2 }
 0x526   :  { %v2561_v35 = vadd.f32 %v4476_v4, %v2560_v36 }
 0x527   :  { %v2958_v48 = vsel %vm2894_vm11, %v2816_v51, %v2926_v40  ;;  %3277 = vmatmul.msk.bf16.gmra.mxu3 %vm79_vm0, %v2727_v17 }
 0x528   :  { %v2990_v8 = vmul.f32 1.4142135, %v2958_v48  ;;  %v2642_v25 = vmul.f32 0.2, %v2561_v35  ;;  %vm2610_vm12 = vcmp.ge.f32.partialorder %v2561_v35, 0.0 }
 0x52a   :  { %3022 = vst.msk [vmem:[%s4714_s3 + $0x8] sm:$0xff] %vm79_vm0, %v2990_v8  ;;  %v2818_v52 = vpop.f32.mrf.mxu3  ;;  %v2674_v55 = vsel %vm2610_vm12, %v2561_v35, %v2642_v25 }
 0x52b   :  { %v2819_v56 = vadd.f32 %v4528_v41, %v2818_v52  ;;  %v2706_v3 = vmul.f32 1.4142135, %v2674_v55 }
 0x52d   :  { %vm2895_vm13 = vcmp.ge.f32.partialorder %v2819_v56, 0.0  ;;  %v2927_v32 = vmul.f32 0.2, %v2819_v56  ;;  %v2562_v54 = vpop.f32.mrf.mxu2 }
 0x52e   :  { %v2563_v43 = vadd.f32 %v4476_v4, %v2562_v54 }
 0x52f   :  { %v2959_v53 = vsel %vm2895_vm13, %v2819_v56, %v2927_v32 }
 0x530   :  { %v2991_v33 = vmul.f32 1.4142135, %v2959_v53  ;;  %vm2611_vm14 = vcmp.ge.f32.partialorder %v2563_v43, 0.0  ;;  %v2643_v18 = vmul.f32 0.2, %v2563_v43 }
 0x532   :  { %3023 = vst.msk [vmem:[%s4714_s3 + $0x10] sm:$0xff] %vm79_vm0, %v2991_v33  ;;  %v2675_v19 = vsel %vm2611_vm14, %v2563_v43, %v2643_v18  ;;  %v2820_v57 = vpop.f32.mrf.mxu3 }
 0x533   :  { %v2707_v9 = vmul.f32 1.4142135, %v2675_v19  ;;  %v2821_v46 = vadd.f32 %v4528_v41, %v2820_v57 }
 0x535   :  { %v2728_v20 = vpack.c.bf16 %v2707_v9, %v2706_v3  ;;  %vm2896_vm15 = vcmp.ge.f32.partialorder %v2821_v46, 0.0  ;;  %v2928_v12 = vmul.f32 0.2, %v2821_v46  ;;  %v2565_v49 = vpop.f32.mrf.mxu2 }
 0x536   :  { %v2566_v42 = vadd.f32 %v4476_v4, %v2565_v49 }
 0x537   :  { %v2960_v37 = vsel %vm2896_vm15, %v2821_v46, %v2928_v12  ;;  %3278 = vmatmul.msk.bf16.gmra.mxu3 %vm79_vm0, %v2728_v20 }
 0x538   :  { %v2992_v31 = vmul.f32 1.4142135, %v2960_v37  ;;  %v2644_v50 = vmul.f32 0.2, %v2566_v42  ;;  %vm2612_vm1 = vcmp.ge.f32.partialorder %v2566_v42, 0.0 }
 0x53a   :  { %3024 = vst.msk [vmem:[%s4714_s3 + $0x18] sm:$0xff] %vm79_vm0, %v2992_v31  ;;  %v2823_v44 = vpop.f32.mrf.mxu3  ;;  %v2676_v22 = vsel %vm2612_vm1, %v2566_v42, %v2644_v50 }
 0x53b   :  { %v2824_v29 = vadd.f32 %v4528_v41, %v2823_v44  ;;  %v2708_v7 = vmul.f32 1.4142135, %v2676_v22 }
 0x53d   :  { %vm2897_vm2 = vcmp.ge.f32.partialorder %v2824_v29, 0.0  ;;  %v2929_v38 = vmul.f32 0.2, %v2824_v29  ;;  %v2567_v60 = vpop.f32.mrf.mxu2 }
 0x53e   :  { %v2568_v16 = vadd.f32 %v4476_v4, %v2567_v60 }
 0x53f   :  { %v2961_v14 = vsel %vm2897_vm2, %v2824_v29, %v2929_v38 }
 0x540   :  { %v2993_v28 = vmul.f32 1.4142135, %v2961_v14  ;;  %vm2613_vm3 = vcmp.ge.f32.partialorder %v2568_v16, 0.0  ;;  %v2645_v26 = vmul.f32 0.2, %v2568_v16 }
 0x542   :  { %3025 = vst.msk [vmem:[%s4714_s3 + $0x20] sm:$0xff] %vm79_vm0, %v2993_v28  ;;  %v2677_v23 = vsel %vm2613_vm3, %v2568_v16, %v2645_v26  ;;  %v2825_v62 = vpop.f32.mrf.mxu3 }
 0x543   :  { %v2709_v13 = vmul.f32 1.4142135, %v2677_v23  ;;  %v2826_v34 = vadd.f32 %v4528_v41, %v2825_v62 }
 0x545   :  { %v2729_v24 = vpack.c.bf16 %v2709_v13, %v2708_v7  ;;  %vm2898_vm4 = vcmp.ge.f32.partialorder %v2826_v34, 0.0  ;;  %v2930_v45 = vmul.f32 0.2, %v2826_v34  ;;  %v2570_v5 = vpop.f32.mrf.mxu2 }
 0x546   :  { %v2571_v58 = vadd.f32 %v4476_v4, %v2570_v5 }
 0x547   :  { %v2962_v21 = vsel %vm2898_vm4, %v2826_v34, %v2930_v45  ;;  %3279 = vmatmul.msk.bf16.gmra.mxu3 %vm79_vm0, %v2729_v24 }
 0x548   :  { %v2994_v30 = vmul.f32 1.4142135, %v2962_v21  ;;  %v2646_v0 = vmul.f32 0.2, %v2571_v58  ;;  %vm2614_vm5 = vcmp.ge.f32.partialorder %v2571_v58, 0.0 }
 0x54a   :  { %3026 = vst.msk [vmem:[%s4714_s3 + $0x28] sm:$0xff] %vm79_vm0, %v2994_v30  ;;  %v2828_v63 = vpop.f32.mrf.mxu3  ;;  %v2678_v47 = vsel %vm2614_vm5, %v2571_v58, %v2646_v0 }
 0x54b   :  { %v2829_v39 = vadd.f32 %v4528_v41, %v2828_v63  ;;  %v2710_v61 = vmul.f32 1.4142135, %v2678_v47 }
 0x54d   :  { %vm2899_vm6 = vcmp.ge.f32.partialorder %v2829_v39, 0.0  ;;  %v2931_v2 = vmul.f32 0.2, %v2829_v39  ;;  %v2572_v1 = vpop.f32.mrf.mxu2 }
 0x54e   :  { %v2573_v59 = vadd.f32 %v4476_v4, %v2572_v1 }
 0x54f   :  { %v2963_v6 = vsel %vm2899_vm6, %v2829_v39, %v2931_v2 }
 0x550   :  { %v2995_v11 = vmul.f32 1.4142135, %v2963_v6  ;;  %vm2615_vm7 = vcmp.ge.f32.partialorder %v2573_v59, 0.0  ;;  %v2647_v10 = vmul.f32 0.2, %v2573_v59 }
 0x552   :  { %3027 = vst.msk [vmem:[%s4714_s3 + $0x30] sm:$0xff] %vm79_vm0, %v2995_v11  ;;  %v2679_v15 = vsel %vm2615_vm7, %v2573_v59, %v2647_v10  ;;  %v2830_v27 = vpop.f32.mrf.mxu3 }
 0x553   :  { %v2711_v51 = vmul.f32 1.4142135, %v2679_v15  ;;  %v2831_v17 = vadd.f32 %v4528_v41, %v2830_v27 }
 0x555   :  { %v2730_v40 = vpack.c.bf16 %v2711_v51, %v2710_v61  ;;  %vm2900_vm8 = vcmp.ge.f32.partialorder %v2831_v17, 0.0  ;;  %v2932_v36 = vmul.f32 0.2, %v2831_v17  ;;  %v2575_v48 = vpop.f32.mrf.mxu2 }
 0x556   :  { %v2576_v52 = vadd.f32 %v4476_v4, %v2575_v48 }
 0x557   :  { %v2964_v8 = vsel %vm2900_vm8, %v2831_v17, %v2932_v36  ;;  %3280 = vmatmul.msk.bf16.gmra.mxu3 %vm79_vm0, %v2730_v40 }
 0x558   :  { %v2996_v35 = vmul.f32 1.4142135, %v2964_v8  ;;  %v2648_v32 = vmul.f32 0.2, %v2576_v52  ;;  %vm2616_vm9 = vcmp.ge.f32.partialorder %v2576_v52, 0.0 }
 0x55a   :  { %3028 = vst.msk [vmem:[%s4714_s3 + $0x38] sm:$0xff] %vm79_vm0, %v2996_v35  ;;  %v2833_v56 = vpop.f32.mrf.mxu3  ;;  %v2680_v33 = vsel %vm2616_vm9, %v2576_v52, %v2648_v32 }
 0x55b   :  { %v2834_v25 = vadd.f32 %v4528_v41, %v2833_v56  ;;  %v2712_v9 = vmul.f32 1.4142135, %v2680_v33 }
 0x55d   :  { %vm2901_vm10 = vcmp.ge.f32.partialorder %v2834_v25, 0.0  ;;  %v2933_v54 = vmul.f32 0.2, %v2834_v25  ;;  %v2577_v43 = vpop.f32.mrf.mxu2 }
 0x55e   :  { %v2578_v53 = vadd.f32 %v4476_v4, %v2577_v43 }
 0x55f   :  { %v2965_v55 = vsel %vm2901_vm10, %v2834_v25, %v2933_v54 }
 0x560   :  { %v2997_v18 = vmul.f32 1.4142135, %v2965_v55  ;;  %vm2617_vm11 = vcmp.ge.f32.partialorder %v2578_v53, 0.0  ;;  %v2649_v19 = vmul.f32 0.2, %v2578_v53 }
 0x562   :  { %3029 = vst.msk [vmem:[%s4714_s3 + $0x40] sm:$0xff] %vm79_vm0, %v2997_v18  ;;  %v2681_v57 = vsel %vm2617_vm11, %v2578_v53, %v2649_v19  ;;  %v2835_v3 = vpop.f32.mrf.mxu3 }
 0x563   :  { %v2713_v46 = vmul.f32 1.4142135, %v2681_v57  ;;  %v2836_v20 = vadd.f32 %v4528_v41, %v2835_v3 }
 0x565   :  { %v2731_v12 = vpack.c.bf16 %v2713_v46, %v2712_v9  ;;  %vm2902_vm12 = vcmp.ge.f32.partialorder %v2836_v20, 0.0  ;;  %v2934_v49 = vmul.f32 0.2, %v2836_v20  ;;  %v2580_v37 = vpop.f32.mrf.mxu2 }
 0x566   :  { %v2581_v44 = vadd.f32 %v4476_v4, %v2580_v37 }
 0x567   :  { %v2966_v31 = vsel %vm2902_vm12, %v2836_v20, %v2934_v49  ;;  %3281 = vmatmul.msk.bf16.gmra.mxu3 %vm79_vm0, %v2731_v12 }
 0x568   :  { %v2998_v42 = vmul.f32 1.4142135, %v2966_v31  ;;  %v2650_v38 = vmul.f32 0.2, %v2581_v44  ;;  %vm2618_vm13 = vcmp.ge.f32.partialorder %v2581_v44, 0.0 }
 0x56a   :  { %3030 = vst.msk [vmem:[%s4714_s3 + $0x48] sm:$0xff] %vm79_vm0, %v2998_v42  ;;  %v2838_v29 = vpop.f32.mrf.mxu3  ;;  %v2682_v28 = vsel %vm2618_vm13, %v2581_v44, %v2650_v38 }
 0x56b   :  { %v2839_v50 = vadd.f32 %v4528_v41, %v2838_v29  ;;  %v2714_v13 = vmul.f32 1.4142135, %v2682_v28 }
 0x56d   :  { %vm2903_vm14 = vcmp.ge.f32.partialorder %v2839_v50, 0.0  ;;  %v2935_v60 = vmul.f32 0.2, %v2839_v50  ;;  %v2582_v16 = vpop.f32.mrf.mxu2 }
 0x56e   :  { %v2583_v14 = vadd.f32 %v4476_v4, %v2582_v16 }
 0x56f   :  { %v2967_v22 = vsel %vm2903_vm14, %v2839_v50, %v2935_v60 }
 0x570   :  { %v2999_v26 = vmul.f32 1.4142135, %v2967_v22  ;;  %vm2619_vm15 = vcmp.ge.f32.partialorder %v2583_v14, 0.0  ;;  %v2651_v23 = vmul.f32 0.2, %v2583_v14 }
 0x572   :  { %3031 = vst.msk [vmem:[%s4714_s3 + $0x50] sm:$0xff] %vm79_vm0, %v2999_v26  ;;  %v2683_v62 = vsel %vm2619_vm15, %v2583_v14, %v2651_v23  ;;  %v2840_v7 = vpop.f32.mrf.mxu3 }
 0x573   :  { %v2715_v34 = vmul.f32 1.4142135, %v2683_v62  ;;  %v2841_v24 = vadd.f32 %v4528_v41, %v2840_v7 }
 0x575   :  { %v2732_v45 = vpack.c.bf16 %v2715_v34, %v2714_v13  ;;  %vm2904_vm1 = vcmp.ge.f32.partialorder %v2841_v24, 0.0  ;;  %v2936_v5 = vmul.f32 0.2, %v2841_v24  ;;  %v2585_v21 = vpop.f32.mrf.mxu2 }
 0x576   :  { %v2586_v63 = vadd.f32 %v4476_v4, %v2585_v21 }
 0x577   :  { %v2968_v30 = vsel %vm2904_vm1, %v2841_v24, %v2936_v5  ;;  %3282 = vmatmul.msk.bf16.gmra.mxu3 %vm79_vm0, %v2732_v45 }
 0x578   :  { %v3000_v58 = vmul.f32 1.4142135, %v2968_v30  ;;  %v2652_v2 = vmul.f32 0.2, %v2586_v63  ;;  %vm2620_vm2 = vcmp.ge.f32.partialorder %v2586_v63, 0.0 }
 0x57a   :  { %3032 = vst.msk [vmem:[%s4714_s3 + $0x58] sm:$0xff] %vm79_vm0, %v3000_v58  ;;  %v2843_v39 = vpop.f32.mrf.mxu3  ;;  %v2684_v11 = vsel %vm2620_vm2, %v2586_v63, %v2652_v2 }
 0x57b   :  { %v2844_v0 = vadd.f32 %v4528_v41, %v2843_v39  ;;  %v2716_v51 = vmul.f32 1.4142135, %v2684_v11 }
 0x57d   :  { %vm2905_vm3 = vcmp.ge.f32.partialorder %v2844_v0, 0.0  ;;  %v2937_v1 = vmul.f32 0.2, %v2844_v0  ;;  %v2587_v59 = vpop.f32.mrf.mxu2 }
 0x57e   :  { %v2588_v6 = vadd.f32 %v4476_v4, %v2587_v59 }
 0x57f   :  { %v2969_v47 = vsel %vm2905_vm3, %v2844_v0, %v2937_v1 }
 0x580   :  { %v3001_v10 = vmul.f32 1.4142135, %v2969_v47  ;;  %vm2621_vm4 = vcmp.ge.f32.partialorder %v2588_v6, 0.0  ;;  %v2653_v15 = vmul.f32 0.2, %v2588_v6 }
 0x582   :  { %3033 = vst.msk [vmem:[%s4714_s3 + $0x60] sm:$0xff] %vm79_vm0, %v3001_v10  ;;  %v2685_v27 = vsel %vm2621_vm4, %v2588_v6, %v2653_v15  ;;  %v2845_v61 = vpop.f32.mrf.mxu3 }
 0x583   :  { %v2717_v17 = vmul.f32 1.4142135, %v2685_v27  ;;  %v2846_v40 = vadd.f32 %v4528_v41, %v2845_v61 }
 0x585   :  { %v2733_v36 = vpack.c.bf16 %v2717_v17, %v2716_v51  ;;  %vm2906_vm5 = vcmp.ge.f32.partialorder %v2846_v40, 0.0  ;;  %v2938_v48 = vmul.f32 0.2, %v2846_v40 }
 0x587   :  { %v2970_v4 = vsel %vm2906_vm5, %v2846_v40, %v2938_v48  ;;  %3283 = vmatmul.msk.bf16.gmra.mxu3 %vm79_vm0, %v2733_v36 }
 0x588   :  { %v3002_v8 = vmul.f32 1.4142135, %v2970_v4 }
 0x58a   :  { %3034 = vst.msk [vmem:[%s4714_s3 + $0x68] sm:$0xff] %vm79_vm0, %v3002_v8  ;;  %v2848_v35 = vpop.f32.mrf.mxu3 }
 0x58b   :  { %v2849_v52 = vadd.f32 %v4528_v41, %v2848_v35 }
 0x58d   :  { %vm2907_vm6 = vcmp.ge.f32.partialorder %v2849_v52, 0.0  ;;  %v2939_v56 = vmul.f32 0.2, %v2849_v52 }
 0x58f   :  { %v2971_v25 = vsel %vm2907_vm6, %v2849_v52, %v2939_v56 }
 0x590   :  { %v3003_v32 = vmul.f32 1.4142135, %v2971_v25 }
 0x592   :  { %3035 = vst.msk [vmem:[%s4714_s3 + $0x70] sm:$0xff] %vm79_vm0, %v3003_v32  ;;  %v2850_v54 = vpop.f32.mrf.mxu3 }
 0x593   :  { %v2851_v43 = vadd.f32 %v4528_v41, %v2850_v54 }
 0x595   :  { %vm2908_vm7 = vcmp.ge.f32.partialorder %v2851_v43, 0.0  ;;  %v2940_v53 = vmul.f32 0.2, %v2851_v43 }
 0x597   :  { %v2972_v55 = vsel %vm2908_vm7, %v2851_v43, %v2940_v53 }
 0x598   :  { %v3004_v33 = vmul.f32 1.4142135, %v2972_v55 }
 0x59a   :  { %3036 = vst.msk [vmem:[%s4714_s3 + $0x78] sm:$0xff] %vm79_vm0, %v3004_v33  ;;  %v2853_v18 = vpop.f32.mrf.mxu3 }
 0x59b   :  { %v2854_v19 = vadd.f32 %v4528_v41, %v2853_v18 }
 0x59d   :  { %vm2909_vm8 = vcmp.ge.f32.partialorder %v2854_v19, 0.0  ;;  %v2941_v57 = vmul.f32 0.2, %v2854_v19 }
 0x59f   :  { %v2973_v3 = vsel %vm2909_vm8, %v2854_v19, %v2941_v57 }
 0x5a0   :  { %v3005_v9 = vmul.f32 1.4142135, %v2973_v3 }
 0x5a2   :  { %3037 = vst.msk [vmem:[%s4714_s3 + $0x80] sm:$0xff] %vm79_vm0, %v3005_v9  ;;  %v2855_v46 = vpop.f32.mrf.mxu3 }
 0x5a3   :  { %v2856_v20 = vadd.f32 %v4528_v41, %v2855_v46 }
 0x5a5   :  { %vm2910_vm9 = vcmp.ge.f32.partialorder %v2856_v20, 0.0  ;;  %v2942_v12 = vmul.f32 0.2, %v2856_v20 }
 0x5a7   :  { %v2974_v49 = vsel %vm2910_vm9, %v2856_v20, %v2942_v12 }
 0x5a8   :  { %v3006_v37 = vmul.f32 1.4142135, %v2974_v49 }
 0x5aa   :  { %3038 = vst.msk [vmem:[%s4714_s3 + $0x88] sm:$0xff] %vm79_vm0, %v3006_v37  ;;  %v2858_v31 = vpop.f32.mrf.mxu3 }
 0x5ab   :  { %v2859_v42 = vadd.f32 %v4528_v41, %v2858_v31 }
 0x5ad   :  { %vm2911_vm10 = vcmp.ge.f32.partialorder %v2859_v42, 0.0  ;;  %v2943_v44 = vmul.f32 0.2, %v2859_v42 }
 0x5af   :  { %v2975_v29 = vsel %vm2911_vm10, %v2859_v42, %v2943_v44 }
 0x5b0   :  { %v3007_v50 = vmul.f32 1.4142135, %v2975_v29 }
 0x5b2   :  { %3039 = vst.msk [vmem:[%s4714_s3 + $0x90] sm:$0xff] %vm79_vm0, %v3007_v50  ;;  %v2860_v38 = vpop.f32.mrf.mxu3 }
 0x5b3   :  { %v2861_v60 = vadd.f32 %v4528_v41, %v2860_v38 }
 0x5b5   :  { %vm2912_vm11 = vcmp.ge.f32.partialorder %v2861_v60, 0.0  ;;  %v2944_v16 = vmul.f32 0.2, %v2861_v60 }
 0x5b7   :  { %v2976_v14 = vsel %vm2912_vm11, %v2861_v60, %v2944_v16 }
 0x5b8   :  { %v3008_v22 = vmul.f32 1.4142135, %v2976_v14 }
 0x5ba   :  { %3040 = vst.msk [vmem:[%s4714_s3 + $0x98] sm:$0xff] %vm79_vm0, %v3008_v22  ;;  %v2863_v28 = vpop.f32.mrf.mxu3 }
 0x5bb   :  { %v2864_v26 = vadd.f32 %v4528_v41, %v2863_v28 }
 0x5bd   :  { %vm2913_vm12 = vcmp.ge.f32.partialorder %v2864_v26, 0.0  ;;  %v2945_v23 = vmul.f32 0.2, %v2864_v26 }
 0x5bf   :  { %v2977_v62 = vsel %vm2913_vm12, %v2864_v26, %v2945_v23 }
 0x5c0   :  { %v3009_v7 = vmul.f32 1.4142135, %v2977_v62 }
 0x5c2   :  { %3041 = vst.msk [vmem:[%s4714_s3 + $0xa0] sm:$0xff] %vm79_vm0, %v3009_v7  ;;  %v2865_v13 = vpop.f32.mrf.mxu3 }
 0x5c3   :  { %v2866_v34 = vadd.f32 %v4528_v41, %v2865_v13 }
 0x5c5   :  { %vm2914_vm13 = vcmp.ge.f32.partialorder %v2866_v34, 0.0  ;;  %v2946_v24 = vmul.f32 0.2, %v2866_v34 }
 0x5c7   :  { %v2978_v45 = vsel %vm2914_vm13, %v2866_v34, %v2946_v24 }
 0x5c8   :  { %v3010_v5 = vmul.f32 1.4142135, %v2978_v45 }
 0x5ca   :  { %3042 = vst.msk [vmem:[%s4714_s3 + $0xa8] sm:$0xff] %vm79_vm0, %v3010_v5  ;;  %v2868_v21 = vpop.f32.mrf.mxu3 }
 0x5cb   :  { %v2869_v30 = vadd.f32 %v4528_v41, %v2868_v21 }
 0x5cd   :  { %vm2915_vm14 = vcmp.ge.f32.partialorder %v2869_v30, 0.0  ;;  %v2947_v58 = vmul.f32 0.2, %v2869_v30 }
 0x5cf   :  { %v2979_v63 = vsel %vm2915_vm14, %v2869_v30, %v2947_v58 }
 0x5d0   :  { %v3011_v39 = vmul.f32 1.4142135, %v2979_v63 }
 0x5d2   :  { %3043 = vst.msk [vmem:[%s4714_s3 + $0xb0] sm:$0xff] %vm79_vm0, %v3011_v39  ;;  %v2870_v0 = vpop.f32.mrf.mxu3 }
 0x5d3   :  { %v2871_v2 = vadd.f32 %v4528_v41, %v2870_v0 }
 0x5d5   :  { %vm2916_vm15 = vcmp.ge.f32.partialorder %v2871_v2, 0.0  ;;  %v2948_v1 = vmul.f32 0.2, %v2871_v2 }
 0x5d7   :  { %v2980_v59 = vsel %vm2916_vm15, %v2871_v2, %v2948_v1 }
 0x5d8   :  { %v3012_v6 = vmul.f32 1.4142135, %v2980_v59 }
 0x5da   :  { %3044 = vst.msk [vmem:[%s4714_s3 + $0xb8] sm:$0xff] %vm79_vm0, %v3012_v6  ;;  %v2873_v47 = vpop.f32.mrf.mxu3 }
 0x5db   :  { %v2874_v11 = vadd.f32 %v4528_v41, %v2873_v47 }
 0x5dd   :  { %vm2917_vm1 = vcmp.ge.f32.partialorder %v2874_v11, 0.0  ;;  %v2949_v10 = vmul.f32 0.2, %v2874_v11 }
 0x5df   :  { %v2981_v15 = vsel %vm2917_vm1, %v2874_v11, %v2949_v10 }
 0x5e0   :  { %v3013_v27 = vmul.f32 1.4142135, %v2981_v15 }
 0x5e2   :  { %3045 = vst.msk [vmem:[%s4714_s3 + $0xc0] sm:$0xff] %vm79_vm0, %v3013_v27  ;;  %v2875_v61 = vpop.f32.mrf.mxu3 }
 0x5e3   :  { %v2876_v51 = vadd.f32 %v4528_v41, %v2875_v61 }
 0x5e5   :  { %vm2918_vm2 = vcmp.ge.f32.partialorder %v2876_v51, 0.0  ;;  %v2950_v17 = vmul.f32 0.2, %v2876_v51 }
 0x5e7   :  { %v2982_v40 = vsel %vm2918_vm2, %v2876_v51, %v2950_v17 }
 0x5e8   :  { %v3014_v36 = vmul.f32 1.4142135, %v2982_v40 }
 0x5ea   :  { %3046 = vst.msk [vmem:[%s4714_s3 + $0xc8] sm:$0xff] %vm79_vm0, %v3014_v36  ;;  %v2878_v48 = vpop.f32.mrf.mxu3 }
 0x5eb   :  { %v2879_v4 = vadd.f32 %v4528_v41, %v2878_v48 }
 0x5ed   :  { %vm2919_vm3 = vcmp.ge.f32.partialorder %v2879_v4, 0.0  ;;  %v2951_v8 = vmul.f32 0.2, %v2879_v4 }
 0x5ef   :  { %v2983_v35 = vsel %vm2919_vm3, %v2879_v4, %v2951_v8 }
 0x5f0   :  { %v3015_v52 = vmul.f32 1.4142135, %v2983_v35 }
 0x5f2   :  { %3047 = vst.msk [vmem:[%s4714_s3 + $0xd0] sm:$0xff] %vm79_vm0, %v3015_v52  ;;  %v2880_v56 = vpop.f32.mrf.mxu3 }
 0x5f3   :  { %v2881_v25 = vadd.f32 %v4528_v41, %v2880_v56 }
 0x5f5   :  { %vm2920_vm4 = vcmp.ge.f32.partialorder %v2881_v25, 0.0  ;;  %v2952_v32 = vmul.f32 0.2, %v2881_v25 }
 0x5f7   :  { %v2984_v54 = vsel %vm2920_vm4, %v2881_v25, %v2952_v32 }
 0x5f8   :  { %v3016_v43 = vmul.f32 1.4142135, %v2984_v54 }
 0x5fa   :  { %3048 = vst.msk [vmem:[%s4714_s3 + $0xd8] sm:$0xff] %vm79_vm0, %v3016_v43  ;;  %v2883_v53 = vpop.f32.mrf.mxu3 }
 0x5fb   :  { %v2884_v55 = vadd.f32 %v4528_v41, %v2883_v53 }
 0x5fd   :  { %vm2921_vm5 = vcmp.ge.f32.partialorder %v2884_v55, 0.0  ;;  %v2953_v33 = vmul.f32 0.2, %v2884_v55 }
 0x5ff   :  { %v2985_v18 = vsel %vm2921_vm5, %v2884_v55, %v2953_v33 }
 0x600   :  { %v3017_v19 = vmul.f32 1.4142135, %v2985_v18 }
 0x602   :  { %3049 = vst.msk [vmem:[%s4714_s3 + $0xe0] sm:$0xff] %vm79_vm0, %v3017_v19  ;;  %v2885_v57 = vpop.f32.mrf.mxu3 }
 0x603   :  { %v2886_v3 = vadd.f32 %v4528_v41, %v2885_v57 }
 0x605   :  { %vm2922_vm6 = vcmp.ge.f32.partialorder %v2886_v3, 0.0  ;;  %v2954_v9 = vmul.f32 0.2, %v2886_v3 }
 0x607   :  { %v2986_v46 = vsel %vm2922_vm6, %v2886_v3, %v2954_v9 }
 0x608   :  { %v3018_v20 = vmul.f32 1.4142135, %v2986_v46 }
 0x60a   :  { %3050 = vst.msk [vmem:[%s4714_s3 + $0xe8] sm:$0xff] %vm79_vm0, %v3018_v20  ;;  %v2888_v12 = vpop.f32.mrf.mxu3 }
 0x60b   :  { %v2889_v49 = vadd.f32 %v4528_v41, %v2888_v12 }
 0x60d   :  { %vm2923_vm7 = vcmp.ge.f32.partialorder %v2889_v49, 0.0  ;;  %v2955_v37 = vmul.f32 0.2, %v2889_v49 }
 0x60f   :  { %v2987_v31 = vsel %vm2923_vm7, %v2889_v49, %v2955_v37 }
 0x610   :  { %v3019_v42 = vmul.f32 1.4142135, %v2987_v31 }
 0x612   :  { %3051 = vst.msk [vmem:[%s4714_s3 + $0xf0] sm:$0xff] %vm79_vm0, %v3019_v42  ;;  %v2890_v44 = vpop.f32.mrf.mxu3 }
 0x613   :  { %v2891_v29 = vadd.f32 %v4528_v41, %v2890_v44 }
 0x615   :  { %vm2924_vm8 = vcmp.ge.f32.partialorder %v2891_v29, 0.0  ;;  %v2956_v50 = vmul.f32 0.2, %v2891_v29 }
 0x617   :  { %v2988_v38 = vsel %vm2924_vm8, %v2891_v29, %v2956_v50 }
 0x618   :  { %v3020_v60 = vmul.f32 1.4142135, %v2988_v38 }
 0x61a   :  { %3052 = vst.msk [vmem:[%s4714_s3 + $0xf8] sm:$0xff] %vm79_vm0, %v3020_v60 }

</bundles_post_ra>
